<compile_context>
chip_gen: v7x
topology: tpu7x:2x2x1
jax: 0.10.0
libtpu: 0.0.40
codegen_flags: <defaults>
</compile_context>

<pallas_src>
import math
from functools import partial

import jax
import jax.numpy as jnp
from jax.experimental import pallas as pl
from jax.experimental.pallas import tpu as pltpu


# ----------------------------------------------------------------------------
# In-kernel building blocks (operate on jnp values already loaded from refs)
# ----------------------------------------------------------------------------

def _mha_block(qx, kx, vx, wq, bq, wk, bk, wv, bv, wo, bo, num_heads,
               mask_pred=None):
    """Multi-head attention on (Lq,C)/(Lk,C) tiles; single fused out-proj."""
    qp = jnp.dot(qx, wq, preferred_element_type=jnp.float32) + bq
    kp = jnp.dot(kx, wk, preferred_element_type=jnp.float32) + bk
    vp = jnp.dot(vx, wv, preferred_element_type=jnp.float32) + bv

    C = qp.shape[-1]
    dh = C // num_heads
    scale = 1.0 / math.sqrt(dh)

    heads = []
    for h in range(num_heads):
        lo, hi = h * dh, (h + 1) * dh
        s = jax.lax.dot_general(qp[:, lo:hi], kp[:, lo:hi],
                                (((1,), (1,)), ((), ())),
                                preferred_element_type=jnp.float32) * scale
        if mask_pred is not None:
            s = jnp.where(mask_pred, jnp.full_like(s, -1e9), s)
        p = jax.nn.softmax(s, axis=-1)
        heads.append(jnp.dot(p, vp[:, lo:hi],
                             preferred_element_type=jnp.float32))
    out = jnp.concatenate(heads, axis=-1)                  # (Lq, C)
    return jnp.dot(out, wo, preferred_element_type=jnp.float32) + bo


def _add_ln(x, r, w, b, eps=1e-5):
    y = x + r
    mu = jnp.mean(y, axis=-1, keepdims=True)
    var = jnp.mean(jnp.square(y - mu), axis=-1, keepdims=True)
    return (y - mu) * jax.lax.rsqrt(var + eps) * w + b


def _ffn_block(x, w1, b1, w2, b2):
    h = jnp.dot(x, w1, preferred_element_type=jnp.float32) + b1
    # TODO(synk): PyTorch nn.GELU default is exact erf; tanh approximation used
    #             here for a Mosaic-safe transcendental path.
    h = jax.nn.gelu(h, approximate=True)
    return jnp.dot(h, w2, preferred_element_type=jnp.float32) + b2


# ----------------------------------------------------------------------------
# Kernel 1: fused scene-gating + CASAFFN, one (batch, person) per grid step
# ----------------------------------------------------------------------------

def _casaffn_kernel(qmask_ref, jq_ref, jqpe_ref, f_ref, fpe_ref, *refs,
                    num_heads):
    (wql, bql,
     cwq, cbq, cwk, cbk, cwv, cbv, cwo, cbo, n1w, n1b,
     swq, sbq, swk, sbk, swv, sbv, swo, sbo, n2w, n2b,
     fw1, fb1, fw2, fb2, n3w, n3b,
     o_ref) = refs

    b = pl.program_id(0)
    n = pl.program_id(1)
    masked = qmask_ref[b, n] > 0            # scalar: person fully masked out

    x = jq_ref[0, 0]                        # (L, C)  [joints..., query] tokens
    xpe = jqpe_ref[0, 0]                    # (L, C)
    fT = f_ref[0]                           # (HW, C) scene features
    fpe = fpe_ref[0]                        # (HW, C) scene pos-enc
    L = x.shape[0]

    # ---- scene gating (fused; query token is the last row of x) -------------
    qtok = x[L - 1:L, :]                                          # (1, C)
    qproj = jnp.dot(qtok, wql[...],
                    preferred_element_type=jnp.float32) + bql[...]
    # gate[hw] = sigmoid( q_linear(q) . f[:, hw] )  — VPU mul + lane reduce
    gate = jax.nn.sigmoid(jnp.sum(fT * qproj, axis=-1, keepdims=True))  # (HW,1)
    kf = fT * gate                                                # (HW, C)

    # ---- CASAFFN: cross-attn -> LN -> self-attn -> LN -> FFN -> LN ----------
    xq = x + xpe
    ca = _mha_block(xq, kf + fpe, kf,
                    cwq[...], cbq[...], cwk[...], cbk[...],
                    cwv[...], cbv[...], cwo[...], cbo[...], num_heads)
    x = _add_ln(x, ca, n1w[...], n1b[...])

    xq = x + xpe
    sa = _mha_block(xq, xq, x,
                    swq[...], sbq[...], swk[...], sbk[...],
                    swv[...], sbv[...], swo[...], sbo[...],
                    num_heads, mask_pred=masked)
    x = _add_ln(x, sa, n2w[...], n2b[...])

    ff = _ffn_block(x, fw1[...], fb1[...], fw2[...], fb2[...])
    x = _add_ln(x, ff, n3w[...], n3b[...])

    o_ref[0, 0] = x.astype(o_ref.dtype)


def casaffn_fused(qmask_i32, jq, jqpe, f_hwc, fpe_hwc, params, num_heads):
    B, N, L, C = jq.shape
    HW = f_hwc.shape[1]
    inner = params["inner"]
    ql = params["q_linear"]
    Hd = inner["ffn"]["w1"].shape[1]

    seq_spec = pl.BlockSpec((1, 1, L, C), lambda b, n, qm: (b, n, 0, 0))
    scene_spec = pl.BlockSpec((1, HW, C), lambda b, n, qm: (b, 0, 0))

    def wspec(shape):
        return pl.BlockSpec(shape, lambda b, n, qm: (0,) * len(shape))

    b2 = lambda v: v.reshape(1, -1)

    attn_specs = [wspec((C, C)), wspec((1, C))] * 4

    def attn_args(a):
        return [a["wq"], b2(a["bq"]), a["wk"], b2(a["bk"]),
                a["wv"], b2(a["bv"]), a["wo"], b2(a["bo"])]

    in_specs = ([seq_spec, seq_spec, scene_spec, scene_spec,
                 wspec((C, C)), wspec((1, C))]
                + attn_specs + [wspec((1, C)), wspec((1, C))]
                + attn_specs + [wspec((1, C)), wspec((1, C))]
                + [wspec((C, Hd)), wspec((1, Hd)),
                   wspec((Hd, C)), wspec((1, C))]
                + [wspec((1, C)), wspec((1, C))])

    args = ([jq, jqpe, f_hwc, fpe_hwc, ql["w"], b2(ql["b"])]
            + attn_args(inner["cross_attn"])
            + [b2(inner["norm1"]["w"]), b2(inner["norm1"]["b"])]
            + attn_args(inner["self_attn"])
            + [b2(inner["norm2"]["w"]), b2(inner["norm2"]["b"])]
            + [inner["ffn"]["w1"], b2(inner["ffn"]["b1"]),
               inner["ffn"]["w2"], b2(inner["ffn"]["b2"])]
            + [b2(inner["norm3"]["w"]), b2(inner["norm3"]["b"])])

    return pl.pallas_call(
        partial(_casaffn_kernel, num_heads=num_heads),
        out_shape=jax.ShapeDtypeStruct((B, N, L, C), jnp.float32),
        grid_spec=pltpu.PrefetchScalarGridSpec(
            num_scalar_prefetch=1,
            grid=(B, N),
            in_specs=in_specs,
            out_specs=seq_spec),
        compiler_params=pltpu.CompilerParams(
            dimension_semantics=("parallel", "parallel")),
    )(qmask_i32, *args)


# ----------------------------------------------------------------------------
# Kernel 2: fused xi self-attention + FFN over person tokens (grid over batch)
# ----------------------------------------------------------------------------

def _xi_kernel(q_ref, qpe_ref, qmc_ref, qmr_ref, *refs, num_heads):
    (wq, bq, wk, bk, wv, bv, wo, bo, n1w, n1b,
     fw1, fb1, fw2, fb2, n2w, n2b, o_ref) = refs

    x0 = q_ref[0]                           # (N, C)  q_new tokens
    xpe = qpe_ref[0]                        # (N, C)
    # mask[i,j] = q_mask[i] * q_mask[j]  (built in-kernel, no NxN DMA)
    pred = (qmc_ref[0] > 0.5) & (qmr_ref[0] > 0.5)     # (N,1)&(1,N) -> (N,N)

    xq = x0 + xpe
    sa = _mha_block(xq, xq, x0,
                    wq[...], bq[...], wk[...], bk[...],
                    wv[...], bv[...], wo[...], bo[...],
                    num_heads, mask_pred=pred)
    x = _add_ln(x0, sa, n1w[...], n1b[...])
    ff = _ffn_block(x, fw1[...], fb1[...], fw2[...], fb2[...])
    x = _add_ln(x, ff, n2w[...], n2b[...])

    o_ref[0] = (x0 + x).astype(o_ref.dtype)            # q_out = q_new + sp_tokens


def xi_fused(q_new, qpe, qm_col, qm_row, params, num_heads):
    B, N, C = q_new.shape
    Hd = params["xi_ffn"]["w1"].shape[1]

    seq_spec = pl.BlockSpec((1, N, C), lambda b: (b, 0, 0))
    col_spec = pl.BlockSpec((1, N, 1), lambda b: (b, 0, 0))
    row_spec = pl.BlockSpec((1, 1, N), lambda b: (b, 0, 0))

    def wspec(shape):
        return pl.BlockSpec(shape, lambda b: (0,) * len(shape))

    b2 = lambda v: v.reshape(1, -1)
    a = params["xi_sa"]

    in_specs = ([seq_spec, seq_spec, col_spec, row_spec]
                + [wspec((C, C)), wspec((1, C))] * 4
                + [wspec((1, C)), wspec((1, C))]
                + [wspec((C, Hd)), wspec((1, Hd)),
                   wspec((Hd, C)), wspec((1, C))]
                + [wspec((1, C)), wspec((1, C))])

    args = [q_new, qpe, qm_col, qm_row,
            a["wq"], b2(a["bq"]), a["wk"], b2(a["bk"]),
            a["wv"], b2(a["bv"]), a["wo"], b2(a["bo"]),
            b2(params["xi_sa_norm"]["w"]), b2(params["xi_sa_norm"]["b"]),
            params["xi_ffn"]["w1"], b2(params["xi_ffn"]["b1"]),
            params["xi_ffn"]["w2"], b2(params["xi_ffn"]["b2"]),
            b2(params["xi_ffn_norm"]["w"]), b2(params["xi_ffn_norm"]["b"])]

    return pl.pallas_call(
        partial(_xi_kernel, num_heads=num_heads),
        out_shape=jax.ShapeDtypeStruct((B, N, C), jnp.float32),
        grid=(B,),
        in_specs=in_specs,
        out_specs=seq_spec,
        compiler_params=pltpu.CompilerParams(
            dimension_semantics=("parallel",)),
    )(*args)


# ----------------------------------------------------------------------------
# Parameter construction (deterministic, synthetic)
# ----------------------------------------------------------------------------

def _lin(key, din, dout):
    return 0.02 * jax.random.normal(key, (din, dout), jnp.float32)


def make_attn_params(key, C):
    ks = jax.random.split(key, 4)
    z = jnp.zeros((C,), jnp.float32)
    return dict(wq=_lin(ks[0], C, C), bq=z, wk=_lin(ks[1], C, C), bk=z,
                wv=_lin(ks[2], C, C), bv=z, wo=_lin(ks[3], C, C), bo=z)


def make_ln_params(C):
    return dict(w=jnp.ones((C,), jnp.float32), b=jnp.zeros((C,), jnp.float32))


def make_ffn_params(key, C, H):
    k1, k2 = jax.random.split(key)
    return dict(w1=_lin(k1, C, H), b1=jnp.zeros((H,), jnp.float32),
                w2=_lin(k2, H, C), b2=jnp.zeros((C,), jnp.float32))


def make_params(key, C, hidden):
    ks = jax.random.split(key, 8)
    inner = dict(
        cross_attn=make_attn_params(ks[0], C),
        norm1=make_ln_params(C),
        self_attn=make_attn_params(ks[1], C),
        norm2=make_ln_params(C),
        ffn=make_ffn_params(ks[2], C, hidden),
        norm3=make_ln_params(C),
    )
    return dict(
        inner=inner,
        q_linear=dict(w=_lin(ks[3], C, C), b=jnp.zeros((C,), jnp.float32)),
        xi_sa=make_attn_params(ks[4], C),
        xi_sa_norm=make_ln_params(C),
        xi_ffn=make_ffn_params(ks[5], C, hidden),
        xi_ffn_norm=make_ln_params(C),
    )


# ----------------------------------------------------------------------------
# Full AInteraction forward (JAX glue around the two fused kernels)
# ----------------------------------------------------------------------------

def ainteraction_forward(params, j, jpe, q, qpe, z, zpe, q_mask, *, num_heads):
    B, N, K, C = j.shape
    HW = z.shape[2] * z.shape[3]

    # scene features / pos-enc, NCHW -> (B, HW, C); single layout only
    f_hwc = jnp.transpose(z.reshape(B, C, HW), (0, 2, 1))
    fpe_hwc = jnp.transpose(zpe.reshape(B, C, HW), (0, 2, 1))

    # [joints..., query] token sequences per person
    jq = jnp.concatenate([j, q[:, :, None, :]], axis=2)           # (B,N,K+1,C)
    jqpe = jnp.concatenate([jpe, qpe[:, :, None, :]], axis=2)
    qmask_i32 = (q_mask.reshape(B, N) > 0.5).astype(jnp.int32)

    # fused gating + CASAFFN
    jq_out = casaffn_fused(qmask_i32, jq, jqpe, f_hwc, fpe_hwc,
                           params, num_heads)                     # (B,N,K+1,C)
    j_out = jq_out[:, :, :K, :]
    q_new = jq_out[:, :, K, :]                                    # (B, N, C)

    # fused xi self-attn + FFN (+ final residual with q_new)
    qm_col = q_mask.astype(jnp.float32)                           # (B, N, 1)
    qm_row = jnp.transpose(qm_col, (0, 2, 1))                     # (B, 1, N)
    q_out = xi_fused(q_new, qpe, qm_col, qm_row, params, num_heads)
    return q_out, j_out


# ----------------------------------------------------------------------------
# Example run
# ----------------------------------------------------------------------------

if __name__ == "__main__":
    B, N, K, C = 2, 4, 5, 32
    num_heads = 4
    hidden = 64
    H = W = 4

    key = jax.random.PRNGKey(0)
    kk = jax.random.split(key, 9)

    j = jax.random.normal(kk[0], (B, N, K, C), jnp.float32)
    jpe = jax.random.normal(kk[1], (B, N, K, C), jnp.float32)
    q = jax.random.normal(kk[2], (B, N, C), jnp.float32)
    qpe = jax.random.normal(kk[3], (B, N, C), jnp.float32)
    z = jax.random.normal(kk[4], (B, C, H, W), jnp.float32)
    zpe = jax.random.normal(kk[5], (B, C, H, W), jnp.float32)
    q_mask = (jax.random.uniform(kk[6], (B, N, 1)) > 0.7).astype(jnp.float32)

    params = make_params(kk[7], C, hidden)

    fwd = jax.jit(partial(ainteraction_forward, num_heads=num_heads))
    q_out, j_out = fwd(params, j, jpe, q, qpe, z, zpe, q_mask)
    q_out = jax.block_until_ready(q_out)
    j_out = jax.block_until_ready(j_out)

    assert q_out.shape == (B, N, C) and j_out.shape == (B, N, K, C)
    assert bool(jnp.isfinite(q_out).all()) and bool(jnp.isfinite(j_out).all())
    print("KERNEL_OK")
</pallas_src>

<mosaic_0001>
module attributes {stable_mosaic.version = 11 : i64} {
  func.func @_xi_kernel(%arg0: i32, %arg1: memref<1x4x32xf32, #tpu.memory_space<vmem>>, %arg2: memref<1x4x32xf32, #tpu.memory_space<vmem>>, %arg3: memref<1x4x1xf32, #tpu.memory_space<vmem>>, %arg4: memref<1x1x4xf32, #tpu.memory_space<vmem>>, %arg5: memref<32x32xf32, #tpu.memory_space<vmem>>, %arg6: memref<1x32xf32, #tpu.memory_space<vmem>>, %arg7: memref<32x32xf32, #tpu.memory_space<vmem>>, %arg8: memref<1x32xf32, #tpu.memory_space<vmem>>, %arg9: memref<32x32xf32, #tpu.memory_space<vmem>>, %arg10: memref<1x32xf32, #tpu.memory_space<vmem>>, %arg11: memref<32x32xf32, #tpu.memory_space<vmem>>, %arg12: memref<1x32xf32, #tpu.memory_space<vmem>>, %arg13: memref<1x32xf32, #tpu.memory_space<vmem>>, %arg14: memref<1x32xf32, #tpu.memory_space<vmem>>, %arg15: memref<32x64xf32, #tpu.memory_space<vmem>>, %arg16: memref<1x64xf32, #tpu.memory_space<vmem>>, %arg17: memref<64x32xf32, #tpu.memory_space<vmem>>, %arg18: memref<1x32xf32, #tpu.memory_space<vmem>>, %arg19: memref<1x32xf32, #tpu.memory_space<vmem>>, %arg20: memref<1x32xf32, #tpu.memory_space<vmem>>, %arg21: memref<1x4x32xf32, #tpu.memory_space<vmem>>) attributes {dimension_semantics = [#tpu.dimension_semantics<parallel>], iteration_bounds = array<i64: 2>, scalar_prefetch = 0 : i64, scratch_operands = 0 : i64, tpu.core_type = #tpu.core_type<tc>, window_params = [{transform_indices = @transform_0, window_bounds = array<i64: 1, 4, 32>}, {transform_indices = @transform_1, window_bounds = array<i64: 1, 4, 32>}, {transform_indices = @transform_2, window_bounds = array<i64: 1, 4, 1>}, {transform_indices = @transform_3, window_bounds = array<i64: 1, 1, 4>}, {pipeline_mode = #tpu.pipeline_mode<synchronous>, transform_indices = @transform_4, window_bounds = array<i64: 32, 32>}, {pipeline_mode = #tpu.pipeline_mode<synchronous>, transform_indices = @transform_5, window_bounds = array<i64: 1, 32>}, {pipeline_mode = #tpu.pipeline_mode<synchronous>, transform_indices = @transform_6, window_bounds = array<i64: 32, 32>}, {pipeline_mode = #tpu.pipeline_mode<synchronous>, transform_indices = @transform_7, window_bounds = array<i64: 1, 32>}, {pipeline_mode = #tpu.pipeline_mode<synchronous>, transform_indices = @transform_8, window_bounds = array<i64: 32, 32>}, {pipeline_mode = #tpu.pipeline_mode<synchronous>, transform_indices = @transform_9, window_bounds = array<i64: 1, 32>}, {pipeline_mode = #tpu.pipeline_mode<synchronous>, transform_indices = @transform_10, window_bounds = array<i64: 32, 32>}, {pipeline_mode = #tpu.pipeline_mode<synchronous>, transform_indices = @transform_11, window_bounds = array<i64: 1, 32>}, {pipeline_mode = #tpu.pipeline_mode<synchronous>, transform_indices = @transform_12, window_bounds = array<i64: 1, 32>}, {pipeline_mode = #tpu.pipeline_mode<synchronous>, transform_indices = @transform_13, window_bounds = array<i64: 1, 32>}, {pipeline_mode = #tpu.pipeline_mode<synchronous>, transform_indices = @transform_14, window_bounds = array<i64: 32, 64>}, {pipeline_mode = #tpu.pipeline_mode<synchronous>, transform_indices = @transform_15, window_bounds = array<i64: 1, 64>}, {pipeline_mode = #tpu.pipeline_mode<synchronous>, transform_indices = @transform_16, window_bounds = array<i64: 64, 32>}, {pipeline_mode = #tpu.pipeline_mode<synchronous>, transform_indices = @transform_17, window_bounds = array<i64: 1, 32>}, {pipeline_mode = #tpu.pipeline_mode<synchronous>, transform_indices = @transform_18, window_bounds = array<i64: 1, 32>}, {pipeline_mode = #tpu.pipeline_mode<synchronous>, transform_indices = @transform_19, window_bounds = array<i64: 1, 32>}, {transform_indices = @transform_20, window_bounds = array<i64: 1, 4, 32>}]} {
    %c0 = arith.constant 0 : index
    %c0_0 = arith.constant 0 : index
    %c0_1 = arith.constant 0 : index
    %0 = vector.load %arg1[%c0, %c0_0, %c0_1] : memref<1x4x32xf32, #tpu.memory_space<vmem>>, vector<1x4x32xf32>
    %1 = vector.shape_cast %0 : vector<1x4x32xf32> to vector<4x32xf32>
    %c0_2 = arith.constant 0 : index
    %c0_3 = arith.constant 0 : index
    %c0_4 = arith.constant 0 : index
    %2 = vector.load %arg2[%c0_2, %c0_3, %c0_4] : memref<1x4x32xf32, #tpu.memory_space<vmem>>, vector<1x4x32xf32>
    %3 = vector.shape_cast %2 : vector<1x4x32xf32> to vector<4x32xf32>
    %c0_5 = arith.constant 0 : index
    %c0_6 = arith.constant 0 : index
    %c0_7 = arith.constant 0 : index
    %4 = vector.load %arg3[%c0_5, %c0_6, %c0_7] : memref<1x4x1xf32, #tpu.memory_space<vmem>>, vector<1x4x1xf32>
    %5 = vector.shape_cast %4 : vector<1x4x1xf32> to vector<4x1xf32>
    %cst = arith.constant 5.000000e-01 : f32
    %6 = vector.broadcast %cst : f32 to vector<4x1xf32>
    %7 = arith.cmpf ogt, %5, %6 : vector<4x1xf32>
    %c0_8 = arith.constant 0 : index
    %c0_9 = arith.constant 0 : index
    %c0_10 = arith.constant 0 : index
    %8 = vector.load %arg4[%c0_8, %c0_9, %c0_10] : memref<1x1x4xf32, #tpu.memory_space<vmem>>, vector<1x1x4xf32>
    %9 = vector.shape_cast %8 : vector<1x1x4xf32> to vector<1x4xf32>
    %cst_11 = arith.constant 5.000000e-01 : f32
    %10 = vector.broadcast %cst_11 : f32 to vector<1x4xf32>
    %11 = arith.cmpf ogt, %9, %10 : vector<1x4xf32>
    %12 = vector.broadcast %7 : vector<4x1xi1> to vector<4x4xi1>
    %13 = vector.broadcast %11 : vector<1x4xi1> to vector<4x4xi1>
    %14 = arith.andi %12, %13 : vector<4x4xi1>
    %15 = arith.addf %1, %3 : vector<4x32xf32>
    %c0_12 = arith.constant 0 : index
    %c0_13 = arith.constant 0 : index
    %16 = vector.load %arg5[%c0_12, %c0_13] : memref<32x32xf32, #tpu.memory_space<vmem>>, vector<32x32xf32>
    %c0_14 = arith.constant 0 : index
    %c0_15 = arith.constant 0 : index
    %17 = vector.load %arg6[%c0_14, %c0_15] : memref<1x32xf32, #tpu.memory_space<vmem>>, vector<1x32xf32>
    %c0_16 = arith.constant 0 : index
    %c0_17 = arith.constant 0 : index
    %18 = vector.load %arg7[%c0_16, %c0_17] : memref<32x32xf32, #tpu.memory_space<vmem>>, vector<32x32xf32>
    %c0_18 = arith.constant 0 : index
    %c0_19 = arith.constant 0 : index
    %19 = vector.load %arg8[%c0_18, %c0_19] : memref<1x32xf32, #tpu.memory_space<vmem>>, vector<1x32xf32>
    %c0_20 = arith.constant 0 : index
    %c0_21 = arith.constant 0 : index
    %20 = vector.load %arg9[%c0_20, %c0_21] : memref<32x32xf32, #tpu.memory_space<vmem>>, vector<32x32xf32>
    %c0_22 = arith.constant 0 : index
    %c0_23 = arith.constant 0 : index
    %21 = vector.load %arg10[%c0_22, %c0_23] : memref<1x32xf32, #tpu.memory_space<vmem>>, vector<1x32xf32>
    %c0_24 = arith.constant 0 : index
    %c0_25 = arith.constant 0 : index
    %22 = vector.load %arg11[%c0_24, %c0_25] : memref<32x32xf32, #tpu.memory_space<vmem>>, vector<32x32xf32>
    %c0_26 = arith.constant 0 : index
    %c0_27 = arith.constant 0 : index
    %23 = vector.load %arg12[%c0_26, %c0_27] : memref<1x32xf32, #tpu.memory_space<vmem>>, vector<1x32xf32>
    %cst_28 = arith.constant dense<0.000000e+00> : vector<4x32xf32>
    %24 = tpu.matmul %15, %16, %cst_28 {dimension_numbers = #tpu.dot_dimension_numbers<[1], [0], [0], [1], [0, 0, 1, 1], [], []>} : vector<4x32xf32>, vector<32x32xf32>, vector<4x32xf32> -> vector<4x32xf32>
    %25 = vector.broadcast %17 : vector<1x32xf32> to vector<4x32xf32>
    %26 = arith.addf %24, %25 : vector<4x32xf32>
    %cst_29 = arith.constant dense<0.000000e+00> : vector<4x32xf32>
    %27 = tpu.matmul %15, %18, %cst_29 {dimension_numbers = #tpu.dot_dimension_numbers<[1], [0], [0], [1], [0, 0, 1, 1], [], []>} : vector<4x32xf32>, vector<32x32xf32>, vector<4x32xf32> -> vector<4x32xf32>
    %28 = vector.broadcast %19 : vector<1x32xf32> to vector<4x32xf32>
    %29 = arith.addf %27, %28 : vector<4x32xf32>
    %cst_30 = arith.constant dense<0.000000e+00> : vector<4x32xf32>
    %30 = tpu.matmul %1, %20, %cst_30 {dimension_numbers = #tpu.dot_dimension_numbers<[1], [0], [0], [1], [0, 0, 1, 1], [], []>} : vector<4x32xf32>, vector<32x32xf32>, vector<4x32xf32> -> vector<4x32xf32>
    %31 = vector.broadcast %21 : vector<1x32xf32> to vector<4x32xf32>
    %32 = arith.addf %30, %31 : vector<4x32xf32>
    %33 = vector.extract_strided_slice %26 {offsets = [0, 0], sizes = [4, 8], strides = [1, 1]} : vector<4x32xf32> to vector<4x8xf32>
    %34 = vector.extract_strided_slice %29 {offsets = [0, 0], sizes = [4, 8], strides = [1, 1]} : vector<4x32xf32> to vector<4x8xf32>
    %cst_31 = arith.constant dense<0.000000e+00> : vector<4x4xf32>
    %35 = tpu.matmul %33, %34, %cst_31 {dimension_numbers = #tpu.dot_dimension_numbers<[1], [1], [0], [0], [0, 0, 1, 0], [], []>} : vector<4x8xf32>, vector<4x8xf32>, vector<4x4xf32> -> vector<4x4xf32>
    %cst_32 = arith.constant 0.353553385 : f32
    %36 = vector.broadcast %cst_32 : f32 to vector<4x4xf32>
    %37 = arith.mulf %35, %36 : vector<4x4xf32>
    %cst_33 = arith.constant -1.000000e+09 : f32
    %38 = vector.broadcast %cst_33 : f32 to vector<4x4xf32>
    %39 = arith.select %14, %38, %37 : vector<4x4xi1>, vector<4x4xf32>
    %cst_34 = arith.constant dense<0xFF800000> : vector<4xf32>
    %40 = vector.multi_reduction <maximumf>, %39, %cst_34 [1] : vector<4x4xf32> to vector<4xf32>
    %cst_35 = arith.constant 0xFF800000 : f32
    %41 = vector.broadcast %cst_35 : f32 to vector<4xf32>
    %42 = arith.maximumf %41, %40 : vector<4xf32>
    %43 = vector.shape_cast %42 : vector<4xf32> to vector<4x1xf32>
    %44 = vector.broadcast %43 : vector<4x1xf32> to vector<4x4xf32>
    %45 = arith.subf %39, %44 : vector<4x4xf32>
    %46 = math.exp %45 : vector<4x4xf32>
    %cst_36 = arith.constant dense<0.000000e+00> : vector<4xf32>
    %47 = vector.multi_reduction <add>, %46, %cst_36 [1] : vector<4x4xf32> to vector<4xf32>
    %48 = vector.shape_cast %47 : vector<4xf32> to vector<4x1xf32>
    %49 = vector.broadcast %48 : vector<4x1xf32> to vector<4x4xf32>
    %50 = arith.divf %46, %49 : vector<4x4xf32>
    %51 = vector.extract_strided_slice %32 {offsets = [0, 0], sizes = [4, 8], strides = [1, 1]} : vector<4x32xf32> to vector<4x8xf32>
    %cst_37 = arith.constant dense<0.000000e+00> : vector<4x8xf32>
    %52 = tpu.matmul %50, %51, %cst_37 {dimension_numbers = #tpu.dot_dimension_numbers<[1], [0], [0], [1], [0, 0, 1, 1], [], []>} : vector<4x4xf32>, vector<4x8xf32>, vector<4x8xf32> -> vector<4x8xf32>
    %53 = vector.extract_strided_slice %26 {offsets = [0, 8], sizes = [4, 8], strides = [1, 1]} : vector<4x32xf32> to vector<4x8xf32>
    %54 = vector.extract_strided_slice %29 {offsets = [0, 8], sizes = [4, 8], strides = [1, 1]} : vector<4x32xf32> to vector<4x8xf32>
    %cst_38 = arith.constant dense<0.000000e+00> : vector<4x4xf32>
    %55 = tpu.matmul %53, %54, %cst_38 {dimension_numbers = #tpu.dot_dimension_numbers<[1], [1], [0], [0], [0, 0, 1, 0], [], []>} : vector<4x8xf32>, vector<4x8xf32>, vector<4x4xf32> -> vector<4x4xf32>
    %cst_39 = arith.constant 0.353553385 : f32
    %56 = vector.broadcast %cst_39 : f32 to vector<4x4xf32>
    %57 = arith.mulf %55, %56 : vector<4x4xf32>
    %cst_40 = arith.constant -1.000000e+09 : f32
    %58 = vector.broadcast %cst_40 : f32 to vector<4x4xf32>
    %59 = arith.select %14, %58, %57 : vector<4x4xi1>, vector<4x4xf32>
    %cst_41 = arith.constant dense<0xFF800000> : vector<4xf32>
    %60 = vector.multi_reduction <maximumf>, %59, %cst_41 [1] : vector<4x4xf32> to vector<4xf32>
    %cst_42 = arith.constant 0xFF800000 : f32
    %61 = vector.broadcast %cst_42 : f32 to vector<4xf32>
    %62 = arith.maximumf %61, %60 : vector<4xf32>
    %63 = vector.shape_cast %62 : vector<4xf32> to vector<4x1xf32>
    %64 = vector.broadcast %63 : vector<4x1xf32> to vector<4x4xf32>
    %65 = arith.subf %59, %64 : vector<4x4xf32>
    %66 = math.exp %65 : vector<4x4xf32>
    %cst_43 = arith.constant dense<0.000000e+00> : vector<4xf32>
    %67 = vector.multi_reduction <add>, %66, %cst_43 [1] : vector<4x4xf32> to vector<4xf32>
    %68 = vector.shape_cast %67 : vector<4xf32> to vector<4x1xf32>
    %69 = vector.broadcast %68 : vector<4x1xf32> to vector<4x4xf32>
    %70 = arith.divf %66, %69 : vector<4x4xf32>
    %71 = vector.extract_strided_slice %32 {offsets = [0, 8], sizes = [4, 8], strides = [1, 1]} : vector<4x32xf32> to vector<4x8xf32>
    %cst_44 = arith.constant dense<0.000000e+00> : vector<4x8xf32>
    %72 = tpu.matmul %70, %71, %cst_44 {dimension_numbers = #tpu.dot_dimension_numbers<[1], [0], [0], [1], [0, 0, 1, 1], [], []>} : vector<4x4xf32>, vector<4x8xf32>, vector<4x8xf32> -> vector<4x8xf32>
    %73 = vector.extract_strided_slice %26 {offsets = [0, 16], sizes = [4, 8], strides = [1, 1]} : vector<4x32xf32> to vector<4x8xf32>
    %74 = vector.extract_strided_slice %29 {offsets = [0, 16], sizes = [4, 8], strides = [1, 1]} : vector<4x32xf32> to vector<4x8xf32>
    %cst_45 = arith.constant dense<0.000000e+00> : vector<4x4xf32>
    %75 = tpu.matmul %73, %74, %cst_45 {dimension_numbers = #tpu.dot_dimension_numbers<[1], [1], [0], [0], [0, 0, 1, 0], [], []>} : vector<4x8xf32>, vector<4x8xf32>, vector<4x4xf32> -> vector<4x4xf32>
    %cst_46 = arith.constant 0.353553385 : f32
    %76 = vector.broadcast %cst_46 : f32 to vector<4x4xf32>
    %77 = arith.mulf %75, %76 : vector<4x4xf32>
    %cst_47 = arith.constant -1.000000e+09 : f32
    %78 = vector.broadcast %cst_47 : f32 to vector<4x4xf32>
    %79 = arith.select %14, %78, %77 : vector<4x4xi1>, vector<4x4xf32>
    %cst_48 = arith.constant dense<0xFF800000> : vector<4xf32>
    %80 = vector.multi_reduction <maximumf>, %79, %cst_48 [1] : vector<4x4xf32> to vector<4xf32>
    %cst_49 = arith.constant 0xFF800000 : f32
    %81 = vector.broadcast %cst_49 : f32 to vector<4xf32>
    %82 = arith.maximumf %81, %80 : vector<4xf32>
    %83 = vector.shape_cast %82 : vector<4xf32> to vector<4x1xf32>
    %84 = vector.broadcast %83 : vector<4x1xf32> to vector<4x4xf32>
    %85 = arith.subf %79, %84 : vector<4x4xf32>
    %86 = math.exp %85 : vector<4x4xf32>
    %cst_50 = arith.constant dense<0.000000e+00> : vector<4xf32>
    %87 = vector.multi_reduction <add>, %86, %cst_50 [1] : vector<4x4xf32> to vector<4xf32>
    %88 = vector.shape_cast %87 : vector<4xf32> to vector<4x1xf32>
    %89 = vector.broadcast %88 : vector<4x1xf32> to vector<4x4xf32>
    %90 = arith.divf %86, %89 : vector<4x4xf32>
    %91 = vector.extract_strided_slice %32 {offsets = [0, 16], sizes = [4, 8], strides = [1, 1]} : vector<4x32xf32> to vector<4x8xf32>
    %cst_51 = arith.constant dense<0.000000e+00> : vector<4x8xf32>
    %92 = tpu.matmul %90, %91, %cst_51 {dimension_numbers = #tpu.dot_dimension_numbers<[1], [0], [0], [1], [0, 0, 1, 1], [], []>} : vector<4x4xf32>, vector<4x8xf32>, vector<4x8xf32> -> vector<4x8xf32>
    %93 = vector.extract_strided_slice %26 {offsets = [0, 24], sizes = [4, 8], strides = [1, 1]} : vector<4x32xf32> to vector<4x8xf32>
    %94 = vector.extract_strided_slice %29 {offsets = [0, 24], sizes = [4, 8], strides = [1, 1]} : vector<4x32xf32> to vector<4x8xf32>
    %cst_52 = arith.constant dense<0.000000e+00> : vector<4x4xf32>
    %95 = tpu.matmul %93, %94, %cst_52 {dimension_numbers = #tpu.dot_dimension_numbers<[1], [1], [0], [0], [0, 0, 1, 0], [], []>} : vector<4x8xf32>, vector<4x8xf32>, vector<4x4xf32> -> vector<4x4xf32>
    %cst_53 = arith.constant 0.353553385 : f32
    %96 = vector.broadcast %cst_53 : f32 to vector<4x4xf32>
    %97 = arith.mulf %95, %96 : vector<4x4xf32>
    %cst_54 = arith.constant -1.000000e+09 : f32
    %98 = vector.broadcast %cst_54 : f32 to vector<4x4xf32>
    %99 = arith.select %14, %98, %97 : vector<4x4xi1>, vector<4x4xf32>
    %cst_55 = arith.constant dense<0xFF800000> : vector<4xf32>
    %100 = vector.multi_reduction <maximumf>, %99, %cst_55 [1] : vector<4x4xf32> to vector<4xf32>
    %cst_56 = arith.constant 0xFF800000 : f32
    %101 = vector.broadcast %cst_56 : f32 to vector<4xf32>
    %102 = arith.maximumf %101, %100 : vector<4xf32>
    %103 = vector.shape_cast %102 : vector<4xf32> to vector<4x1xf32>
    %104 = vector.broadcast %103 : vector<4x1xf32> to vector<4x4xf32>
    %105 = arith.subf %99, %104 : vector<4x4xf32>
    %106 = math.exp %105 : vector<4x4xf32>
    %cst_57 = arith.constant dense<0.000000e+00> : vector<4xf32>
    %107 = vector.multi_reduction <add>, %106, %cst_57 [1] : vector<4x4xf32> to vector<4xf32>
    %108 = vector.shape_cast %107 : vector<4xf32> to vector<4x1xf32>
    %109 = vector.broadcast %108 : vector<4x1xf32> to vector<4x4xf32>
    %110 = arith.divf %106, %109 : vector<4x4xf32>
    %111 = vector.extract_strided_slice %32 {offsets = [0, 24], sizes = [4, 8], strides = [1, 1]} : vector<4x32xf32> to vector<4x8xf32>
    %cst_58 = arith.constant dense<0.000000e+00> : vector<4x8xf32>
    %112 = tpu.matmul %110, %111, %cst_58 {dimension_numbers = #tpu.dot_dimension_numbers<[1], [0], [0], [1], [0, 0, 1, 1], [], []>} : vector<4x4xf32>, vector<4x8xf32>, vector<4x8xf32> -> vector<4x8xf32>
    %113 = tpu.concatenate %52, %72, %92, %112 in 1 : vector<4x8xf32>, vector<4x8xf32>, vector<4x8xf32>, vector<4x8xf32> -> vector<4x32xf32>
    %cst_59 = arith.constant dense<0.000000e+00> : vector<4x32xf32>
    %114 = tpu.matmul %113, %22, %cst_59 {dimension_numbers = #tpu.dot_dimension_numbers<[1], [0], [0], [1], [0, 0, 1, 1], [], []>} : vector<4x32xf32>, vector<32x32xf32>, vector<4x32xf32> -> vector<4x32xf32>
    %115 = vector.broadcast %23 : vector<1x32xf32> to vector<4x32xf32>
    %116 = arith.addf %114, %115 : vector<4x32xf32>
    %c0_60 = arith.constant 0 : index
    %c0_61 = arith.constant 0 : index
    %117 = vector.load %arg13[%c0_60, %c0_61] : memref<1x32xf32, #tpu.memory_space<vmem>>, vector<1x32xf32>
    %c0_62 = arith.constant 0 : index
    %c0_63 = arith.constant 0 : index
    %118 = vector.load %arg14[%c0_62, %c0_63] : memref<1x32xf32, #tpu.memory_space<vmem>>, vector<1x32xf32>
    %119 = arith.addf %1, %116 : vector<4x32xf32>
    %cst_64 = arith.constant dense<0.000000e+00> : vector<4xf32>
    %120 = vector.multi_reduction <add>, %119, %cst_64 [1] : vector<4x32xf32> to vector<4xf32>
    %121 = vector.shape_cast %120 : vector<4xf32> to vector<4x1xf32>
    %cst_65 = arith.constant 3.200000e+01 : f32
    %122 = vector.broadcast %cst_65 : f32 to vector<4x1xf32>
    %123 = arith.divf %121, %122 : vector<4x1xf32>
    %124 = vector.broadcast %123 : vector<4x1xf32> to vector<4x32xf32>
    %125 = arith.subf %119, %124 : vector<4x32xf32>
    %126 = arith.mulf %125, %125 : vector<4x32xf32>
    %cst_66 = arith.constant dense<0.000000e+00> : vector<4xf32>
    %127 = vector.multi_reduction <add>, %126, %cst_66 [1] : vector<4x32xf32> to vector<4xf32>
    %128 = vector.shape_cast %127 : vector<4xf32> to vector<4x1xf32>
    %cst_67 = arith.constant 3.200000e+01 : f32
    %129 = vector.broadcast %cst_67 : f32 to vector<4x1xf32>
    %130 = arith.divf %128, %129 : vector<4x1xf32>
    %131 = vector.broadcast %123 : vector<4x1xf32> to vector<4x32xf32>
    %132 = arith.subf %119, %131 : vector<4x32xf32>
    %cst_68 = arith.constant 9.99999974E-6 : f32
    %133 = vector.broadcast %cst_68 : f32 to vector<4x1xf32>
    %134 = arith.addf %130, %133 : vector<4x1xf32>
    %135 = math.rsqrt %134 : vector<4x1xf32>
    %136 = vector.broadcast %135 : vector<4x1xf32> to vector<4x32xf32>
    %137 = arith.mulf %132, %136 : vector<4x32xf32>
    %138 = vector.broadcast %117 : vector<1x32xf32> to vector<4x32xf32>
    %139 = arith.mulf %137, %138 : vector<4x32xf32>
    %140 = vector.broadcast %118 : vector<1x32xf32> to vector<4x32xf32>
    %141 = arith.addf %139, %140 : vector<4x32xf32>
    %c0_69 = arith.constant 0 : index
    %c0_70 = arith.constant 0 : index
    %142 = vector.load %arg15[%c0_69, %c0_70] : memref<32x64xf32, #tpu.memory_space<vmem>>, vector<32x64xf32>
    %c0_71 = arith.constant 0 : index
    %c0_72 = arith.constant 0 : index
    %143 = vector.load %arg16[%c0_71, %c0_72] : memref<1x64xf32, #tpu.memory_space<vmem>>, vector<1x64xf32>
    %c0_73 = arith.constant 0 : index
    %c0_74 = arith.constant 0 : index
    %144 = vector.load %arg17[%c0_73, %c0_74] : memref<64x32xf32, #tpu.memory_space<vmem>>, vector<64x32xf32>
    %c0_75 = arith.constant 0 : index
    %c0_76 = arith.constant 0 : index
    %145 = vector.load %arg18[%c0_75, %c0_76] : memref<1x32xf32, #tpu.memory_space<vmem>>, vector<1x32xf32>
    %cst_77 = arith.constant dense<0.000000e+00> : vector<4x64xf32>
    %146 = tpu.matmul %141, %142, %cst_77 {dimension_numbers = #tpu.dot_dimension_numbers<[1], [0], [0], [1], [0, 0, 1, 1], [], []>} : vector<4x32xf32>, vector<32x64xf32>, vector<4x64xf32> -> vector<4x64xf32>
    %147 = vector.broadcast %143 : vector<1x64xf32> to vector<4x64xf32>
    %148 = arith.addf %146, %147 : vector<4x64xf32>
    %149 = arith.mulf %148, %148 : vector<4x64xf32>
    %150 = arith.mulf %148, %149 : vector<4x64xf32>
    %cst_78 = arith.constant 4.471500e-02 : f32
    %151 = vector.broadcast %cst_78 : f32 to vector<4x64xf32>
    %152 = arith.mulf %151, %150 : vector<4x64xf32>
    %153 = arith.addf %148, %152 : vector<4x64xf32>
    %cst_79 = arith.constant 0.797884583 : f32
    %154 = vector.broadcast %cst_79 : f32 to vector<4x64xf32>
    %155 = arith.mulf %154, %153 : vector<4x64xf32>
    %156 = math.tanh %155 : vector<4x64xf32>
    %cst_80 = arith.constant 1.000000e+00 : f32
    %157 = vector.broadcast %cst_80 : f32 to vector<4x64xf32>
    %158 = arith.addf %157, %156 : vector<4x64xf32>
    %cst_81 = arith.constant 5.000000e-01 : f32
    %159 = vector.broadcast %cst_81 : f32 to vector<4x64xf32>
    %160 = arith.mulf %159, %158 : vector<4x64xf32>
    %161 = arith.mulf %148, %160 : vector<4x64xf32>
    %cst_82 = arith.constant dense<0.000000e+00> : vector<4x32xf32>
    %162 = tpu.matmul %161, %144, %cst_82 {dimension_numbers = #tpu.dot_dimension_numbers<[1], [0], [0], [1], [0, 0, 1, 1], [], []>} : vector<4x64xf32>, vector<64x32xf32>, vector<4x32xf32> -> vector<4x32xf32>
    %163 = vector.broadcast %145 : vector<1x32xf32> to vector<4x32xf32>
    %164 = arith.addf %162, %163 : vector<4x32xf32>
    %c0_83 = arith.constant 0 : index
    %c0_84 = arith.constant 0 : index
    %165 = vector.load %arg19[%c0_83, %c0_84] : memref<1x32xf32, #tpu.memory_space<vmem>>, vector<1x32xf32>
    %c0_85 = arith.constant 0 : index
    %c0_86 = arith.constant 0 : index
    %166 = vector.load %arg20[%c0_85, %c0_86] : memref<1x32xf32, #tpu.memory_space<vmem>>, vector<1x32xf32>
    %167 = arith.addf %141, %164 : vector<4x32xf32>
    %cst_87 = arith.constant dense<0.000000e+00> : vector<4xf32>
    %168 = vector.multi_reduction <add>, %167, %cst_87 [1] : vector<4x32xf32> to vector<4xf32>
    %169 = vector.shape_cast %168 : vector<4xf32> to vector<4x1xf32>
    %cst_88 = arith.constant 3.200000e+01 : f32
    %170 = vector.broadcast %cst_88 : f32 to vector<4x1xf32>
    %171 = arith.divf %169, %170 : vector<4x1xf32>
    %172 = vector.broadcast %171 : vector<4x1xf32> to vector<4x32xf32>
    %173 = arith.subf %167, %172 : vector<4x32xf32>
    %174 = arith.mulf %173, %173 : vector<4x32xf32>
    %cst_89 = arith.constant dense<0.000000e+00> : vector<4xf32>
    %175 = vector.multi_reduction <add>, %174, %cst_89 [1] : vector<4x32xf32> to vector<4xf32>
    %176 = vector.shape_cast %175 : vector<4xf32> to vector<4x1xf32>
    %cst_90 = arith.constant 3.200000e+01 : f32
    %177 = vector.broadcast %cst_90 : f32 to vector<4x1xf32>
    %178 = arith.divf %176, %177 : vector<4x1xf32>
    %179 = vector.broadcast %171 : vector<4x1xf32> to vector<4x32xf32>
    %180 = arith.subf %167, %179 : vector<4x32xf32>
    %cst_91 = arith.constant 9.99999974E-6 : f32
    %181 = vector.broadcast %cst_91 : f32 to vector<4x1xf32>
    %182 = arith.addf %178, %181 : vector<4x1xf32>
    %183 = math.rsqrt %182 : vector<4x1xf32>
    %184 = vector.broadcast %183 : vector<4x1xf32> to vector<4x32xf32>
    %185 = arith.mulf %180, %184 : vector<4x32xf32>
    %186 = vector.broadcast %165 : vector<1x32xf32> to vector<4x32xf32>
    %187 = arith.mulf %185, %186 : vector<4x32xf32>
    %188 = vector.broadcast %166 : vector<1x32xf32> to vector<4x32xf32>
    %189 = arith.addf %187, %188 : vector<4x32xf32>
    %190 = arith.addf %1, %189 : vector<4x32xf32>
    %c0_92 = arith.constant 0 : index
    %c0_93 = arith.constant 0 : index
    %c0_94 = arith.constant 0 : index
    %191 = vector.load %arg21[%c0_92, %c0_93, %c0_94] : memref<1x4x32xf32, #tpu.memory_space<vmem>>, vector<1x4x32xf32>
    %192 = vector.shape_cast %191 : vector<1x4x32xf32> to vector<4x32xf32>
    %193 = vector.shape_cast %190 : vector<4x32xf32> to vector<1x4x32xf32>
    tpu.vector_store %arg21[%c0_92, %c0_93, %c0_94], %193 {strides = array<i32>} : memref<1x4x32xf32, #tpu.memory_space<vmem>>, vector<1x4x32xf32>,
    return
  }
  func.func @transform_0(%arg0: i32) -> (i32, i32, i32) {
    %c0_i32 = arith.constant 0 : i32
    %c0_i32_0 = arith.constant 0 : i32
    %c0_i32_1 = arith.constant 0 : i32
    return %arg0, %c0_i32, %c0_i32_0 : i32, i32, i32
  }
  func.func @transform_1(%arg0: i32) -> (i32, i32, i32) {
    %c0_i32 = arith.constant 0 : i32
    %c0_i32_0 = arith.constant 0 : i32
    %c0_i32_1 = arith.constant 0 : i32
    return %arg0, %c0_i32, %c0_i32_0 : i32, i32, i32
  }
  func.func @transform_2(%arg0: i32) -> (i32, i32, i32) {
    %c0_i32 = arith.constant 0 : i32
    %c0_i32_0 = arith.constant 0 : i32
    %c0_i32_1 = arith.constant 0 : i32
    return %arg0, %c0_i32, %c0_i32_0 : i32, i32, i32
  }
  func.func @transform_3(%arg0: i32) -> (i32, i32, i32) {
    %c0_i32 = arith.constant 0 : i32
    %c0_i32_0 = arith.constant 0 : i32
    %c0_i32_1 = arith.constant 0 : i32
    return %arg0, %c0_i32, %c0_i32_0 : i32, i32, i32
  }
  func.func @transform_4(%arg0: i32) -> (i32, i32) {
    %c0_i32 = arith.constant 0 : i32
    %c0_i32_0 = arith.constant 0 : i32
    %c0_i32_1 = arith.constant 0 : i32
    return %c0_i32, %c0_i32_0 : i32, i32
  }
  func.func @transform_5(%arg0: i32) -> (i32, i32) {
    %c0_i32 = arith.constant 0 : i32
    %c0_i32_0 = arith.constant 0 : i32
    %c0_i32_1 = arith.constant 0 : i32
    return %c0_i32, %c0_i32_0 : i32, i32
  }
  func.func @transform_6(%arg0: i32) -> (i32, i32) {
    %c0_i32 = arith.constant 0 : i32
    %c0_i32_0 = arith.constant 0 : i32
    %c0_i32_1 = arith.constant 0 : i32
    return %c0_i32, %c0_i32_0 : i32, i32
  }
  func.func @transform_7(%arg0: i32) -> (i32, i32) {
    %c0_i32 = arith.constant 0 : i32
    %c0_i32_0 = arith.constant 0 : i32
    %c0_i32_1 = arith.constant 0 : i32
    return %c0_i32, %c0_i32_0 : i32, i32
  }
  func.func @transform_8(%arg0: i32) -> (i32, i32) {
    %c0_i32 = arith.constant 0 : i32
    %c0_i32_0 = arith.constant 0 : i32
    %c0_i32_1 = arith.constant 0 : i32
    return %c0_i32, %c0_i32_0 : i32, i32
  }
  func.func @transform_9(%arg0: i32) -> (i32, i32) {
    %c0_i32 = arith.constant 0 : i32
    %c0_i32_0 = arith.constant 0 : i32
    %c0_i32_1 = arith.constant 0 : i32
    return %c0_i32, %c0_i32_0 : i32, i32
  }
  func.func @transform_10(%arg0: i32) -> (i32, i32) {
    %c0_i32 = arith.constant 0 : i32
    %c0_i32_0 = arith.constant 0 : i32
    %c0_i32_1 = arith.constant 0 : i32
    return %c0_i32, %c0_i32_0 : i32, i32
  }
  func.func @transform_11(%arg0: i32) -> (i32, i32) {
    %c0_i32 = arith.constant 0 : i32
    %c0_i32_0 = arith.constant 0 : i32
    %c0_i32_1 = arith.constant 0 : i32
    return %c0_i32, %c0_i32_0 : i32, i32
  }
  func.func @transform_12(%arg0: i32) -> (i32, i32) {
    %c0_i32 = arith.constant 0 : i32
    %c0_i32_0 = arith.constant 0 : i32
    %c0_i32_1 = arith.constant 0 : i32
    return %c0_i32, %c0_i32_0 : i32, i32
  }
  func.func @transform_13(%arg0: i32) -> (i32, i32) {
    %c0_i32 = arith.constant 0 : i32
    %c0_i32_0 = arith.constant 0 : i32
    %c0_i32_1 = arith.constant 0 : i32
    return %c0_i32, %c0_i32_0 : i32, i32
  }
  func.func @transform_14(%arg0: i32) -> (i32, i32) {
    %c0_i32 = arith.constant 0 : i32
    %c0_i32_0 = arith.constant 0 : i32
    %c0_i32_1 = arith.constant 0 : i32
    return %c0_i32, %c0_i32_0 : i32, i32
  }
  func.func @transform_15(%arg0: i32) -> (i32, i32) {
    %c0_i32 = arith.constant 0 : i32
    %c0_i32_0 = arith.constant 0 : i32
    %c0_i32_1 = arith.constant 0 : i32
    return %c0_i32, %c0_i32_0 : i32, i32
  }
  func.func @transform_16(%arg0: i32) -> (i32, i32) {
    %c0_i32 = arith.constant 0 : i32
    %c0_i32_0 = arith.constant 0 : i32
    %c0_i32_1 = arith.constant 0 : i32
    return %c0_i32, %c0_i32_0 : i32, i32
  }
  func.func @transform_17(%arg0: i32) -> (i32, i32) {
    %c0_i32 = arith.constant 0 : i32
    %c0_i32_0 = arith.constant 0 : i32
    %c0_i32_1 = arith.constant 0 : i32
    return %c0_i32, %c0_i32_0 : i32, i32
  }
  func.func @transform_18(%arg0: i32) -> (i32, i32) {
    %c0_i32 = arith.constant 0 : i32
    %c0_i32_0 = arith.constant 0 : i32
    %c0_i32_1 = arith.constant 0 : i32
    return %c0_i32, %c0_i32_0 : i32, i32
  }
  func.func @transform_19(%arg0: i32) -> (i32, i32) {
    %c0_i32 = arith.constant 0 : i32
    %c0_i32_0 = arith.constant 0 : i32
    %c0_i32_1 = arith.constant 0 : i32
    return %c0_i32, %c0_i32_0 : i32, i32
  }
  func.func @transform_20(%arg0: i32) -> (i32, i32, i32) {
    %c0_i32 = arith.constant 0 : i32
    %c0_i32_0 = arith.constant 0 : i32
    %c0_i32_1 = arith.constant 0 : i32
    return %arg0, %c0_i32, %c0_i32_0 : i32, i32, i32
  }
}

module attributes {stable_mosaic.version = 11 : i64} {
  func.func @_casaffn_kernel(%arg0: i32, %arg1: i32, %arg2: memref<2x4xi32, #tpu.memory_space<smem>>, %arg3: memref<1x1x6x32xf32, #tpu.memory_space<vmem>>, %arg4: memref<1x1x6x32xf32, #tpu.memory_space<vmem>>, %arg5: memref<1x16x32xf32, #tpu.memory_space<vmem>>, %arg6: memref<1x16x32xf32, #tpu.memory_space<vmem>>, %arg7: memref<32x32xf32, #tpu.memory_space<vmem>>, %arg8: memref<1x32xf32, #tpu.memory_space<vmem>>, %arg9: memref<32x32xf32, #tpu.memory_space<vmem>>, %arg10: memref<1x32xf32, #tpu.memory_space<vmem>>, %arg11: memref<32x32xf32, #tpu.memory_space<vmem>>, %arg12: memref<1x32xf32, #tpu.memory_space<vmem>>, %arg13: memref<32x32xf32, #tpu.memory_space<vmem>>, %arg14: memref<1x32xf32, #tpu.memory_space<vmem>>, %arg15: memref<32x32xf32, #tpu.memory_space<vmem>>, %arg16: memref<1x32xf32, #tpu.memory_space<vmem>>, %arg17: memref<1x32xf32, #tpu.memory_space<vmem>>, %arg18: memref<1x32xf32, #tpu.memory_space<vmem>>, %arg19: memref<32x32xf32, #tpu.memory_space<vmem>>, %arg20: memref<1x32xf32, #tpu.memory_space<vmem>>, %arg21: memref<32x32xf32, #tpu.memory_space<vmem>>, %arg22: memref<1x32xf32, #tpu.memory_space<vmem>>, %arg23: memref<32x32xf32, #tpu.memory_space<vmem>>, %arg24: memref<1x32xf32, #tpu.memory_space<vmem>>, %arg25: memref<32x32xf32, #tpu.memory_space<vmem>>, %arg26: memref<1x32xf32, #tpu.memory_space<vmem>>, %arg27: memref<1x32xf32, #tpu.memory_space<vmem>>, %arg28: memref<1x32xf32, #tpu.memory_space<vmem>>, %arg29: memref<32x64xf32, #tpu.memory_space<vmem>>, %arg30: memref<1x64xf32, #tpu.memory_space<vmem>>, %arg31: memref<64x32xf32, #tpu.memory_space<vmem>>, %arg32: memref<1x32xf32, #tpu.memory_space<vmem>>, %arg33: memref<1x32xf32, #tpu.memory_space<vmem>>, %arg34: memref<1x32xf32, #tpu.memory_space<vmem>>, %arg35: memref<1x1x6x32xf32, #tpu.memory_space<vmem>>) attributes {dimension_semantics = [#tpu.dimension_semantics<parallel>, #tpu.dimension_semantics<parallel>], iteration_bounds = array<i64: 2, 4>, scalar_prefetch = 1 : i64, scratch_operands = 0 : i64, tpu.core_type = #tpu.core_type<tc>, window_params = [{transform_indices = @transform_0, window_bounds = array<i64: 1, 1, 6, 32>}, {transform_indices = @transform_1, window_bounds = array<i64: 1, 1, 6, 32>}, {transform_indices = @transform_2, window_bounds = array<i64: 1, 16, 32>}, {transform_indices = @transform_3, window_bounds = array<i64: 1, 16, 32>}, {pipeline_mode = #tpu.pipeline_mode<synchronous>, transform_indices = @transform_4, window_bounds = array<i64: 32, 32>}, {pipeline_mode = #tpu.pipeline_mode<synchronous>, transform_indices = @transform_5, window_bounds = array<i64: 1, 32>}, {pipeline_mode = #tpu.pipeline_mode<synchronous>, transform_indices = @transform_6, window_bounds = array<i64: 32, 32>}, {pipeline_mode = #tpu.pipeline_mode<synchronous>, transform_indices = @transform_7, window_bounds = array<i64: 1, 32>}, {pipeline_mode = #tpu.pipeline_mode<synchronous>, transform_indices = @transform_8, window_bounds = array<i64: 32, 32>}, {pipeline_mode = #tpu.pipeline_mode<synchronous>, transform_indices = @transform_9, window_bounds = array<i64: 1, 32>}, {pipeline_mode = #tpu.pipeline_mode<synchronous>, transform_indices = @transform_10, window_bounds = array<i64: 32, 32>}, {pipeline_mode = #tpu.pipeline_mode<synchronous>, transform_indices = @transform_11, window_bounds = array<i64: 1, 32>}, {pipeline_mode = #tpu.pipeline_mode<synchronous>, transform_indices = @transform_12, window_bounds = array<i64: 32, 32>}, {pipeline_mode = #tpu.pipeline_mode<synchronous>, transform_indices = @transform_13, window_bounds = array<i64: 1, 32>}, {pipeline_mode = #tpu.pipeline_mode<synchronous>, transform_indices = @transform_14, window_bounds = array<i64: 1, 32>}, {pipeline_mode = #tpu.pipeline_mode<synchronous>, transform_indices = @transform_15, window_bounds = array<i64: 1, 32>}, {pipeline_mode = #tpu.pipeline_mode<synchronous>, transform_indices = @transform_16, window_bounds = array<i64: 32, 32>}, {pipeline_mode = #tpu.pipeline_mode<synchronous>, transform_indices = @transform_17, window_bounds = array<i64: 1, 32>}, {pipeline_mode = #tpu.pipeline_mode<synchronous>, transform_indices = @transform_18, window_bounds = array<i64: 32, 32>}, {pipeline_mode = #tpu.pipeline_mode<synchronous>, transform_indices = @transform_19, window_bounds = array<i64: 1, 32>}, {pipeline_mode = #tpu.pipeline_mode<synchronous>, transform_indices = @transform_20, window_bounds = array<i64: 32, 32>}, {pipeline_mode = #tpu.pipeline_mode<synchronous>, transform_indices = @transform_21, window_bounds = array<i64: 1, 32>}, {pipeline_mode = #tpu.pipeline_mode<synchronous>, transform_indices = @transform_22, window_bounds = array<i64: 32, 32>}, {pipeline_mode = #tpu.pipeline_mode<synchronous>, transform_indices = @transform_23, window_bounds = array<i64: 1, 32>}, {pipeline_mode = #tpu.pipeline_mode<synchronous>, transform_indices = @transform_24, window_bounds = array<i64: 1, 32>}, {pipeline_mode = #tpu.pipeline_mode<synchronous>, transform_indices = @transform_25, window_bounds = array<i64: 1, 32>}, {pipeline_mode = #tpu.pipeline_mode<synchronous>, transform_indices = @transform_26, window_bounds = array<i64: 32, 64>}, {pipeline_mode = #tpu.pipeline_mode<synchronous>, transform_indices = @transform_27, window_bounds = array<i64: 1, 64>}, {pipeline_mode = #tpu.pipeline_mode<synchronous>, transform_indices = @transform_28, window_bounds = array<i64: 64, 32>}, {pipeline_mode = #tpu.pipeline_mode<synchronous>, transform_indices = @transform_29, window_bounds = array<i64: 1, 32>}, {pipeline_mode = #tpu.pipeline_mode<synchronous>, transform_indices = @transform_30, window_bounds = array<i64: 1, 32>}, {pipeline_mode = #tpu.pipeline_mode<synchronous>, transform_indices = @transform_31, window_bounds = array<i64: 1, 32>}, {transform_indices = @transform_32, window_bounds = array<i64: 1, 1, 6, 32>}]} {
    %0 = arith.index_cast %arg0 : i32 to index
    %1 = arith.index_cast %arg1 : i32 to index
    %2 = memref.load %arg2[%0, %1] : memref<2x4xi32, #tpu.memory_space<smem>>
    %c0_i32 = arith.constant 0 : i32
    %3 = arith.cmpi sgt, %2, %c0_i32 : i32
    %c0 = arith.constant 0 : index
    %c0_0 = arith.constant 0 : index
    %c0_1 = arith.constant 0 : index
    %c0_2 = arith.constant 0 : index
    %4 = vector.load %arg3[%c0, %c0_0, %c0_1, %c0_2] : memref<1x1x6x32xf32, #tpu.memory_space<vmem>>, vector<1x1x6x32xf32>
    %5 = vector.shape_cast %4 : vector<1x1x6x32xf32> to vector<6x32xf32>
    %c0_3 = arith.constant 0 : index
    %c0_4 = arith.constant 0 : index
    %c0_5 = arith.constant 0 : index
    %c0_6 = arith.constant 0 : index
    %6 = vector.load %arg4[%c0_3, %c0_4, %c0_5, %c0_6] : memref<1x1x6x32xf32, #tpu.memory_space<vmem>>, vector<1x1x6x32xf32>
    %7 = vector.shape_cast %6 : vector<1x1x6x32xf32> to vector<6x32xf32>
    %c0_7 = arith.constant 0 : index
    %c0_8 = arith.constant 0 : index
    %c0_9 = arith.constant 0 : index
    %8 = vector.load %arg5[%c0_7, %c0_8, %c0_9] : memref<1x16x32xf32, #tpu.memory_space<vmem>>, vector<1x16x32xf32>
    %9 = vector.shape_cast %8 : vector<1x16x32xf32> to vector<16x32xf32>
    %c0_10 = arith.constant 0 : index
    %c0_11 = arith.constant 0 : index
    %c0_12 = arith.constant 0 : index
    %10 = vector.load %arg6[%c0_10, %c0_11, %c0_12] : memref<1x16x32xf32, #tpu.memory_space<vmem>>, vector<1x16x32xf32>
    %11 = vector.shape_cast %10 : vector<1x16x32xf32> to vector<16x32xf32>
    %12 = vector.extract_strided_slice %5 {offsets = [5, 0], sizes = [1, 32], strides = [1, 1]} : vector<6x32xf32> to vector<1x32xf32>
    %c0_13 = arith.constant 0 : index
    %c0_14 = arith.constant 0 : index
    %13 = vector.load %arg7[%c0_13, %c0_14] : memref<32x32xf32, #tpu.memory_space<vmem>>, vector<32x32xf32>
    %cst = arith.constant dense<0.000000e+00> : vector<1x32xf32>
    %14 = tpu.matmul %12, %13, %cst {dimension_numbers = #tpu.dot_dimension_numbers<[1], [0], [0], [1], [0, 0, 1, 1], [], []>} : vector<1x32xf32>, vector<32x32xf32>, vector<1x32xf32> -> vector<1x32xf32>
    %c0_15 = arith.constant 0 : index
    %c0_16 = arith.constant 0 : index
    %15 = vector.load %arg8[%c0_15, %c0_16] : memref<1x32xf32, #tpu.memory_space<vmem>>, vector<1x32xf32>
    %16 = arith.addf %14, %15 : vector<1x32xf32>
    %17 = vector.broadcast %16 : vector<1x32xf32> to vector<16x32xf32>
    %18 = arith.mulf %9, %17 : vector<16x32xf32>
    %cst_17 = arith.constant dense<0.000000e+00> : vector<16xf32>
    %19 = vector.multi_reduction <add>, %18, %cst_17 [1] : vector<16x32xf32> to vector<16xf32>
    %20 = vector.shape_cast %19 : vector<16xf32> to vector<16x1xf32>
    %21 = arith.negf %20 : vector<16x1xf32>
    %22 = math.exp %21 : vector<16x1xf32>
    %cst_18 = arith.constant 1.000000e+00 : f32
    %23 = vector.broadcast %cst_18 : f32 to vector<16x1xf32>
    %24 = arith.addf %23, %22 : vector<16x1xf32>
    %25 = arith.divf %23, %24 : vector<16x1xf32>
    %26 = vector.broadcast %25 : vector<16x1xf32> to vector<16x32xf32>
    %27 = arith.mulf %9, %26 : vector<16x32xf32>
    %28 = arith.addf %5, %7 : vector<6x32xf32>
    %29 = arith.addf %27, %11 : vector<16x32xf32>
    %c0_19 = arith.constant 0 : index
    %c0_20 = arith.constant 0 : index
    %30 = vector.load %arg9[%c0_19, %c0_20] : memref<32x32xf32, #tpu.memory_space<vmem>>, vector<32x32xf32>
    %c0_21 = arith.constant 0 : index
    %c0_22 = arith.constant 0 : index
    %31 = vector.load %arg10[%c0_21, %c0_22] : memref<1x32xf32, #tpu.memory_space<vmem>>, vector<1x32xf32>
    %c0_23 = arith.constant 0 : index
    %c0_24 = arith.constant 0 : index
    %32 = vector.load %arg11[%c0_23, %c0_24] : memref<32x32xf32, #tpu.memory_space<vmem>>, vector<32x32xf32>
    %c0_25 = arith.constant 0 : index
    %c0_26 = arith.constant 0 : index
    %33 = vector.load %arg12[%c0_25, %c0_26] : memref<1x32xf32, #tpu.memory_space<vmem>>, vector<1x32xf32>
    %c0_27 = arith.constant 0 : index
    %c0_28 = arith.constant 0 : index
    %34 = vector.load %arg13[%c0_27, %c0_28] : memref<32x32xf32, #tpu.memory_space<vmem>>, vector<32x32xf32>
    %c0_29 = arith.constant 0 : index
    %c0_30 = arith.constant 0 : index
    %35 = vector.load %arg14[%c0_29, %c0_30] : memref<1x32xf32, #tpu.memory_space<vmem>>, vector<1x32xf32>
    %c0_31 = arith.constant 0 : index
    %c0_32 = arith.constant 0 : index
    %36 = vector.load %arg15[%c0_31, %c0_32] : memref<32x32xf32, #tpu.memory_space<vmem>>, vector<32x32xf32>
    %c0_33 = arith.constant 0 : index
    %c0_34 = arith.constant 0 : index
    %37 = vector.load %arg16[%c0_33, %c0_34] : memref<1x32xf32, #tpu.memory_space<vmem>>, vector<1x32xf32>
    %cst_35 = arith.constant dense<0.000000e+00> : vector<6x32xf32>
    %38 = tpu.matmul %28, %30, %cst_35 {dimension_numbers = #tpu.dot_dimension_numbers<[1], [0], [0], [1], [0, 0, 1, 1], [], []>} : vector<6x32xf32>, vector<32x32xf32>, vector<6x32xf32> -> vector<6x32xf32>
    %39 = vector.broadcast %31 : vector<1x32xf32> to vector<6x32xf32>
    %40 = arith.addf %38, %39 : vector<6x32xf32>
    %cst_36 = arith.constant dense<0.000000e+00> : vector<16x32xf32>
    %41 = tpu.matmul %29, %32, %cst_36 {dimension_numbers = #tpu.dot_dimension_numbers<[1], [0], [0], [1], [0, 0, 1, 1], [], []>} : vector<16x32xf32>, vector<32x32xf32>, vector<16x32xf32> -> vector<16x32xf32>
    %42 = vector.broadcast %33 : vector<1x32xf32> to vector<16x32xf32>
    %43 = arith.addf %41, %42 : vector<16x32xf32>
    %cst_37 = arith.constant dense<0.000000e+00> : vector<16x32xf32>
    %44 = tpu.matmul %27, %34, %cst_37 {dimension_numbers = #tpu.dot_dimension_numbers<[1], [0], [0], [1], [0, 0, 1, 1], [], []>} : vector<16x32xf32>, vector<32x32xf32>, vector<16x32xf32> -> vector<16x32xf32>
    %45 = vector.broadcast %35 : vector<1x32xf32> to vector<16x32xf32>
    %46 = arith.addf %44, %45 : vector<16x32xf32>
    %47 = vector.extract_strided_slice %40 {offsets = [0, 0], sizes = [6, 8], strides = [1, 1]} : vector<6x32xf32> to vector<6x8xf32>
    %48 = vector.extract_strided_slice %43 {offsets = [0, 0], sizes = [16, 8], strides = [1, 1]} : vector<16x32xf32> to vector<16x8xf32>
    %cst_38 = arith.constant dense<0.000000e+00> : vector<6x16xf32>
    %49 = tpu.matmul %47, %48, %cst_38 {dimension_numbers = #tpu.dot_dimension_numbers<[1], [1], [0], [0], [0, 0, 1, 0], [], []>} : vector<6x8xf32>, vector<16x8xf32>, vector<6x16xf32> -> vector<6x16xf32>
    %cst_39 = arith.constant 0.353553385 : f32
    %50 = vector.broadcast %cst_39 : f32 to vector<6x16xf32>
    %51 = arith.mulf %49, %50 : vector<6x16xf32>
    %cst_40 = arith.constant dense<0xFF800000> : vector<6xf32>
    %52 = vector.multi_reduction <maximumf>, %51, %cst_40 [1] : vector<6x16xf32> to vector<6xf32>
    %cst_41 = arith.constant 0xFF800000 : f32
    %53 = vector.broadcast %cst_41 : f32 to vector<6xf32>
    %54 = arith.maximumf %53, %52 : vector<6xf32>
    %55 = vector.shape_cast %54 : vector<6xf32> to vector<6x1xf32>
    %56 = vector.broadcast %55 : vector<6x1xf32> to vector<6x16xf32>
    %57 = arith.subf %51, %56 : vector<6x16xf32>
    %58 = math.exp %57 : vector<6x16xf32>
    %cst_42 = arith.constant dense<0.000000e+00> : vector<6xf32>
    %59 = vector.multi_reduction <add>, %58, %cst_42 [1] : vector<6x16xf32> to vector<6xf32>
    %60 = vector.shape_cast %59 : vector<6xf32> to vector<6x1xf32>
    %61 = vector.broadcast %60 : vector<6x1xf32> to vector<6x16xf32>
    %62 = arith.divf %58, %61 : vector<6x16xf32>
    %63 = vector.extract_strided_slice %46 {offsets = [0, 0], sizes = [16, 8], strides = [1, 1]} : vector<16x32xf32> to vector<16x8xf32>
    %cst_43 = arith.constant dense<0.000000e+00> : vector<6x8xf32>
    %64 = tpu.matmul %62, %63, %cst_43 {dimension_numbers = #tpu.dot_dimension_numbers<[1], [0], [0], [1], [0, 0, 1, 1], [], []>} : vector<6x16xf32>, vector<16x8xf32>, vector<6x8xf32> -> vector<6x8xf32>
    %65 = vector.extract_strided_slice %40 {offsets = [0, 8], sizes = [6, 8], strides = [1, 1]} : vector<6x32xf32> to vector<6x8xf32>
    %66 = vector.extract_strided_slice %43 {offsets = [0, 8], sizes = [16, 8], strides = [1, 1]} : vector<16x32xf32> to vector<16x8xf32>
    %cst_44 = arith.constant dense<0.000000e+00> : vector<6x16xf32>
    %67 = tpu.matmul %65, %66, %cst_44 {dimension_numbers = #tpu.dot_dimension_numbers<[1], [1], [0], [0], [0, 0, 1, 0], [], []>} : vector<6x8xf32>, vector<16x8xf32>, vector<6x16xf32> -> vector<6x16xf32>
    %cst_45 = arith.constant 0.353553385 : f32
    %68 = vector.broadcast %cst_45 : f32 to vector<6x16xf32>
    %69 = arith.mulf %67, %68 : vector<6x16xf32>
    %cst_46 = arith.constant dense<0xFF800000> : vector<6xf32>
    %70 = vector.multi_reduction <maximumf>, %69, %cst_46 [1] : vector<6x16xf32> to vector<6xf32>
    %cst_47 = arith.constant 0xFF800000 : f32
    %71 = vector.broadcast %cst_47 : f32 to vector<6xf32>
    %72 = arith.maximumf %71, %70 : vector<6xf32>
    %73 = vector.shape_cast %72 : vector<6xf32> to vector<6x1xf32>
    %74 = vector.broadcast %73 : vector<6x1xf32> to vector<6x16xf32>
    %75 = arith.subf %69, %74 : vector<6x16xf32>
    %76 = math.exp %75 : vector<6x16xf32>
    %cst_48 = arith.constant dense<0.000000e+00> : vector<6xf32>
    %77 = vector.multi_reduction <add>, %76, %cst_48 [1] : vector<6x16xf32> to vector<6xf32>
    %78 = vector.shape_cast %77 : vector<6xf32> to vector<6x1xf32>
    %79 = vector.broadcast %78 : vector<6x1xf32> to vector<6x16xf32>
    %80 = arith.divf %76, %79 : vector<6x16xf32>
    %81 = vector.extract_strided_slice %46 {offsets = [0, 8], sizes = [16, 8], strides = [1, 1]} : vector<16x32xf32> to vector<16x8xf32>
    %cst_49 = arith.constant dense<0.000000e+00> : vector<6x8xf32>
    %82 = tpu.matmul %80, %81, %cst_49 {dimension_numbers = #tpu.dot_dimension_numbers<[1], [0], [0], [1], [0, 0, 1, 1], [], []>} : vector<6x16xf32>, vector<16x8xf32>, vector<6x8xf32> -> vector<6x8xf32>
    %83 = vector.extract_strided_slice %40 {offsets = [0, 16], sizes = [6, 8], strides = [1, 1]} : vector<6x32xf32> to vector<6x8xf32>
    %84 = vector.extract_strided_slice %43 {offsets = [0, 16], sizes = [16, 8], strides = [1, 1]} : vector<16x32xf32> to vector<16x8xf32>
    %cst_50 = arith.constant dense<0.000000e+00> : vector<6x16xf32>
    %85 = tpu.matmul %83, %84, %cst_50 {dimension_numbers = #tpu.dot_dimension_numbers<[1], [1], [0], [0], [0, 0, 1, 0], [], []>} : vector<6x8xf32>, vector<16x8xf32>, vector<6x16xf32> -> vector<6x16xf32>
    %cst_51 = arith.constant 0.353553385 : f32
    %86 = vector.broadcast %cst_51 : f32 to vector<6x16xf32>
    %87 = arith.mulf %85, %86 : vector<6x16xf32>
    %cst_52 = arith.constant dense<0xFF800000> : vector<6xf32>
    %88 = vector.multi_reduction <maximumf>, %87, %cst_52 [1] : vector<6x16xf32> to vector<6xf32>
    %cst_53 = arith.constant 0xFF800000 : f32
    %89 = vector.broadcast %cst_53 : f32 to vector<6xf32>
    %90 = arith.maximumf %89, %88 : vector<6xf32>
    %91 = vector.shape_cast %90 : vector<6xf32> to vector<6x1xf32>
    %92 = vector.broadcast %91 : vector<6x1xf32> to vector<6x16xf32>
    %93 = arith.subf %87, %92 : vector<6x16xf32>
    %94 = math.exp %93 : vector<6x16xf32>
    %cst_54 = arith.constant dense<0.000000e+00> : vector<6xf32>
    %95 = vector.multi_reduction <add>, %94, %cst_54 [1] : vector<6x16xf32> to vector<6xf32>
    %96 = vector.shape_cast %95 : vector<6xf32> to vector<6x1xf32>
    %97 = vector.broadcast %96 : vector<6x1xf32> to vector<6x16xf32>
    %98 = arith.divf %94, %97 : vector<6x16xf32>
    %99 = vector.extract_strided_slice %46 {offsets = [0, 16], sizes = [16, 8], strides = [1, 1]} : vector<16x32xf32> to vector<16x8xf32>
    %cst_55 = arith.constant dense<0.000000e+00> : vector<6x8xf32>
    %100 = tpu.matmul %98, %99, %cst_55 {dimension_numbers = #tpu.dot_dimension_numbers<[1], [0], [0], [1], [0, 0, 1, 1], [], []>} : vector<6x16xf32>, vector<16x8xf32>, vector<6x8xf32> -> vector<6x8xf32>
    %101 = vector.extract_strided_slice %40 {offsets = [0, 24], sizes = [6, 8], strides = [1, 1]} : vector<6x32xf32> to vector<6x8xf32>
    %102 = vector.extract_strided_slice %43 {offsets = [0, 24], sizes = [16, 8], strides = [1, 1]} : vector<16x32xf32> to vector<16x8xf32>
    %cst_56 = arith.constant dense<0.000000e+00> : vector<6x16xf32>
    %103 = tpu.matmul %101, %102, %cst_56 {dimension_numbers = #tpu.dot_dimension_numbers<[1], [1], [0], [0], [0, 0, 1, 0], [], []>} : vector<6x8xf32>, vector<16x8xf32>, vector<6x16xf32> -> vector<6x16xf32>
    %cst_57 = arith.constant 0.353553385 : f32
    %104 = vector.broadcast %cst_57 : f32 to vector<6x16xf32>
    %105 = arith.mulf %103, %104 : vector<6x16xf32>
    %cst_58 = arith.constant dense<0xFF800000> : vector<6xf32>
    %106 = vector.multi_reduction <maximumf>, %105, %cst_58 [1] : vector<6x16xf32> to vector<6xf32>
    %cst_59 = arith.constant 0xFF800000 : f32
    %107 = vector.broadcast %cst_59 : f32 to vector<6xf32>
    %108 = arith.maximumf %107, %106 : vector<6xf32>
    %109 = vector.shape_cast %108 : vector<6xf32> to vector<6x1xf32>
    %110 = vector.broadcast %109 : vector<6x1xf32> to vector<6x16xf32>
    %111 = arith.subf %105, %110 : vector<6x16xf32>
    %112 = math.exp %111 : vector<6x16xf32>
    %cst_60 = arith.constant dense<0.000000e+00> : vector<6xf32>
    %113 = vector.multi_reduction <add>, %112, %cst_60 [1] : vector<6x16xf32> to vector<6xf32>
    %114 = vector.shape_cast %113 : vector<6xf32> to vector<6x1xf32>
    %115 = vector.broadcast %114 : vector<6x1xf32> to vector<6x16xf32>
    %116 = arith.divf %112, %115 : vector<6x16xf32>
    %117 = vector.extract_strided_slice %46 {offsets = [0, 24], sizes = [16, 8], strides = [1, 1]} : vector<16x32xf32> to vector<16x8xf32>
    %cst_61 = arith.constant dense<0.000000e+00> : vector<6x8xf32>
    %118 = tpu.matmul %116, %117, %cst_61 {dimension_numbers = #tpu.dot_dimension_numbers<[1], [0], [0], [1], [0, 0, 1, 1], [], []>} : vector<6x16xf32>, vector<16x8xf32>, vector<6x8xf32> -> vector<6x8xf32>
    %119 = tpu.concatenate %64, %82, %100, %118 in 1 : vector<6x8xf32>, vector<6x8xf32>, vector<6x8xf32>, vector<6x8xf32> -> vector<6x32xf32>
    %cst_62 = arith.constant dense<0.000000e+00> : vector<6x32xf32>
    %120 = tpu.matmul %119, %36, %cst_62 {dimension_numbers = #tpu.dot_dimension_numbers<[1], [0], [0], [1], [0, 0, 1, 1], [], []>} : vector<6x32xf32>, vector<32x32xf32>, vector<6x32xf32> -> vector<6x32xf32>
    %121 = vector.broadcast %37 : vector<1x32xf32> to vector<6x32xf32>
    %122 = arith.addf %120, %121 : vector<6x32xf32>
    %c0_63 = arith.constant 0 : index
    %c0_64 = arith.constant 0 : index
    %123 = vector.load %arg17[%c0_63, %c0_64] : memref<1x32xf32, #tpu.memory_space<vmem>>, vector<1x32xf32>
    %c0_65 = arith.constant 0 : index
    %c0_66 = arith.constant 0 : index
    %124 = vector.load %arg18[%c0_65, %c0_66] : memref<1x32xf32, #tpu.memory_space<vmem>>, vector<1x32xf32>
    %125 = arith.addf %5, %122 : vector<6x32xf32>
    %cst_67 = arith.constant dense<0.000000e+00> : vector<6xf32>
    %126 = vector.multi_reduction <add>, %125, %cst_67 [1] : vector<6x32xf32> to vector<6xf32>
    %127 = vector.shape_cast %126 : vector<6xf32> to vector<6x1xf32>
    %cst_68 = arith.constant 3.200000e+01 : f32
    %128 = vector.broadcast %cst_68 : f32 to vector<6x1xf32>
    %129 = arith.divf %127, %128 : vector<6x1xf32>
    %130 = vector.broadcast %129 : vector<6x1xf32> to vector<6x32xf32>
    %131 = arith.subf %125, %130 : vector<6x32xf32>
    %132 = arith.mulf %131, %131 : vector<6x32xf32>
    %cst_69 = arith.constant dense<0.000000e+00> : vector<6xf32>
    %133 = vector.multi_reduction <add>, %132, %cst_69 [1] : vector<6x32xf32> to vector<6xf32>
    %134 = vector.shape_cast %133 : vector<6xf32> to vector<6x1xf32>
    %cst_70 = arith.constant 3.200000e+01 : f32
    %135 = vector.broadcast %cst_70 : f32 to vector<6x1xf32>
    %136 = arith.divf %134, %135 : vector<6x1xf32>
    %137 = vector.broadcast %129 : vector<6x1xf32> to vector<6x32xf32>
    %138 = arith.subf %125, %137 : vector<6x32xf32>
    %cst_71 = arith.constant 9.99999974E-6 : f32
    %139 = vector.broadcast %cst_71 : f32 to vector<6x1xf32>
    %140 = arith.addf %136, %139 : vector<6x1xf32>
    %141 = math.rsqrt %140 : vector<6x1xf32>
    %142 = vector.broadcast %141 : vector<6x1xf32> to vector<6x32xf32>
    %143 = arith.mulf %138, %142 : vector<6x32xf32>
    %144 = vector.broadcast %123 : vector<1x32xf32> to vector<6x32xf32>
    %145 = arith.mulf %143, %144 : vector<6x32xf32>
    %146 = vector.broadcast %124 : vector<1x32xf32> to vector<6x32xf32>
    %147 = arith.addf %145, %146 : vector<6x32xf32>
    %148 = arith.addf %147, %7 : vector<6x32xf32>
    %c0_72 = arith.constant 0 : index
    %c0_73 = arith.constant 0 : index
    %149 = vector.load %arg19[%c0_72, %c0_73] : memref<32x32xf32, #tpu.memory_space<vmem>>, vector<32x32xf32>
    %c0_74 = arith.constant 0 : index
    %c0_75 = arith.constant 0 : index
    %150 = vector.load %arg20[%c0_74, %c0_75] : memref<1x32xf32, #tpu.memory_space<vmem>>, vector<1x32xf32>
    %c0_76 = arith.constant 0 : index
    %c0_77 = arith.constant 0 : index
    %151 = vector.load %arg21[%c0_76, %c0_77] : memref<32x32xf32, #tpu.memory_space<vmem>>, vector<32x32xf32>
    %c0_78 = arith.constant 0 : index
    %c0_79 = arith.constant 0 : index
    %152 = vector.load %arg22[%c0_78, %c0_79] : memref<1x32xf32, #tpu.memory_space<vmem>>, vector<1x32xf32>
    %c0_80 = arith.constant 0 : index
    %c0_81 = arith.constant 0 : index
    %153 = vector.load %arg23[%c0_80, %c0_81] : memref<32x32xf32, #tpu.memory_space<vmem>>, vector<32x32xf32>
    %c0_82 = arith.constant 0 : index
    %c0_83 = arith.constant 0 : index
    %154 = vector.load %arg24[%c0_82, %c0_83] : memref<1x32xf32, #tpu.memory_space<vmem>>, vector<1x32xf32>
    %c0_84 = arith.constant 0 : index
    %c0_85 = arith.constant 0 : index
    %155 = vector.load %arg25[%c0_84, %c0_85] : memref<32x32xf32, #tpu.memory_space<vmem>>, vector<32x32xf32>
    %c0_86 = arith.constant 0 : index
    %c0_87 = arith.constant 0 : index
    %156 = vector.load %arg26[%c0_86, %c0_87] : memref<1x32xf32, #tpu.memory_space<vmem>>, vector<1x32xf32>
    %cst_88 = arith.constant dense<0.000000e+00> : vector<6x32xf32>
    %157 = tpu.matmul %148, %149, %cst_88 {dimension_numbers = #tpu.dot_dimension_numbers<[1], [0], [0], [1], [0, 0, 1, 1], [], []>} : vector<6x32xf32>, vector<32x32xf32>, vector<6x32xf32> -> vector<6x32xf32>
    %158 = vector.broadcast %150 : vector<1x32xf32> to vector<6x32xf32>
    %159 = arith.addf %157, %158 : vector<6x32xf32>
    %cst_89 = arith.constant dense<0.000000e+00> : vector<6x32xf32>
    %160 = tpu.matmul %148, %151, %cst_89 {dimension_numbers = #tpu.dot_dimension_numbers<[1], [0], [0], [1], [0, 0, 1, 1], [], []>} : vector<6x32xf32>, vector<32x32xf32>, vector<6x32xf32> -> vector<6x32xf32>
    %161 = vector.broadcast %152 : vector<1x32xf32> to vector<6x32xf32>
    %162 = arith.addf %160, %161 : vector<6x32xf32>
    %cst_90 = arith.constant dense<0.000000e+00> : vector<6x32xf32>
    %163 = tpu.matmul %147, %153, %cst_90 {dimension_numbers = #tpu.dot_dimension_numbers<[1], [0], [0], [1], [0, 0, 1, 1], [], []>} : vector<6x32xf32>, vector<32x32xf32>, vector<6x32xf32> -> vector<6x32xf32>
    %164 = vector.broadcast %154 : vector<1x32xf32> to vector<6x32xf32>
    %165 = arith.addf %163, %164 : vector<6x32xf32>
    %166 = vector.extract_strided_slice %159 {offsets = [0, 0], sizes = [6, 8], strides = [1, 1]} : vector<6x32xf32> to vector<6x8xf32>
    %167 = vector.extract_strided_slice %162 {offsets = [0, 0], sizes = [6, 8], strides = [1, 1]} : vector<6x32xf32> to vector<6x8xf32>
    %cst_91 = arith.constant dense<0.000000e+00> : vector<6x6xf32>
    %168 = tpu.matmul %166, %167, %cst_91 {dimension_numbers = #tpu.dot_dimension_numbers<[1], [1], [0], [0], [0, 0, 1, 0], [], []>} : vector<6x8xf32>, vector<6x8xf32>, vector<6x6xf32> -> vector<6x6xf32>
    %cst_92 = arith.constant 0.353553385 : f32
    %169 = vector.broadcast %cst_92 : f32 to vector<6x6xf32>
    %170 = arith.mulf %168, %169 : vector<6x6xf32>
    %cst_93 = arith.constant -1.000000e+09 : f32
    %171 = vector.broadcast %cst_93 : f32 to vector<6x6xf32>
    %172 = arith.select %3, %171, %170 : vector<6x6xf32>
    %cst_94 = arith.constant dense<0xFF800000> : vector<6xf32>
    %173 = vector.multi_reduction <maximumf>, %172, %cst_94 [1] : vector<6x6xf32> to vector<6xf32>
    %cst_95 = arith.constant 0xFF800000 : f32
    %174 = vector.broadcast %cst_95 : f32 to vector<6xf32>
    %175 = arith.maximumf %174, %173 : vector<6xf32>
    %176 = vector.shape_cast %175 : vector<6xf32> to vector<6x1xf32>
    %177 = vector.broadcast %176 : vector<6x1xf32> to vector<6x6xf32>
    %178 = arith.subf %172, %177 : vector<6x6xf32>
    %179 = math.exp %178 : vector<6x6xf32>
    %cst_96 = arith.constant dense<0.000000e+00> : vector<6xf32>
    %180 = vector.multi_reduction <add>, %179, %cst_96 [1] : vector<6x6xf32> to vector<6xf32>
    %181 = vector.shape_cast %180 : vector<6xf32> to vector<6x1xf32>
    %182 = vector.broadcast %181 : vector<6x1xf32> to vector<6x6xf32>
    %183 = arith.divf %179, %182 : vector<6x6xf32>
    %184 = vector.extract_strided_slice %165 {offsets = [0, 0], sizes = [6, 8], strides = [1, 1]} : vector<6x32xf32> to vector<6x8xf32>
    %cst_97 = arith.constant dense<0.000000e+00> : vector<6x8xf32>
    %185 = tpu.matmul %183, %184, %cst_97 {dimension_numbers = #tpu.dot_dimension_numbers<[1], [0], [0], [1], [0, 0, 1, 1], [], []>} : vector<6x6xf32>, vector<6x8xf32>, vector<6x8xf32> -> vector<6x8xf32>
    %186 = vector.extract_strided_slice %159 {offsets = [0, 8], sizes = [6, 8], strides = [1, 1]} : vector<6x32xf32> to vector<6x8xf32>
    %187 = vector.extract_strided_slice %162 {offsets = [0, 8], sizes = [6, 8], strides = [1, 1]} : vector<6x32xf32> to vector<6x8xf32>
    %cst_98 = arith.constant dense<0.000000e+00> : vector<6x6xf32>
    %188 = tpu.matmul %186, %187, %cst_98 {dimension_numbers = #tpu.dot_dimension_numbers<[1], [1], [0], [0], [0, 0, 1, 0], [], []>} : vector<6x8xf32>, vector<6x8xf32>, vector<6x6xf32> -> vector<6x6xf32>
    %cst_99 = arith.constant 0.353553385 : f32
    %189 = vector.broadcast %cst_99 : f32 to vector<6x6xf32>
    %190 = arith.mulf %188, %189 : vector<6x6xf32>
    %cst_100 = arith.constant -1.000000e+09 : f32
    %191 = vector.broadcast %cst_100 : f32 to vector<6x6xf32>
    %192 = arith.select %3, %191, %190 : vector<6x6xf32>
    %cst_101 = arith.constant dense<0xFF800000> : vector<6xf32>
    %193 = vector.multi_reduction <maximumf>, %192, %cst_101 [1] : vector<6x6xf32> to vector<6xf32>
    %cst_102 = arith.constant 0xFF800000 : f32
    %194 = vector.broadcast %cst_102 : f32 to vector<6xf32>
    %195 = arith.maximumf %194, %193 : vector<6xf32>
    %196 = vector.shape_cast %195 : vector<6xf32> to vector<6x1xf32>
    %197 = vector.broadcast %196 : vector<6x1xf32> to vector<6x6xf32>
    %198 = arith.subf %192, %197 : vector<6x6xf32>
    %199 = math.exp %198 : vector<6x6xf32>
    %cst_103 = arith.constant dense<0.000000e+00> : vector<6xf32>
    %200 = vector.multi_reduction <add>, %199, %cst_103 [1] : vector<6x6xf32> to vector<6xf32>
    %201 = vector.shape_cast %200 : vector<6xf32> to vector<6x1xf32>
    %202 = vector.broadcast %201 : vector<6x1xf32> to vector<6x6xf32>
    %203 = arith.divf %199, %202 : vector<6x6xf32>
    %204 = vector.extract_strided_slice %165 {offsets = [0, 8], sizes = [6, 8], strides = [1, 1]} : vector<6x32xf32> to vector<6x8xf32>
    %cst_104 = arith.constant dense<0.000000e+00> : vector<6x8xf32>
    %205 = tpu.matmul %203, %204, %cst_104 {dimension_numbers = #tpu.dot_dimension_numbers<[1], [0], [0], [1], [0, 0, 1, 1], [], []>} : vector<6x6xf32>, vector<6x8xf32>, vector<6x8xf32> -> vector<6x8xf32>
    %206 = vector.extract_strided_slice %159 {offsets = [0, 16], sizes = [6, 8], strides = [1, 1]} : vector<6x32xf32> to vector<6x8xf32>
    %207 = vector.extract_strided_slice %162 {offsets = [0, 16], sizes = [6, 8], strides = [1, 1]} : vector<6x32xf32> to vector<6x8xf32>
    %cst_105 = arith.constant dense<0.000000e+00> : vector<6x6xf32>
    %208 = tpu.matmul %206, %207, %cst_105 {dimension_numbers = #tpu.dot_dimension_numbers<[1], [1], [0], [0], [0, 0, 1, 0], [], []>} : vector<6x8xf32>, vector<6x8xf32>, vector<6x6xf32> -> vector<6x6xf32>
    %cst_106 = arith.constant 0.353553385 : f32
    %209 = vector.broadcast %cst_106 : f32 to vector<6x6xf32>
    %210 = arith.mulf %208, %209 : vector<6x6xf32>
    %cst_107 = arith.constant -1.000000e+09 : f32
    %211 = vector.broadcast %cst_107 : f32 to vector<6x6xf32>
    %212 = arith.select %3, %211, %210 : vector<6x6xf32>
    %cst_108 = arith.constant dense<0xFF800000> : vector<6xf32>
    %213 = vector.multi_reduction <maximumf>, %212, %cst_108 [1] : vector<6x6xf32> to vector<6xf32>
    %cst_109 = arith.constant 0xFF800000 : f32
    %214 = vector.broadcast %cst_109 : f32 to vector<6xf32>
    %215 = arith.maximumf %214, %213 : vector<6xf32>
    %216 = vector.shape_cast %215 : vector<6xf32> to vector<6x1xf32>
    %217 = vector.broadcast %216 : vector<6x1xf32> to vector<6x6xf32>
    %218 = arith.subf %212, %217 : vector<6x6xf32>
    %219 = math.exp %218 : vector<6x6xf32>
    %cst_110 = arith.constant dense<0.000000e+00> : vector<6xf32>
    %220 = vector.multi_reduction <add>, %219, %cst_110 [1] : vector<6x6xf32> to vector<6xf32>
    %221 = vector.shape_cast %220 : vector<6xf32> to vector<6x1xf32>
    %222 = vector.broadcast %221 : vector<6x1xf32> to vector<6x6xf32>
    %223 = arith.divf %219, %222 : vector<6x6xf32>
    %224 = vector.extract_strided_slice %165 {offsets = [0, 16], sizes = [6, 8], strides = [1, 1]} : vector<6x32xf32> to vector<6x8xf32>
    %cst_111 = arith.constant dense<0.000000e+00> : vector<6x8xf32>
    %225 = tpu.matmul %223, %224, %cst_111 {dimension_numbers = #tpu.dot_dimension_numbers<[1], [0], [0], [1], [0, 0, 1, 1], [], []>} : vector<6x6xf32>, vector<6x8xf32>, vector<6x8xf32> -> vector<6x8xf32>
    %226 = vector.extract_strided_slice %159 {offsets = [0, 24], sizes = [6, 8], strides = [1, 1]} : vector<6x32xf32> to vector<6x8xf32>
    %227 = vector.extract_strided_slice %162 {offsets = [0, 24], sizes = [6, 8], strides = [1, 1]} : vector<6x32xf32> to vector<6x8xf32>
    %cst_112 = arith.constant dense<0.000000e+00> : vector<6x6xf32>
    %228 = tpu.matmul %226, %227, %cst_112 {dimension_numbers = #tpu.dot_dimension_numbers<[1], [1], [0], [0], [0, 0, 1, 0], [], []>} : vector<6x8xf32>, vector<6x8xf32>, vector<6x6xf32> -> vector<6x6xf32>
    %cst_113 = arith.constant 0.353553385 : f32
    %229 = vector.broadcast %cst_113 : f32 to vector<6x6xf32>
    %230 = arith.mulf %228, %229 : vector<6x6xf32>
    %cst_114 = arith.constant -1.000000e+09 : f32
    %231 = vector.broadcast %cst_114 : f32 to vector<6x6xf32>
    %232 = arith.select %3, %231, %230 : vector<6x6xf32>
    %cst_115 = arith.constant dense<0xFF800000> : vector<6xf32>
    %233 = vector.multi_reduction <maximumf>, %232, %cst_115 [1] : vector<6x6xf32> to vector<6xf32>
    %cst_116 = arith.constant 0xFF800000 : f32
    %234 = vector.broadcast %cst_116 : f32 to vector<6xf32>
    %235 = arith.maximumf %234, %233 : vector<6xf32>
    %236 = vector.shape_cast %235 : vector<6xf32> to vector<6x1xf32>
    %237 = vector.broadcast %236 : vector<6x1xf32> to vector<6x6xf32>
    %238 = arith.subf %232, %237 : vector<6x6xf32>
    %239 = math.exp %238 : vector<6x6xf32>
    %cst_117 = arith.constant dense<0.000000e+00> : vector<6xf32>
    %240 = vector.multi_reduction <add>, %239, %cst_117 [1] : vector<6x6xf32> to vector<6xf32>
    %241 = vector.shape_cast %240 : vector<6xf32> to vector<6x1xf32>
    %242 = vector.broadcast %241 : vector<6x1xf32> to vector<6x6xf32>
    %243 = arith.divf %239, %242 : vector<6x6xf32>
    %244 = vector.extract_strided_slice %165 {offsets = [0, 24], sizes = [6, 8], strides = [1, 1]} : vector<6x32xf32> to vector<6x8xf32>
    %cst_118 = arith.constant dense<0.000000e+00> : vector<6x8xf32>
    %245 = tpu.matmul %243, %244, %cst_118 {dimension_numbers = #tpu.dot_dimension_numbers<[1], [0], [0], [1], [0, 0, 1, 1], [], []>} : vector<6x6xf32>, vector<6x8xf32>, vector<6x8xf32> -> vector<6x8xf32>
    %246 = tpu.concatenate %185, %205, %225, %245 in 1 : vector<6x8xf32>, vector<6x8xf32>, vector<6x8xf32>, vector<6x8xf32> -> vector<6x32xf32>
    %cst_119 = arith.constant dense<0.000000e+00> : vector<6x32xf32>
    %247 = tpu.matmul %246, %155, %cst_119 {dimension_numbers = #tpu.dot_dimension_numbers<[1], [0], [0], [1], [0, 0, 1, 1], [], []>} : vector<6x32xf32>, vector<32x32xf32>, vector<6x32xf32> -> vector<6x32xf32>
    %248 = vector.broadcast %156 : vector<1x32xf32> to vector<6x32xf32>
    %249 = arith.addf %247, %248 : vector<6x32xf32>
    %c0_120 = arith.constant 0 : index
    %c0_121 = arith.constant 0 : index
    %250 = vector.load %arg27[%c0_120, %c0_121] : memref<1x32xf32, #tpu.memory_space<vmem>>, vector<1x32xf32>
    %c0_122 = arith.constant 0 : index
    %c0_123 = arith.constant 0 : index
    %251 = vector.load %arg28[%c0_122, %c0_123] : memref<1x32xf32, #tpu.memory_space<vmem>>, vector<1x32xf32>
    %252 = arith.addf %147, %249 : vector<6x32xf32>
    %cst_124 = arith.constant dense<0.000000e+00> : vector<6xf32>
    %253 = vector.multi_reduction <add>, %252, %cst_124 [1] : vector<6x32xf32> to vector<6xf32>
    %254 = vector.shape_cast %253 : vector<6xf32> to vector<6x1xf32>
    %cst_125 = arith.constant 3.200000e+01 : f32
    %255 = vector.broadcast %cst_125 : f32 to vector<6x1xf32>
    %256 = arith.divf %254, %255 : vector<6x1xf32>
    %257 = vector.broadcast %256 : vector<6x1xf32> to vector<6x32xf32>
    %258 = arith.subf %252, %257 : vector<6x32xf32>
    %259 = arith.mulf %258, %258 : vector<6x32xf32>
    %cst_126 = arith.constant dense<0.000000e+00> : vector<6xf32>
    %260 = vector.multi_reduction <add>, %259, %cst_126 [1] : vector<6x32xf32> to vector<6xf32>
    %261 = vector.shape_cast %260 : vector<6xf32> to vector<6x1xf32>
    %cst_127 = arith.constant 3.200000e+01 : f32
    %262 = vector.broadcast %cst_127 : f32 to vector<6x1xf32>
    %263 = arith.divf %261, %262 : vector<6x1xf32>
    %264 = vector.broadcast %256 : vector<6x1xf32> to vector<6x32xf32>
    %265 = arith.subf %252, %264 : vector<6x32xf32>
    %cst_128 = arith.constant 9.99999974E-6 : f32
    %266 = vector.broadcast %cst_128 : f32 to vector<6x1xf32>
    %267 = arith.addf %263, %266 : vector<6x1xf32>
    %268 = math.rsqrt %267 : vector<6x1xf32>
    %269 = vector.broadcast %268 : vector<6x1xf32> to vector<6x32xf32>
    %270 = arith.mulf %265, %269 : vector<6x32xf32>
    %271 = vector.broadcast %250 : vector<1x32xf32> to vector<6x32xf32>
    %272 = arith.mulf %270, %271 : vector<6x32xf32>
    %273 = vector.broadcast %251 : vector<1x32xf32> to vector<6x32xf32>
    %274 = arith.addf %272, %273 : vector<6x32xf32>
    %c0_129 = arith.constant 0 : index
    %c0_130 = arith.constant 0 : index
    %275 = vector.load %arg29[%c0_129, %c0_130] : memref<32x64xf32, #tpu.memory_space<vmem>>, vector<32x64xf32>
    %c0_131 = arith.constant 0 : index
    %c0_132 = arith.constant 0 : index
    %276 = vector.load %arg30[%c0_131, %c0_132] : memref<1x64xf32, #tpu.memory_space<vmem>>, vector<1x64xf32>
    %c0_133 = arith.constant 0 : index
    %c0_134 = arith.constant 0 : index
    %277 = vector.load %arg31[%c0_133, %c0_134] : memref<64x32xf32, #tpu.memory_space<vmem>>, vector<64x32xf32>
    %c0_135 = arith.constant 0 : index
    %c0_136 = arith.constant 0 : index
    %278 = vector.load %arg32[%c0_135, %c0_136] : memref<1x32xf32, #tpu.memory_space<vmem>>, vector<1x32xf32>
    %cst_137 = arith.constant dense<0.000000e+00> : vector<6x64xf32>
    %279 = tpu.matmul %274, %275, %cst_137 {dimension_numbers = #tpu.dot_dimension_numbers<[1], [0], [0], [1], [0, 0, 1, 1], [], []>} : vector<6x32xf32>, vector<32x64xf32>, vector<6x64xf32> -> vector<6x64xf32>
    %280 = vector.broadcast %276 : vector<1x64xf32> to vector<6x64xf32>
    %281 = arith.addf %279, %280 : vector<6x64xf32>
    %282 = arith.mulf %281, %281 : vector<6x64xf32>
    %283 = arith.mulf %281, %282 : vector<6x64xf32>
    %cst_138 = arith.constant 4.471500e-02 : f32
    %284 = vector.broadcast %cst_138 : f32 to vector<6x64xf32>
    %285 = arith.mulf %284, %283 : vector<6x64xf32>
    %286 = arith.addf %281, %285 : vector<6x64xf32>
    %cst_139 = arith.constant 0.797884583 : f32
    %287 = vector.broadcast %cst_139 : f32 to vector<6x64xf32>
    %288 = arith.mulf %287, %286 : vector<6x64xf32>
    %289 = math.tanh %288 : vector<6x64xf32>
    %cst_140 = arith.constant 1.000000e+00 : f32
    %290 = vector.broadcast %cst_140 : f32 to vector<6x64xf32>
    %291 = arith.addf %290, %289 : vector<6x64xf32>
    %cst_141 = arith.constant 5.000000e-01 : f32
    %292 = vector.broadcast %cst_141 : f32 to vector<6x64xf32>
    %293 = arith.mulf %292, %291 : vector<6x64xf32>
    %294 = arith.mulf %281, %293 : vector<6x64xf32>
    %cst_142 = arith.constant dense<0.000000e+00> : vector<6x32xf32>
    %295 = tpu.matmul %294, %277, %cst_142 {dimension_numbers = #tpu.dot_dimension_numbers<[1], [0], [0], [1], [0, 0, 1, 1], [], []>} : vector<6x64xf32>, vector<64x32xf32>, vector<6x32xf32> -> vector<6x32xf32>
    %296 = vector.broadcast %278 : vector<1x32xf32> to vector<6x32xf32>
    %297 = arith.addf %295, %296 : vector<6x32xf32>
    %c0_143 = arith.constant 0 : index
    %c0_144 = arith.constant 0 : index
    %298 = vector.load %arg33[%c0_143, %c0_144] : memref<1x32xf32, #tpu.memory_space<vmem>>, vector<1x32xf32>
    %c0_145 = arith.constant 0 : index
    %c0_146 = arith.constant 0 : index
    %299 = vector.load %arg34[%c0_145, %c0_146] : memref<1x32xf32, #tpu.memory_space<vmem>>, vector<1x32xf32>
    %300 = arith.addf %274, %297 : vector<6x32xf32>
    %cst_147 = arith.constant dense<0.000000e+00> : vector<6xf32>
    %301 = vector.multi_reduction <add>, %300, %cst_147 [1] : vector<6x32xf32> to vector<6xf32>
    %302 = vector.shape_cast %301 : vector<6xf32> to vector<6x1xf32>
    %cst_148 = arith.constant 3.200000e+01 : f32
    %303 = vector.broadcast %cst_148 : f32 to vector<6x1xf32>
    %304 = arith.divf %302, %303 : vector<6x1xf32>
    %305 = vector.broadcast %304 : vector<6x1xf32> to vector<6x32xf32>
    %306 = arith.subf %300, %305 : vector<6x32xf32>
    %307 = arith.mulf %306, %306 : vector<6x32xf32>
    %cst_149 = arith.constant dense<0.000000e+00> : vector<6xf32>
    %308 = vector.multi_reduction <add>, %307, %cst_149 [1] : vector<6x32xf32> to vector<6xf32>
    %309 = vector.shape_cast %308 : vector<6xf32> to vector<6x1xf32>
    %cst_150 = arith.constant 3.200000e+01 : f32
    %310 = vector.broadcast %cst_150 : f32 to vector<6x1xf32>
    %311 = arith.divf %309, %310 : vector<6x1xf32>
    %312 = vector.broadcast %304 : vector<6x1xf32> to vector<6x32xf32>
    %313 = arith.subf %300, %312 : vector<6x32xf32>
    %cst_151 = arith.constant 9.99999974E-6 : f32
    %314 = vector.broadcast %cst_151 : f32 to vector<6x1xf32>
    %315 = arith.addf %311, %314 : vector<6x1xf32>
    %316 = math.rsqrt %315 : vector<6x1xf32>
    %317 = vector.broadcast %316 : vector<6x1xf32> to vector<6x32xf32>
    %318 = arith.mulf %313, %317 : vector<6x32xf32>
    %319 = vector.broadcast %298 : vector<1x32xf32> to vector<6x32xf32>
    %320 = arith.mulf %318, %319 : vector<6x32xf32>
    %321 = vector.broadcast %299 : vector<1x32xf32> to vector<6x32xf32>
    %322 = arith.addf %320, %321 : vector<6x32xf32>
    %c0_152 = arith.constant 0 : index
    %c0_153 = arith.constant 0 : index
    %c0_154 = arith.constant 0 : index
    %c0_155 = arith.constant 0 : index
    %323 = vector.load %arg35[%c0_152, %c0_153, %c0_154, %c0_155] : memref<1x1x6x32xf32, #tpu.memory_space<vmem>>, vector<1x1x6x32xf32>
    %324 = vector.shape_cast %323 : vector<1x1x6x32xf32> to vector<6x32xf32>
    %325 = vector.shape_cast %322 : vector<6x32xf32> to vector<1x1x6x32xf32>
    tpu.vector_store %arg35[%c0_152, %c0_153, %c0_154, %c0_155], %325 {strides = array<i32>} : memref<1x1x6x32xf32, #tpu.memory_space<vmem>>, vector<1x1x6x32xf32>,
    return
  }
  func.func @transform_0(%arg0: i32, %arg1: i32, %arg2: memref<2x4xi32, #tpu.memory_space<smem>>) -> (i32, i32, i32, i32) {
    %c0_i32 = arith.constant 0 : i32
    %c0_i32_0 = arith.constant 0 : i32
    %c0_i32_1 = arith.constant 0 : i32
    return %arg0, %arg1, %c0_i32, %c0_i32_0 : i32, i32, i32, i32
  }
  func.func @transform_1(%arg0: i32, %arg1: i32, %arg2: memref<2x4xi32, #tpu.memory_space<smem>>) -> (i32, i32, i32, i32) {
    %c0_i32 = arith.constant 0 : i32
    %c0_i32_0 = arith.constant 0 : i32
    %c0_i32_1 = arith.constant 0 : i32
    return %arg0, %arg1, %c0_i32, %c0_i32_0 : i32, i32, i32, i32
  }
  func.func @transform_2(%arg0: i32, %arg1: i32, %arg2: memref<2x4xi32, #tpu.memory_space<smem>>) -> (i32, i32, i32) {
    %c0_i32 = arith.constant 0 : i32
    %c0_i32_0 = arith.constant 0 : i32
    %c0_i32_1 = arith.constant 0 : i32
    return %arg0, %c0_i32, %c0_i32_0 : i32, i32, i32
  }
  func.func @transform_3(%arg0: i32, %arg1: i32, %arg2: memref<2x4xi32, #tpu.memory_space<smem>>) -> (i32, i32, i32) {
    %c0_i32 = arith.constant 0 : i32
    %c0_i32_0 = arith.constant 0 : i32
    %c0_i32_1 = arith.constant 0 : i32
    return %arg0, %c0_i32, %c0_i32_0 : i32, i32, i32
  }
  func.func @transform_4(%arg0: i32, %arg1: i32, %arg2: memref<2x4xi32, #tpu.memory_space<smem>>) -> (i32, i32) {
    %c0_i32 = arith.constant 0 : i32
    %c0_i32_0 = arith.constant 0 : i32
    %c0_i32_1 = arith.constant 0 : i32
    return %c0_i32, %c0_i32_0 : i32, i32
  }
  func.func @transform_5(%arg0: i32, %arg1: i32, %arg2: memref<2x4xi32, #tpu.memory_space<smem>>) -> (i32, i32) {
    %c0_i32 = arith.constant 0 : i32
    %c0_i32_0 = arith.constant 0 : i32
    %c0_i32_1 = arith.constant 0 : i32
    return %c0_i32, %c0_i32_0 : i32, i32
  }
  func.func @transform_6(%arg0: i32, %arg1: i32, %arg2: memref<2x4xi32, #tpu.memory_space<smem>>) -> (i32, i32) {
    %c0_i32 = arith.constant 0 : i32
    %c0_i32_0 = arith.constant 0 : i32
    %c0_i32_1 = arith.constant 0 : i32
    return %c0_i32, %c0_i32_0 : i32, i32
  }
  func.func @transform_7(%arg0: i32, %arg1: i32, %arg2: memref<2x4xi32, #tpu.memory_space<smem>>) -> (i32, i32) {
    %c0_i32 = arith.constant 0 : i32
    %c0_i32_0 = arith.constant 0 : i32
    %c0_i32_1 = arith.constant 0 : i32
    return %c0_i32, %c0_i32_0 : i32, i32
  }
  func.func @transform_8(%arg0: i32, %arg1: i32, %arg2: memref<2x4xi32, #tpu.memory_space<smem>>) -> (i32, i32) {
    %c0_i32 = arith.constant 0 : i32
    %c0_i32_0 = arith.constant 0 : i32
    %c0_i32_1 = arith.constant 0 : i32
    return %c0_i32, %c0_i32_0 : i32, i32
  }
  func.func @transform_9(%arg0: i32, %arg1: i32, %arg2: memref<2x4xi32, #tpu.memory_space<smem>>) -> (i32, i32) {
    %c0_i32 = arith.constant 0 : i32
    %c0_i32_0 = arith.constant 0 : i32
    %c0_i32_1 = arith.constant 0 : i32
    return %c0_i32, %c0_i32_0 : i32, i32
  }
  func.func @transform_10(%arg0: i32, %arg1: i32, %arg2: memref<2x4xi32, #tpu.memory_space<smem>>) -> (i32, i32) {
    %c0_i32 = arith.constant 0 : i32
    %c0_i32_0 = arith.constant 0 : i32
    %c0_i32_1 = arith.constant 0 : i32
    return %c0_i32, %c0_i32_0 : i32, i32
  }
  func.func @transform_11(%arg0: i32, %arg1: i32, %arg2: memref<2x4xi32, #tpu.memory_space<smem>>) -> (i32, i32) {
    %c0_i32 = arith.constant 0 : i32
    %c0_i32_0 = arith.constant 0 : i32
    %c0_i32_1 = arith.constant 0 : i32
    return %c0_i32, %c0_i32_0 : i32, i32
  }
  func.func @transform_12(%arg0: i32, %arg1: i32, %arg2: memref<2x4xi32, #tpu.memory_space<smem>>) -> (i32, i32) {
    %c0_i32 = arith.constant 0 : i32
    %c0_i32_0 = arith.constant 0 : i32
    %c0_i32_1 = arith.constant 0 : i32
    return %c0_i32, %c0_i32_0 : i32, i32
  }
  func.func @transform_13(%arg0: i32, %arg1: i32, %arg2: memref<2x4xi32, #tpu.memory_space<smem>>) -> (i32, i32) {
    %c0_i32 = arith.constant 0 : i32
    %c0_i32_0 = arith.constant 0 : i32
    %c0_i32_1 = arith.constant 0 : i32
    return %c0_i32, %c0_i32_0 : i32, i32
  }
  func.func @transform_14(%arg0: i32, %arg1: i32, %arg2: memref<2x4xi32, #tpu.memory_space<smem>>) -> (i32, i32) {
    %c0_i32 = arith.constant 0 : i32
    %c0_i32_0 = arith.constant 0 : i32
    %c0_i32_1 = arith.constant 0 : i32
    return %c0_i32, %c0_i32_0 : i32, i32
  }
  func.func @transform_15(%arg0: i32, %arg1: i32, %arg2: memref<2x4xi32, #tpu.memory_space<smem>>) -> (i32, i32) {
    %c0_i32 = arith.constant 0 : i32
    %c0_i32_0 = arith.constant 0 : i32
    %c0_i32_1 = arith.constant 0 : i32
    return %c0_i32, %c0_i32_0 : i32, i32
  }
  func.func @transform_16(%arg0: i32, %arg1: i32, %arg2: memref<2x4xi32, #tpu.memory_space<smem>>) -> (i32, i32) {
    %c0_i32 = arith.constant 0 : i32
    %c0_i32_0 = arith.constant 0 : i32
    %c0_i32_1 = arith.constant 0 : i32
    return %c0_i32, %c0_i32_0 : i32, i32
  }
  func.func @transform_17(%arg0: i32, %arg1: i32, %arg2: memref<2x4xi32, #tpu.memory_space<smem>>) -> (i32, i32) {
    %c0_i32 = arith.constant 0 : i32
    %c0_i32_0 = arith.constant 0 : i32
    %c0_i32_1 = arith.constant 0 : i32
    return %c0_i32, %c0_i32_0 : i32, i32
  }
  func.func @transform_18(%arg0: i32, %arg1: i32, %arg2: memref<2x4xi32, #tpu.memory_space<smem>>) -> (i32, i32) {
    %c0_i32 = arith.constant 0 : i32
    %c0_i32_0 = arith.constant 0 : i32
    %c0_i32_1 = arith.constant 0 : i32
    return %c0_i32, %c0_i32_0 : i32, i32
  }
  func.func @transform_19(%arg0: i32, %arg1: i32, %arg2: memref<2x4xi32, #tpu.memory_space<smem>>) -> (i32, i32) {
    %c0_i32 = arith.constant 0 : i32
    %c0_i32_0 = arith.constant 0 : i32
    %c0_i32_1 = arith.constant 0 : i32
    return %c0_i32, %c0_i32_0 : i32, i32
  }
  func.func @transform_20(%arg0: i32, %arg1: i32, %arg2: memref<2x4xi32, #tpu.memory_space<smem>>) -> (i32, i32) {
    %c0_i32 = arith.constant 0 : i32
    %c0_i32_0 = arith.constant 0 : i32
    %c0_i32_1 = arith.constant 0 : i32
    return %c0_i32, %c0_i32_0 : i32, i32
  }
  func.func @transform_21(%arg0: i32, %arg1: i32, %arg2: memref<2x4xi32, #tpu.memory_space<smem>>) -> (i32, i32) {
    %c0_i32 = arith.constant 0 : i32
    %c0_i32_0 = arith.constant 0 : i32
    %c0_i32_1 = arith.constant 0 : i32
    return %c0_i32, %c0_i32_0 : i32, i32
  }
  func.func @transform_22(%arg0: i32, %arg1: i32, %arg2: memref<2x4xi32, #tpu.memory_space<smem>>) -> (i32, i32) {
    %c0_i32 = arith.constant 0 : i32
    %c0_i32_0 = arith.constant 0 : i32
    %c0_i32_1 = arith.constant 0 : i32
    return %c0_i32, %c0_i32_0 : i32, i32
  }
  func.func @transform_23(%arg0: i32, %arg1: i32, %arg2: memref<2x4xi32, #tpu.memory_space<smem>>) -> (i32, i32) {
    %c0_i32 = arith.constant 0 : i32
    %c0_i32_0 = arith.constant 0 : i32
    %c0_i32_1 = arith.constant 0 : i32
    return %c0_i32, %c0_i32_0 : i32, i32
  }
  func.func @transform_24(%arg0: i32, %arg1: i32, %arg2: memref<2x4xi32, #tpu.memory_space<smem>>) -> (i32, i32) {
    %c0_i32 = arith.constant 0 : i32
    %c0_i32_0 = arith.constant 0 : i32
    %c0_i32_1 = arith.constant 0 : i32
    return %c0_i32, %c0_i32_0 : i32, i32
  }
  func.func @transform_25(%arg0: i32, %arg1: i32, %arg2: memref<2x4xi32, #tpu.memory_space<smem>>) -> (i32, i32) {
    %c0_i32 = arith.constant 0 : i32
    %c0_i32_0 = arith.constant 0 : i32
    %c0_i32_1 = arith.constant 0 : i32
    return %c0_i32, %c0_i32_0 : i32, i32
  }
  func.func @transform_26(%arg0: i32, %arg1: i32, %arg2: memref<2x4xi32, #tpu.memory_space<smem>>) -> (i32, i32) {
    %c0_i32 = arith.constant 0 : i32
    %c0_i32_0 = arith.constant 0 : i32
    %c0_i32_1 = arith.constant 0 : i32
    return %c0_i32, %c0_i32_0 : i32, i32
  }
  func.func @transform_27(%arg0: i32, %arg1: i32, %arg2: memref<2x4xi32, #tpu.memory_space<smem>>) -> (i32, i32) {
    %c0_i32 = arith.constant 0 : i32
    %c0_i32_0 = arith.constant 0 : i32
    %c0_i32_1 = arith.constant 0 : i32
    return %c0_i32, %c0_i32_0 : i32, i32
  }
  func.func @transform_28(%arg0: i32, %arg1: i32, %arg2: memref<2x4xi32, #tpu.memory_space<smem>>) -> (i32, i32) {
    %c0_i32 = arith.constant 0 : i32
    %c0_i32_0 = arith.constant 0 : i32
    %c0_i32_1 = arith.constant 0 : i32
    return %c0_i32, %c0_i32_0 : i32, i32
  }
  func.func @transform_29(%arg0: i32, %arg1: i32, %arg2: memref<2x4xi32, #tpu.memory_space<smem>>) -> (i32, i32) {
    %c0_i32 = arith.constant 0 : i32
    %c0_i32_0 = arith.constant 0 : i32
    %c0_i32_1 = arith.constant 0 : i32
    return %c0_i32, %c0_i32_0 : i32, i32
  }
  func.func @transform_30(%arg0: i32, %arg1: i32, %arg2: memref<2x4xi32, #tpu.memory_space<smem>>) -> (i32, i32) {
    %c0_i32 = arith.constant 0 : i32
    %c0_i32_0 = arith.constant 0 : i32
    %c0_i32_1 = arith.constant 0 : i32
    return %c0_i32, %c0_i32_0 : i32, i32
  }
  func.func @transform_31(%arg0: i32, %arg1: i32, %arg2: memref<2x4xi32, #tpu.memory_space<smem>>) -> (i32, i32) {
    %c0_i32 = arith.constant 0 : i32
    %c0_i32_0 = arith.constant 0 : i32
    %c0_i32_1 = arith.constant 0 : i32
    return %c0_i32, %c0_i32_0 : i32, i32
  }
  func.func @transform_32(%arg0: i32, %arg1: i32, %arg2: memref<2x4xi32, #tpu.memory_space<smem>>) -> (i32, i32, i32, i32) {
    %c0_i32 = arith.constant 0 : i32
    %c0_i32_0 = arith.constant 0 : i32
    %c0_i32_1 = arith.constant 0 : i32
    return %arg0, %arg1, %c0_i32, %c0_i32_0 : i32, i32, i32, i32
  }
}

</mosaic_0001>

<bundles_post_ra>
// kernel: ainteraction_forward.3
= control target key start
LH: loop header
LB: loop body
LE: loop exit
PB: predicated region body
PF: predicated region fallthrough
CT: control target
= control target key end

     0   :  { %s3214_s0 = inlined_call_operand.vmem [shape: f32[2,4,32], index: 0, kind: input, shape index: {}]   ;;  %s3215_s1 = inlined_call_operand.vmem [shape: f32[2,4,32], index: 1, kind: input, shape index: {}]   ;;  %s3216_s2 = inlined_call_operand.vmem [shape: f32[2,4,1], index: 2, kind: input, shape index: {}]   ;;  %s3217_s3 = inlined_call_operand.vmem [shape: f32[2,1,4], index: 3, kind: input, shape index: {}]   ;;  %s3218_s4 = inlined_call_operand.vmem [shape: f32[32,32], index: 4, kind: input, shape index: {}]   ;;  %s3219_s5 = inlined_call_operand.vmem [shape: f32[1,32], index: 5, kind: input, shape index: {}]   ;;  %s3220_s6 = inlined_call_operand.vmem [shape: f32[32,32], index: 6, kind: input, shape index: {}]   ;;  %s3221_s7 = inlined_call_operand.vmem [shape: f32[1,32], index: 7, kind: input, shape index: {}]   ;;  %s3222_s8 = inlined_call_operand.vmem [shape: f32[32,32], index: 8, kind: input, shape index: {}]   ;;  %s3223_s9 = inlined_call_operand.vmem [shape: f32[1,32], index: 9, kind: input, shape index: {}]   ;;  %s3224_s10 = inlined_call_operand.vmem [shape: f32[32,32], index: 10, kind: input, shape index: {}]   ;;  %s3225_s11 = inlined_call_operand.vmem [shape: f32[1,32], index: 11, kind: input, shape index: {}]   ;;  %s3226_s12 = inlined_call_operand.vmem [shape: f32[1,32], index: 12, kind: input, shape index: {}]   ;;  %s3227_s13 = inlined_call_operand.vmem [shape: f32[1,32], index: 13, kind: input, shape index: {}]   ;;  %s3228_s14 = inlined_call_operand.vmem [shape: f32[32,64], index: 14, kind: input, shape index: {}]   ;;  %s3229_s15 = inlined_call_operand.vmem [shape: f32[1,64], index: 15, kind: input, shape index: {}]   ;;  %s3230_s16 = inlined_call_operand.vmem [shape: f32[64,32], index: 16, kind: input, shape index: {}]   ;;  %s3231_s17 = inlined_call_operand.hbm [shape: f32[1,32], index: 17, kind: input, shape index: {}]   ;;  %s3232_s18 = inlined_call_operand.hbm [shape: f32[1,32], index: 18, kind: input, shape index: {}]   ;;  %s3233_s19 = inlined_call_operand.hbm [shape: f32[1,32], index: 19, kind: input, shape index: {}]   ;;  %s3234_s20 = inlined_call_operand.hbm [shape: f32[2,4,32], index: 20, kind: output, shape index: {}]  }
   0x1   :  { %3249 = sst [smem:[#allocation20_spill]] %s3214_s0 }
   0x2   :  { %3250 = sst [smem:[#allocation21_spill]] %s3215_s1 }
   0x3   :  { %3251 = sst [smem:[#allocation22_spill]] %s3216_s2 }
   0x4   :  { %3252 = sst [smem:[#allocation23_spill]] %s3217_s3 }
   0x5   :  { %3253 = sst [smem:[#allocation24_spill]] %s3218_s4 }
   0x6   :  { %3254 = sst [smem:[#allocation25_spill]] %s3231_s17 }
   0x7   :  { %3255 = sst [smem:[#allocation26_spill]] %s3232_s18 }
   0x8   :  { %3256 = sst [smem:[#allocation27_spill]] %s3234_s20 }
   0x9   :  { %25 = vsyncpa [#allocation3], 0 }
   0xa   :  { %26 = vsyncpa [#allocation6], 0 }
   0xb   :  { %27 = vsyncpa [#allocation4], 0 }
   0xc   :  { %29 = vsyncpa [#allocation4 + $0x1], 0  ;;  %s2771_s1 = smov 0   ;;  %s2773_s22 = smov 0  }
   0xd   :  { %s2775_s23 = smov 0   ;;  %s2777_s24 = smov 0  }
   0xe LB: > { %3257 = sst [smem:[#allocation12_spill]] %s2638_s1  ;;  %s2792_s2 = sadd.s32 4294967295, %s2650_s24   ;;  %s2650_s24 = sphi %s2777_s24, %s3292_s24   ;;  %s2646_s23 = sphi %s2775_s23, %s3295_s23   ;;  %s2642_s22 = sphi %s2773_s22, %s3294_s22   ;;  %s2638_s1 = sphi %s2771_s1, %s3293_s1  }
   0xf   : > { %3258 = sst [smem:[#allocation13_spill]] %s2642_s22  ;;  %s2137_s25 = sadd.s32 4294967294, %s2650_s24  }
  0x10   : > { %3259 = sst [smem:[#allocation14_spill]] %s2646_s23  ;;  %s2796_s3 = sadd.s32 1, %s2650_s24  }
  0x11   : > { %3260 = sst [smem:[#allocation15_spill]] %s2650_s24  ;;  %s482_s26 = sadd.s32 1, %s2646_s23 }
  0x12   : > { %3261 = sst [smem:[#allocation16_spill]] %s2796_s3  ;;  %s479_s27 = ssub.s32 %s2650_s24, %s2796_s3 }
  0x13   : > { %p492_p0 = scmp.ne.s32.totalorder %s2646_s23, %s2642_s22  ;;  %p480_p1 = scmp.eq.s32.totalorder %s479_s27, 0 }
  0x14   : > { %p493_p2 = scmp.eq.s32.totalorder %s2792_s2, 1  ;;  %p498_p3 = scmp.ne.s32.totalorder %s2642_s22, %s2638_s1 }
  0x15   : > { %p499_p4 = scmp.eq.s32.totalorder %s2137_s25, 1  ;;  %p2138_p7 = scmp.ge.s32.totalorder %s2650_s24, 1 }
  0x16   : > { %s2807_s28 = scalar_select %p480_p1, %s2646_s23, %s482_s26  }
  0x17   : > { %p2809_p5 = por %p493_p2, %p492_p0  ;;  %p2813_p6 = por %p499_p4, %p498_p3 }
  0x18   : > { %3262 = sst [smem:[#allocation17_spill]] %s2807_s28  ;;  %p506_p8 = scmp.lt.s32.totalorder %s2650_s24, 3 }
  0x19   : > { %s3263_s4 = scalar_select %p2809_p5, 1, 0 }
  0x1a   : > { %s3265_s29 = scalar_select %p2813_p6, 1, 0 }
  0x1b   : > { %3264 = sst [smem:[#allocation18_spill]] %s3263_s4  ;;  %p3243_p9 = scmp.eq.s32.totalorder %s2792_s2, 0 }
  0x1c   : > { %3266 = sst [smem:[#allocation19_spill]] %s3265_s29  ;;  %p2820_p10 = pnand %p2138_p7, %p506_p8 }
  0x1d   : > { %s2652_s0 = smov [#allocation5]   ;;  %s2653_s25 = smov [#allocation2]  }
  0x1e   : > { %s3267_s30 = scalar_select %p2820_p10, 1, 0 }
  0x1f   : > { %s569_s21 = sshll.u32 %s2652_s0, 4  ;;  %p2407_p11 = pneg %p2820_p10  ;;  %s570_s21 = int_to_ptr.vmem [resolvable:$true] %s569_s21 }
  0x20   : > { %s558_s26 = sshll.u32 %s2653_s25, 4  ;;  %s2654_s28 = smov [#allocation7]   ;;  %s2832_s26 = int_to_ptr.vmem [resolvable:$true] %s558_s26 }
  0x21   : > { %p2828_p12 = pnand %p3243_p9, %p2407_p11  ;;  %s580_s23 = sshll.u32 %s2654_s28, 4  ;;  %s2834_s23 = int_to_ptr.vmem [resolvable:$true] %s580_s23 }
  0x22   : > { %s3269_s18 = sld [smem:[#allocation26_spill]] }
  0x23   : > { %p2844_p0 = pneg %p2828_p12 }
  0x28   : > { %s2496_s0 = scalar_lea.hbm %s3269_s18, 16 }
  0x29   : > { %p2497_p13 = scmp.ne.s32.totalorder %s3269_s18, %s2496_s0  ;;  %p2503_p3 = scmp.lt.u32.totalorder %s2496_s0, %s3269_s18 }
  0x2b   : > { %p2499_p1 = pnand %p2844_p0, %p2497_p13 }
  0x2d   : > { %p2500_p2 = pneg %p2499_p1 }
  0x2f   : > { %p2505_p4 = pnand %p2503_p3, %p2500_p2 }
  0x31   : > { %2508 = shalt.err (!%p2505_p4)
}
  0x32   : > { %s2509_s3 = scalar_lea.vmem %s570_s21, 16  ;;  %s2516_s1 = scalar_lea.vmem %s570_s21, 32 }
  0x33   : > { %p2510_p7 = scmp.ne.s32.totalorder %s570_s21, %s2509_s3  ;;  %p2517_p9 = scmp.lt.s32.totalorder %s570_s21, %s570_s21 }
  0x34   : > { %p2518_p6 = scmp.lt.s32.totalorder %s2516_s1, %s2509_s3 }
  0x35   : > { %p2512_p8 = pnand %p2510_p7, %p2844_p0 }
  0x36   : > { %p2519_p5 = por %p2518_p6, %p2517_p9 }
  0x37   : > { %p2513_p11 = pneg %p2512_p8 }
  0x39   : > { %p2520_p10 = pnand %p2519_p5, %p2513_p11 }
  0x3b   : > { %2523 = shalt.err (!%p2520_p10)
}
  0x3c   : > { %2413 = dma.hbm_to_vmem [thread:$0]  (!%p2828_p12), %s3269_s18, 16, %s570_s21, [#allocation6]  }
  0x3d   : > { %s3271_s17 = sld [smem:[#allocation25_spill]] }
  0x43   : > { %s2524_s28 = scalar_lea.hbm %s3271_s17, 16 }
  0x44   : > { %p2525_p13 = scmp.ne.s32.totalorder %s3271_s17, %s2524_s28  ;;  %p2531_p5 = scmp.lt.u32.totalorder %s2524_s28, %s3271_s17 }
  0x46   : > { %p2527_p1 = pnand %p2525_p13, %p2844_p0 }
  0x48   : > { %p2528_p6 = pneg %p2527_p1 }
  0x4a   : > { %p2533_p9 = pnand %p2531_p5, %p2528_p6 }
  0x4c   : > { %2536 = shalt.err (!%p2533_p9)
}
  0x4d   : > { %s2537_s21 = scalar_lea.vmem %s2832_s26, 16  ;;  %s2544_s22 = scalar_lea.vmem %s2832_s26, 32 }
  0x4e   : > { %p2538_p10 = scmp.ne.s32.totalorder %s2832_s26, %s2537_s21  ;;  %p2545_p4 = scmp.lt.s32.totalorder %s2832_s26, %s2832_s26 }
  0x4f   : > { %p2546_p7 = scmp.lt.s32.totalorder %s2544_s22, %s2537_s21 }
  0x50   : > { %p2540_p2 = pnand %p2538_p10, %p2844_p0 }
  0x51   : > { %p2547_p8 = por %p2546_p7, %p2545_p4 }
  0x52   : > { %p2541_p3 = pneg %p2540_p2 }
  0x54   : > { %p2548_p11 = pnand %p2547_p8, %p2541_p3 }
  0x56   : > { %2551 = shalt.err (!%p2548_p11)
}
  0x57   : > { %2410 = dma.hbm_to_vmem [thread:$0]  (!%p2828_p12), %s3271_s17, 16, %s2832_s26, [#allocation3]  }
  0x58   : > { %s2552_s0 = scalar_lea.hbm %s3233_s19, 16 }
  0x59   : > { %p2553_p13 = scmp.ne.s32.totalorder %s3233_s19, %s2552_s0  ;;  %p2559_p5 = scmp.lt.u32.totalorder %s2552_s0, %s3233_s19 }
  0x5b   : > { %p2555_p1 = pnand %p2553_p13, %p2844_p0 }
  0x5d   : > { %p2556_p6 = pneg %p2555_p1 }
  0x5f   : > { %p2561_p9 = pnand %p2559_p5, %p2556_p6 }
  0x61   : > { %2564 = shalt.err (!%p2561_p9)
}
  0x62   : > { %s2565_s26 = scalar_lea.vmem %s2834_s23, 16  ;;  %s2572_s22 = scalar_lea.vmem %s2834_s23, 32 }
  0x63   : > { %p2566_p10 = scmp.ne.s32.totalorder %s2834_s23, %s2565_s26  ;;  %p2573_p4 = scmp.lt.s32.totalorder %s2834_s23, %s2834_s23 }
  0x64   : > { %p2574_p7 = scmp.lt.s32.totalorder %s2572_s22, %s2565_s26 }
  0x65   : > { %p2568_p2 = pnand %p2566_p10, %p2844_p0 }
  0x66   : > { %p2575_p8 = por %p2574_p7, %p2573_p4 }
  0x67   : > { %p2569_p3 = pneg %p2568_p2 }
  0x69   : > { %p2576_p11 = pnand %p2575_p8, %p2569_p3 }
  0x6b   : > { %2579 = shalt.err (!%p2576_p11)
}
  0x6c   : > { %2416 = dma.hbm_to_vmem [thread:$0]  (!%p2828_p12), %s3233_s19, 16, %s2834_s23, [#allocation6]  }
  0x6d   : > { %p3272_p13 = scmp.ne.s32.totalorder %s3267_s30, 0 }
  0x6e   : > { %p3273_p0 = scmp.eq.s32.totalorder (!%p3272_p13), %s2792_s2, 0 }
  0x6f   : > { %620 = sbr.rel (%p3272_p13) target bundleno = 2660 (0xa64), region = 100 }
  0x76   : > { %2625 = dma.done.wait (%p3273_p0), [#allocation3], 16   ;;  %p3274_p1 = pmov %p3273_p0 }
  0x77   : > { %p3275_p6 = pmov %p3273_p0 }
  0x78   : > { %2627 = vsyncadd (%p3274_p1), [#allocation3], 4294967280 }
  0x79   : > { %2629 = dma.done.wait (%p3275_p6), [#allocation6], 32   ;;  %p3276_p5 = pmov %p3273_p0 }
  0x7a   : > { %p696_p9 = scmp.lt.s32.totalorder %s2792_s2, 1  ;;  %v2655_v0 = vmov 0.0|0.0   ;;  %vm2656_vm0 = vmmov 0   ;;  %v2657_v1 = vmov 0.0   ;;  %s3277_s29 = sld [smem:[#allocation24_spill]]  ;;  %v735_v10 = vld [vmem:[%s3220_s6] sm:$0xff]  ;;  %v723_v44 = vlaneseq }
  0x7b   : > { %2631 = vsyncadd (%p3276_p5), [#allocation6], 4294967264  ;;  %2351 = vmatprep.subr.bf16.mxu1 %v2655_v0  ;;  %2245 = vmatprep.mubr.msk.f32.mxu1 %vm2656_vm0, %v2657_v1  ;;  %s3278_s26 = sld [smem:[#allocation20_spill]]  ;;  %s3279_s17 = sld [smem:[#allocation21_spill]]  ;;  %v736_v11 = vld [vmem:[%s3220_s6 + $0x8] sm:$0xff]  ;;  %vm756_vm1 = vcmask 261120  }
  0x7c   : > { %s2923_s23 = scalar_select %p696_p9, %s2792_s2, 1  ;;  %2363 = vmatprep.subr.bf16.mxu0 %v2655_v0  ;;  %2267 = vmatprep.mubr.msk.f32.mxu0 %vm2656_vm0, %v2657_v1  ;;  %v2358_v13 = vpack.c.bf16 %v736_v11, %v735_v10  ;;  %v737_v14 = vld [vmem:[%s3220_s6 + $0x10] sm:$0xff]  ;;  %v738_v15 = vld [vmem:[%s3220_s6 + $0x18] sm:$0xff]  ;;  %v2658_v17 = vmov 0   ;;  %v740_v18 = vld [vmem:[%s3222_s8] sm:$0xff]  ;;  %vm985_vm2 = vcmask 64512  }
  0x7d   : > { %v2361_v16 = vpack.c.bf16 %v738_v15, %v737_v14  ;;  %2473 = vset.pattern.permute.xlu0 %v2658_v17  ;;  %v741_v19 = vld [vmem:[%s3222_s8 + $0x8] sm:$0xff]  ;;  %v742_v20 = vld [vmem:[%s3222_s8 + $0x10] sm:$0xff]  ;;  %v743_v22 = vld [vmem:[%s3222_s8 + $0x18] sm:$0xff]  ;;  %s2660_s21 = smov 120   ;;  %s3280_s4 = sld [smem:[#allocation22_spill]]  ;;  %vm1080_vm4 = vcmask 1043456  }
  0x7e   : > { %s2929_s30 = sshll.u32 %s2923_s23, 2  ;;  %v2364_v21 = vpack.c.bf16 %v741_v19, %v740_v18  ;;  %v2367_v23 = vpack.c.bf16 %v743_v22, %v742_v20  ;;  %v2153_v26 = vld [vmem:[%s3221_s7] ss:$0 sm:$0xff]  ;;  %s2661_s27 = smov 104   ;;  %v724_v46 = vshrl.u32 %v723_v44, 7  ;;  %vm1064_vm9 = vcmask 27648  }
  0x7f   : > { %v2151_v30 = vld [vmem:[%s3219_s5] ss:$0 sm:$0xff]  ;;  %s3281_s28 = sld [smem:[#allocation23_spill]]  ;;  %vm1076_vm10 = vcmask 31744   ;;  %v747_v51 = vld [vmem:[%s3224_s10 + $0x10] sm:$0xff]  ;;  %vm1671_vm11 = vcmask 130048  }
  0x80   : > { %v730_v2 = vld [vmem:[%s3277_s29] sm:$0xff]  ;;  %v731_v3 = vld [vmem:[%s3277_s29 + $0x8] sm:$0xff]  ;;  %v732_v4 = vld [vmem:[%s3277_s29 + $0x10] sm:$0xff]  ;;  %2365 = vmatpush3.bf16.msra.mxu0 %v2364_v21  ;;  %v725_v47 = vsub.s32 0, %v724_v46  ;;  %vm1673_vm12 = vcmask 195584   ;;  %vm1757_vm13 = vcmask 257024  }
  0x81   : > { %s699_s22 = scalar_lea.vmem %s3278_s26, %s2929_s30  ;;  %s703_s18 = scalar_lea.vmem %s3279_s17, %s2929_s30  ;;  %v2352_v5 = vpack.c.bf16 %v731_v3, %v730_v2  ;;  %v733_v6 = vld [vmem:[%s3277_s29 + $0x18] sm:$0xff]  ;;  %2366 = vmatprep.subr.bf16.mxu0 %v2655_v0  ;;  %v2155_v34 = vld [vmem:[%s3223_s9] ss:$0 sm:$0xff]  ;;  %vm1894_vm14 = vcmask 523264  }
  0x82   : > { %v2355_v7 = vpack.c.bf16 %v733_v6, %v732_v4  ;;  %v2951_v8 = vld [vmem:[%s699_s22] sm:$0xf]  ;;  %s3284_s25 = sld [smem:[#allocation13_spill]] }
  0x83   : > { %2353 = vmatpush3.bf16.msra.mxu1 %v2352_v5  ;;  %v712_v9 = vld [vmem:[%s703_s18] sm:$0xf]  ;;  %s2659_s18 = smov 112   ;;  %s707_s24 = scalar_lea.vmem %s3280_s4, %s2929_s30 }
  0x84   : > { %2354 = vmatprep.subr.bf16.mxu1 %v2655_v0  ;;  %v729_v12 = vadd.f32 %v712_v9, %v2951_v8  ;;  %2368 = vmatpush3.bf16.msra.mxu0 %v2367_v23  ;;  %v713_v32 = vld [vmem:[%s707_s24] sm:$0xf]  ;;  %s2662_s24 = smov 8   ;;  %s2664_s30 = smov 24  }
  0x85   : > { %2280 = vmatprep.subr.mxu0 %v2657_v1  ;;  %vm714_vm3 = vcmp.gt.f32.partialorder %v713_v32, 0.5  ;;  %s710_s3 = scalar_lea.vmem %s3281_s28, %s2923_s23  ;;  %s3285_s28 = sld [smem:[#allocation18_spill]] }
  0x86   : > { %v717_v33 = vsel %vm714_vm3, 1, %v2658_v17  ;;  %v715_v45 = vld [vmem:[%s710_s3] sm:$0x1]  ;;  %s2184_s3 = sshll.u32 %s2792_s2, 6  ;;  %s2665_s2 = smov [#allocation8]  }
  0x87   : > { %2356 = vmatpush3.bf16.msra.mxu1 %v2355_v7  ;;  %2268 = vmatmul.mubr.msk.f32.vlgmr.msra.gmra.mrb[0].mxu0 %vm756_vm1, %v2951_v8  ;;  %vm716_vm5 = vcmp.gt.f32.partialorder %v715_v45, 0.5 }
  0x88   : > { %2357 = vmatprep.subr.bf16.mxu1 %v2655_v0  ;;  %2282 = vmatprep.mubr.msk.f32.mxu0 %vm2656_vm0, %v2657_v1  ;;  %v722_v48 = vsel %vm716_vm5, 1, %v2658_v17  ;;  %s693_s20 = sand.u32 1, %s3284_s25  }
  0x89   : > { %v726_v49 = vrot.slane %v722_v48, %v725_v47  ;;  %v745_v48 = vld [vmem:[%s3224_s10] sm:$0xff]  ;;  %s2147_s0 = sshll.u32 %s693_s20, 2  ;;  %s2001_s22 = scalar_lea.sflag [#allocation4], %s693_s20 }
  0x8a   : > { %2246 = vmatmul.mubr.msk.f32.vlgmr.msra.gmra.mrb[0].mxu1 %vm756_vm1, %v729_v12  ;;  %s695_s23 = scalar_lea.vmem [#allocation8], %s2147_s0 }
  0x8b   : > { %2359 = vmatpush3.bf16.msra.mxu1 %v2358_v13  ;;  %2256 = vmatprep.mubr.msk.f32.mxu1 %vm2656_vm0, %v2657_v1  ;;  %vm727_vm6 = vcmp.eq.s32.totalorder %v726_v49, 1  ;;  %v746_v49 = vld [vmem:[%s3224_s10 + $0x8] sm:$0xff]  ;;  %s2014_s17 = sshll.u32 %s695_s23, 4  ;;  %p3287_p10 = scmp.ne.s32.totalorder %s3285_s28, 0  ;;  %s3173_s17 = int_to_ptr.vmem [resolvable:$true] %s2014_s17 }
  0x8c   : > { %2360 = vmatprep.subr.bf16.mxu1 %v2655_v0  ;;  %s2580_s4 = scalar_lea.vmem %s3173_s17, 64 }
  0x8d   : > { %p2581_p12 = scmp.ne.s32.totalorder %s3173_s17, %s2580_s4 }
  0x8f   : > { %2362 = vmatpush3.bf16.msra.mxu1 %v2361_v16  ;;  %p2582_p2 = pnand %p2581_p12, %p3287_p10 }
  0x90   : > { %2270 = vmatprep.subr.mxu1 %v2657_v1 }
  0x91   : > { %p2583_p3 = pneg %p2582_p2 }
  0x92   : > { %2257 = vmatmul.mubr.msk.f32.vlgmr.msra.gmra.mrb[2].mxu1 %vm756_vm1, %v729_v12 }
  0x93   : > { %2272 = vmatprep.mubr.msk.f32.mxu1 %vm2656_vm0, %v2657_v1 }
 0x15a   : > { %v981_v35 = vpop.f32.mrb[0].mxu0 }
 0x15b   : > { %v3020_v36 = vadd.f32 %v2155_v34, %v981_v35  ;;  %v2269_v37 = vpop.f32.mrb[1].mxu0 }
 0x15d   : > { %v826_v24 = vpop.f32.mrb[0].mxu1 }
 0x15e   : > { %v2247_v25 = vpop.f32.mrb[1].mxu1  ;;  %v827_v31 = vadd.f32 %v2151_v30, %v826_v24 }
 0x165   : > { %v902_v27 = vpop.f32.mrb[2].mxu1 }
 0x166   : > { %v903_v28 = vadd.f32 %v2153_v26, %v902_v27  ;;  %v2258_v29 = vpop.f32.mrb[3].mxu1 }
 0x168   : > { %1324 = vrot.lane.b32.xlu1 %v903_v28, %s2659_s18  ;;  %1156 = vrot.lane.b32.xlu0 %v903_v28, %s2660_s21 }
 0x169   : > { %2271 = vmatpush3.xpose.msk.msra.mxu1 %vm985_vm2, %v903_v28 }
 0x16a   : > { %2275 = vmatprep.subr.mxu1 %v2657_v1 }
 0x16c   : > { %2273 = vmatmul.mubr.msk.f32.vlgmr.msra.gmra.mrb[4].mxu1 %vm985_vm2, %v827_v31  ;;  %1322 = vrot.lane.b32.xlu1 %v827_v31, %s2659_s18 }
 0x16d   : > { %1154 = vrot.lane.b32.xlu0 %v827_v31, %s2660_s21  ;;  %2277 = vmatprep.mubr.msk.f32.mxu1 %vm2656_vm0, %v2657_v1 }
 0x16e   : > { %2276 = vmatpush3.msk.msra.mxu1 %vm1080_vm4, %v3020_v36 }
 0x16f   : > { %2285 = vmatprep.subr.mxu1 %v2657_v1 }
 0x170   : > { %1490 = vrot.lane.b32.xlu1 %v827_v31, %s2661_s27 }
 0x171   : > { %1492 = vrot.lane.b32.xlu0 %v903_v28, %s2661_s27 }
 0x175   : > { %719 = vperm.xlu0 %2473, %v717_v33  }
 0x1da   : > { %v1157_v38 = vpop.permute.xlu0 %1156  ;;  %v1325_v39 = vpop.permute.xlu1 %1324 }
 0x1db   : > { %2281 = vmatpush3.xpose.msk.msra.mxu0 %vm985_vm2, %v1157_v38 }
 0x1dc   : > { %2290 = vmatprep.subr.mxu0 %v2657_v1 }
 0x1de   : > { %v1323_v41 = vpop.permute.xlu1 %1322 }
 0x1df   : > { %v1155_v40 = vpop.permute.xlu0 %1154 }
 0x1e0   : > { %2283 = vmatmul.mubr.msk.f32.vlgmr.msra.gmra.mrb[2].mxu0 %vm985_vm2, %v1155_v40 }
 0x1e1   : > { %2291 = vmatpush3.xpose.msk.msra.mxu0 %vm985_vm2, %v1325_v39  ;;  %2292 = vmatprep.mubr.msk.f32.mxu0 %vm2656_vm0, %v2657_v1 }
 0x1e2   : > { %2300 = vmatprep.subr.mxu0 %v2657_v1  ;;  %v1491_v43 = vpop.permute.xlu1 %1490 }
 0x1e3   : > { %v1493_v42 = vpop.permute.xlu0 %1492 }
 0x1e4   : > { %2293 = vmatmul.mubr.msk.f32.vlgmr.msra.gmra.mrb[4].mxu0 %vm985_vm2, %v1323_v41 }
 0x1e5   : > { %2301 = vmatpush3.xpose.msk.msra.mxu0 %vm985_vm2, %v1493_v42  ;;  %2302 = vmatprep.mubr.msk.f32.mxu0 %vm2656_vm0, %v2657_v1 }
 0x1e6   : > { %2369 = vmatprep.subr.bf16.mxu0 %v2655_v0 }
 0x1e8   : > { %2303 = vmatmul.mubr.msk.f32.vlgmr.msra.gmra.mrb[6].mxu0 %vm985_vm2, %v1491_v43 }
 0x1e9   : > { %2318 = vmatprep.mubr.msk.f32.mxu0 %vm2656_vm0, %v2657_v1 }
 0x1f4   : > { %v720_v50 = vpop.permute.xlu0 %719 }
 0x1f5   : > { %vm721_vm7 = vcmp.eq.s32.totalorder %v720_v50, 1  ;;  %v2370_v50 = vpack.c.bf16 %v746_v49, %v745_v48 }
 0x1f6   : > { %vm3045_vm8 = vmand %vm721_vm7, %vm727_vm6 }
 0x1f7   : > { %2371 = vmatpush3.bf16.msra.mxu0 %v2370_v50 }
 0x1f8   : > { %2372 = vmatprep.subr.bf16.mxu0 %v2655_v0 }
 0x23f   : > { %v1058_v52 = vpop.f32.mrb[4].mxu1 }
 0x240   : > { %v1062_v53 = vmul.f32 0.35355338, %v1058_v52  ;;  %v2274_v54 = vpop.f32.mrb[5].mxu1  ;;  %v748_v52 = vld [vmem:[%s3224_s10 + $0x18] sm:$0xff] }
 0x242   : > { %v1063_v55 = vsel %vm3045_vm8, -1e+09, %v1062_v53  ;;  %v2373_v53 = vpack.c.bf16 %v748_v52, %v747_v51 }
 0x243   : > { %v1065_v56 = vsel %vm1064_vm9, %v1063_v55, -inf }
 0x244   : > { %1066 = vmax.xlane.f32.xlu1 %v1065_v56  ;;  %2374 = vmatpush3.bf16.msra.mxu0 %v2373_v53 }
 0x245   : > { %2381 = vmatprep.subr.bf16.mxu0 %v2655_v0 }
 0x2b3   : > { %v1228_v57 = vpop.f32.mrb[2].mxu0 }
 0x2b4   : > { %v1232_v58 = vmul.f32 0.35355338, %v1228_v57  ;;  %v2284_v59 = vpop.f32.mrb[3].mxu0 }
 0x2b6   : > { %v1233_v60 = vsel %vm3045_vm8, -1e+09, %v1232_v58 }
 0x2b7   : > { %v1396_v61 = vpop.f32.mrb[4].mxu0  ;;  %v1234_v62 = vsel %vm1064_vm9, %v1233_v60, -inf }
 0x2b8   : > { %v1400_v63 = vmul.f32 0.35355338, %v1396_v61  ;;  %v2294_v2 = vpop.f32.mrb[5].mxu0  ;;  %1235 = vmax.xlane.f32.xlu0 %v1234_v62 }
 0x2ba   : > { %v1401_v3 = vsel %vm3045_vm8, -1e+09, %v1400_v63 }
 0x2bb   : > { %v1564_v4 = vpop.f32.mrb[6].mxu0  ;;  %v1402_v5 = vsel %vm1064_vm9, %v1401_v3, -inf }
 0x2bc   : > { %v1568_v6 = vmul.f32 0.35355338, %v1564_v4  ;;  %v2304_v7 = vpop.f32.mrb[7].mxu0  ;;  %1403 = vmax.xlane.f32.xlu1 %v1402_v5  ;;  %v2173_v4 = vld [vmem:[%s3225_s11] ss:$0 sm:$0xff] }
 0x2be   : > { %v1569_v9 = vsel %vm3045_vm8, -1e+09, %v1568_v6 }
 0x2bf   : > { %v1570_v10 = vsel %vm1064_vm9, %v1569_v9, -inf }
 0x2c0   : > { %1571 = vmax.xlane.f32.xlu0 %v1570_v10 }
 0x2cd   : > { %1245 = vrot.lane.b32.xlu1 %v3020_v36, %s2660_s21  ;;  %s3286_s21 = sld [smem:[#allocation27_spill]] }
 0x2d1   : > { %v1067_v11 = vpop.xlane.xlu1 %1066 }
 0x2d2   : > { %v1068_v12 = vsub.f32 %v1063_v55, %v1067_v11 }
 0x2d3   : > { %s3171_s26 = scalar_lea.hbm %s3286_s21, %s2184_s3 }
 0x2d4   : > { %v1069_v13 = vmul.f32 1.442695, %v1068_v12 }
 0x2d6   : > { %2474 = vpow2.f32 %v1069_v13 }
 0x2e0   : > { %v2475_v14 = vpop.eup %2474 }
 0x2e1   : > { %v1071_v15 = vsel %vm1064_vm9, %v2475_v14, 0.0 }
 0x2f1   : > { %1072 = vadd.xlane.f32.xlu1 %v1071_v15 }
 0x345   : > { %v1236_v16 = vpop.xlane.xlu0 %1235 }
 0x346   : > { %v1237_v17 = vsub.f32 %v1233_v60, %v1236_v16  ;;  %v1787_v16 = vld [vmem:[%s3228_s14 + $0x8] sm:$0xff] }
 0x348   : > { %v1238_v18 = vmul.f32 1.442695, %v1237_v17 }
 0x349   : > { %v1404_v19 = vpop.xlane.xlu1 %1403 }
 0x34a   : > { %2476 = vpow2.f32 %v1238_v18  ;;  %v1405_v20 = vsub.f32 %v1401_v3, %v1404_v19  ;;  %v1788_v18 = vld [vmem:[%s3228_s14 + $0x10] sm:$0xff]  ;;  %v1789_v19 = vld [vmem:[%s3228_s14 + $0x18] sm:$0xff] }
 0x34c   : > { %v1406_v21 = vmul.f32 1.442695, %v1405_v20  ;;  %v2379_v20 = vpack.c.bf16 %v1789_v19, %v1788_v18 }
 0x34d   : > { %v1572_v22 = vpop.xlane.xlu0 %1571  ;;  %v1246_v31 = vpop.permute.xlu1 %1245 }
 0x34e   : > { %2478 = vpow2.f32 %v1406_v21  ;;  %v1573_v23 = vsub.f32 %v1569_v9, %v1572_v22 }
 0x350   : > { %v1574_v24 = vmul.f32 1.442695, %v1573_v23 }
 0x352   : > { %2480 = vpow2.f32 %v1574_v24 }
 0x354   : > { %v2477_v25 = vpop.eup %2476 }
 0x355   : > { %v1240_v26 = vsel %vm1064_vm9, %v2477_v25, 0.0 }
 0x356   : > { %1241 = vadd.xlane.f32.xlu0 %v1240_v26 }
 0x358   : > { %v2479_v27 = vpop.eup %2478 }
 0x359   : > { %v1408_v28 = vsel %vm1064_vm9, %v2479_v27, 0.0 }
 0x35a   : > { %1409 = vadd.xlane.f32.xlu1 %v1408_v28 }
 0x35c   : > { %v2481_v29 = vpop.eup %2480 }
 0x35d   : > { %v1576_v30 = vsel %vm1064_vm9, %v2481_v29, 0.0 }
 0x35e   : > { %1577 = vadd.xlane.f32.xlu0 %v1576_v30  ;;  %v1791_v30 = vld [vmem:[%s3230_s16] sm:$0xff] }
 0x36b   : > { %1581 = vrot.lane.b32.xlu1 %v3020_v36, %s2661_s27  ;;  %s2663_s27 = smov 16  }
 0x374   : > { %1413 = vrot.lane.b32.xlu0 %v3020_v36, %s2659_s18 }
 0x37e   : > { %v1073_v32 = vpop.xlane.xlu1 %1072 }
 0x37f   : > { %2482 = vrcp.f32 %v1073_v32 }
 0x389   : > { %v2483_v33 = vpop.eup %2482 }
 0x38a   : > { %v1075_v34 = vmul.f32 %v2483_v33, %v2475_v14  ;;  %v1793_v33 = vld [vmem:[%s3230_s16 + $0x10] sm:$0xff] }
 0x38c   : > { %2278 = vmatmul.mubr.msk.f32.vlgmr.msra.gmra.mrb[6].mxu1 %vm1076_vm10, %v1075_v34  ;;  %v1794_v34 = vld [vmem:[%s3230_s16 + $0x18] sm:$0xff] }
 0x38d   : > { %2286 = vmatpush3.msk.msra.mxu1 %vm1080_vm4, %v1246_v31  ;;  %2287 = vmatprep.mubr.msk.f32.mxu1 %vm2656_vm0, %v2657_v1  ;;  %v1792_v31 = vld [vmem:[%s3230_s16 + $0x8] sm:$0xff] }
 0x38e   : > { %2295 = vmatprep.subr.mxu1 %v2657_v1  ;;  %v2382_v32 = vpack.c.bf16 %v1792_v31, %v1791_v30 }
 0x3e3   : > { %v1242_v35 = vpop.xlane.xlu0 %1241 }
 0x3e4   : > { %2484 = vrcp.f32 %v1242_v35  ;;  %v2385_v35 = vpack.c.bf16 %v1794_v34, %v1793_v33 }
 0x3e7   : > { %v1410_v37 = vpop.xlane.xlu1 %1409 }
 0x3e8   : > { %2486 = vrcp.f32 %v1410_v37  ;;  %v1795_v37 = vld [vmem:[%s3230_s16 + $0x20] sm:$0xff] }
 0x3eb   : > { %v1578_v36 = vpop.xlane.xlu0 %1577  ;;  %v1582_v43 = vpop.permute.xlu1 %1581 }
 0x3ec   : > { %2488 = vrcp.f32 %v1578_v36  ;;  %v1796_v36 = vld [vmem:[%s3230_s16 + $0x28] sm:$0xff] }
 0x3ee   : > { %v2485_v38 = vpop.eup %2484 }
 0x3ef   : > { %v1244_v39 = vmul.f32 %v2485_v38, %v2477_v25  ;;  %v1414_v40 = vpop.permute.xlu0 %1413  ;;  %v2175_v25 = vld [vmem:[%s3226_s12] ss:$0 sm:$0xff]  ;;  %v2388_v38 = vpack.c.bf16 %v1796_v36, %v1795_v37 }
 0x3f1   : > { %2288 = vmatmul.mubr.msk.f32.vlgmr.msra.gmra.mrb[8].mxu1 %vm1076_vm10, %v1244_v39  ;;  %v1797_v39 = vld [vmem:[%s3230_s16 + $0x30] sm:$0xff] }
 0x3f2   : > { %v2487_v41 = vpop.eup %2486  ;;  %2296 = vmatpush3.msk.msra.mxu1 %vm1080_vm4, %v1414_v40  ;;  %2297 = vmatprep.mubr.msk.f32.mxu1 %vm2656_vm0, %v2657_v1  ;;  %v1798_v40 = vld [vmem:[%s3230_s16 + $0x38] sm:$0xff] }
 0x3f3   : > { %v1412_v42 = vmul.f32 %v2487_v41, %v2479_v27  ;;  %2305 = vmatprep.subr.mxu1 %v2657_v1  ;;  %v2176_v27 = vld [vmem:[%s3227_s13] ss:$0 sm:$0xff]  ;;  %v2391_v41 = vpack.c.bf16 %v1798_v40, %v1797_v39 }
 0x3f5   : > { %2298 = vmatmul.mubr.msk.f32.vlgmr.msra.gmra.mrb[10].mxu1 %vm1076_vm10, %v1412_v42  ;;  %v2177_v42 = vld [vmem:[%s3229_s15] ss:$0 sm:$0xff] }
 0x3f6   : > { %v2489_v44 = vpop.eup %2488  ;;  %2306 = vmatpush3.msk.msra.mxu1 %vm1080_vm4, %v1582_v43  ;;  %2307 = vmatprep.mubr.msk.f32.mxu1 %vm2656_vm0, %v2657_v1 }
 0x3f7   : > { %v1580_v45 = vmul.f32 %v2489_v44, %v2481_v29  ;;  %2375 = vmatprep.subr.bf16.mxu1 %v2655_v0 }
 0x3f9   : > { %2308 = vmatmul.mubr.msk.f32.vlgmr.msra.gmra.mrb[12].mxu1 %vm1076_vm10, %v1580_v45 }
 0x3fa   : > { %2329 = vmatprep.mubr.msk.f32.mxu1 %vm2656_vm0, %v2657_v1 }
 0x45f   : > { %v1150_v46 = vpop.f32.mrb[6].mxu1 }
 0x460   : > { %v2279_v47 = vpop.f32.mrb[7].mxu1 }
 0x4c4   : > { %v1318_v54 = vpop.f32.mrb[8].mxu1 }
 0x4c5   : > { %1659 = vrot.lane.b32.xlu1 %v1318_v54, %s2662_s24  ;;  %v2289_v55 = vpop.f32.mrb[9].mxu1  ;;  %v2179_v54 = vld [vmem:[#allocation2] ss:$0 sm:$0xff]  ;;  %s2584_s24 = sshll.u32 %s2665_s2, 4  ;;  %s2585_s24 = int_to_ptr.vmem [resolvable:$false] %s2584_s24 }
 0x4c6   : > { %p2587_p4 = scmp.lt.s32.totalorder %s3173_s17, %s2585_s24 }
 0x4c8   : > { %v1486_v56 = vpop.f32.mrb[10].mxu1 }
 0x4c9   : > { %1663 = vrot.lane.b32.xlu0 %v1486_v56, %s2663_s27  ;;  %v2299_v57 = vpop.f32.mrb[11].mxu1  ;;  %s2586_s27 = scalar_lea.vmem %s2585_s24, 128 }
 0x4ca   : > { %p2588_p7 = scmp.lt.s32.totalorder %s2586_s27, %s2580_s4 }
 0x4cc   : > { %v1654_v58 = vpop.f32.mrb[12].mxu1  ;;  %p2589_p8 = por %p2588_p7, %p2587_p4 }
 0x4cd   : > { %1667 = vrot.lane.b32.xlu1 %v1654_v58, %s2664_s30  ;;  %v2309_v59 = vpop.f32.mrb[13].mxu1 }
 0x4ce   : > { %p2590_p11 = pnand %p2589_p8, %p2583_p3 }
 0x537   : > { %v1660_v60 = vpop.permute.xlu1 %1659 }
 0x538   : > { %v1670_v62 = vsel %vm985_vm2, %v1150_v46, %v1660_v60 }
 0x53b   : > { %v1664_v61 = vpop.permute.xlu0 %1663 }
 0x53c   : > { %v1672_v63 = vsel %vm1671_vm11, %v1670_v62, %v1664_v61 }
 0x53f   : > { %v1668_v2 = vpop.permute.xlu1 %1667 }
 0x540   : > { %v1674_v3 = vsel %vm1673_vm12, %v1672_v63, %v1668_v2 }
 0x541   : > { %2319 = vmatmul.mubr.msk.f32.vlgmr.msra.gmra.mrb[8].mxu0 %vm756_vm1, %v1674_v3 }
 0x542   : > { %2348 = vmatprep.mubr.msk.f32.mxu0 %vm2656_vm0, %v2657_v1  ;;  %v1786_v1 = vld [vmem:[%s3228_s14] sm:$0xff]  ;;  %2383 = vmatpush3.bf16.msra.mxu0 %v2382_v32 }
 0x543   : > { %v2376_v17 = vpack.c.bf16 %v1787_v16, %v1786_v1  ;;  %2384 = vmatprep.subr.bf16.mxu0 %v2655_v0 }
 0x545   : > { %2377 = vmatpush3.bf16.msra.mxu1 %v2376_v17 }
 0x546   : > { %2378 = vmatprep.subr.bf16.mxu1 %v2655_v0  ;;  %2386 = vmatpush3.bf16.msra.mxu0 %v2385_v35 }
 0x547   : > { %2387 = vmatprep.subr.bf16.mxu0 %v2655_v0 }
 0x549   : > { %2380 = vmatpush3.bf16.msra.mxu1 %v2379_v20 }
 0x54a   : > { %2389 = vmatpush3.bf16.msra.mxu0 %v2388_v38 }
 0x54b   : > { %2390 = vmatprep.subr.bf16.mxu0 %v2655_v0 }
 0x54e   : > { %2392 = vmatpush3.bf16.msra.mxu0 %v2391_v41 }
 0x614   : > { %v1750_v5 = vpop.f32.mrb[8].mxu0 }
 0x615   : > { %v1751_v6 = vadd.f32 %v2173_v4, %v1750_v5  ;;  %v2320_v7 = vpop.f32.mrb[9].mxu0 }
 0x616   : > { %v2181_v7 = vld [vmem:[#allocation5] ss:$0 sm:$0xff] }
 0x617   : > { %v1756_v9 = vadd.f32 %v1751_v6, %v2951_v8 }
 0x619   : > { %v1758_v10 = vsel %vm1757_vm13, %v1756_v9, 0.0 }
 0x61a   : > { %1759 = vadd.xlane.f32.xlu0 %v1758_v10  ;;  %v2182_v10 = vld [vmem:[#allocation7] ss:$0 sm:$0xff] }
 0x6a7   : > { %v1760_v11 = vpop.xlane.xlu0 %1759 }
 0x6a8   : > { %v1762_v12 = vmul.f32 0.03125, %v1760_v11 }
 0x6aa   : > { %v1763_v13 = vsub.f32 %v1756_v9, %v1762_v12 }
 0x6ac   : > { %v1764_v14 = vmul.f32 %v1763_v13, %v1763_v13 }
 0x6ae   : > { %v1765_v15 = vsel %vm1757_vm13, %v1764_v14, 0.0 }
 0x6af   : > { %1766 = vadd.xlane.f32.xlu1 %v1765_v15 }
 0x73c   : > { %v1767_v21 = vpop.xlane.xlu1 %1766 }
 0x73d   : > { %v1768_v22 = vmul.f32 0.03125, %v1767_v21 }
 0x73f   : > { %v1769_v23 = vadd.f32 1e-05, %v1768_v22 }
 0x741   : > { %2490 = vrsqrt.f32 %v1769_v23 }
 0x74b   : > { %v2491_v24 = vpop.eup %2490 }
 0x74c   : > { %v1771_v26 = vmul.f32 %v2491_v24, %v1763_v13 }
 0x74e   : > { %v1778_v28 = vmul.f32 %v2175_v25, %v1771_v26 }
 0x750   : > { %v1785_v29 = vadd.f32 %v2176_v27, %v1778_v28 }
 0x752   : > { %2330 = vmatmul.mubr.msk.f32.vlgmr.msra.gmra.mrb[14].mxu1 %vm756_vm1, %v1785_v29 }
 0x825   : > { %v1875_v43 = vpop.f32.mrb[14].mxu1 }
 0x826   : > { %v1876_v44 = vadd.f32 %v2177_v42, %v1875_v43  ;;  %v2331_v45 = vpop.f32.mrb[15].mxu1 }
 0x828   : > { %v1879_v46 = vmul.f32 %v1876_v44, %v1876_v44 }
 0x82a   : > { %v1880_v47 = vmul.f32 %v1879_v46, %v1876_v44 }
 0x82c   : > { %v1881_v0 = vmul.f32 0.044715, %v1880_v47 }
 0x82e   : > { %v1882_v48 = vadd.f32 %v1881_v0, %v1876_v44 }
 0x830   : > { %v1883_v49 = vmul.f32 0.7978846, %v1882_v48 }
 0x832   : > { %2492 = vtanh.f32 %v1883_v49 }
 0x83c   : > { %v2493_v50 = vpop.eup %2492 }
 0x83d   : > { %v1885_v51 = vadd.f32 1.0, %v2493_v50 }
 0x83f   : > { %v1886_v52 = vmul.f32 0.5, %v1885_v51 }
 0x841   : > { %v1887_v53 = vmul.f32 %v1886_v52, %v1876_v44 }
 0x843   : > { %2349 = vmatmul.mubr.msk.f32.vlgmr.msra.gmra.mrb[10].mxu0 %vm1894_vm14, %v1887_v53 }
 0x916   : > { %v1964_v55 = vpop.f32.mrb[10].mxu0 }
 0x917   : > { %v1965_v56 = vadd.f32 %v2179_v54, %v1964_v55  ;;  %v2350_v57 = vpop.f32.mrb[11].mxu0 }
 0x919   : > { %v1970_v58 = vadd.f32 %v1965_v56, %v1785_v29 }
 0x91b   : > { %v1971_v59 = vsel %vm1757_vm13, %v1970_v58, 0.0 }
 0x91c   : > { %1972 = vadd.xlane.f32.xlu0 %v1971_v59 }
 0x9a9   : > { %v1973_v60 = vpop.xlane.xlu0 %1972 }
 0x9aa   : > { %v1974_v61 = vmul.f32 0.03125, %v1973_v60 }
 0x9ac   : > { %v1975_v62 = vsub.f32 %v1970_v58, %v1974_v61 }
 0x9ae   : > { %v1976_v63 = vmul.f32 %v1975_v62, %v1975_v62 }
 0x9b0   : > { %v1977_v2 = vsel %vm1757_vm13, %v1976_v63, 0.0 }
 0x9b1   : > { %1978 = vadd.xlane.f32.xlu0 %v1977_v2 }
 0xa3e   : > { %v1979_v3 = vpop.xlane.xlu0 %1978 }
 0xa3f   : > { %v1980_v4 = vmul.f32 0.03125, %v1979_v3 }
 0xa41   : > { %v1981_v5 = vadd.f32 1e-05, %v1980_v4 }
 0xa43   : > { %2494 = vrsqrt.f32 %v1981_v5 }
 0xa4d   : > { %v2495_v6 = vpop.eup %2494 }
 0xa4e   : > { %v1983_v9 = vmul.f32 %v2495_v6, %v1975_v62 }
 0xa50   : > { %v1990_v11 = vmul.f32 %v2181_v7, %v1983_v9 }
 0xa52   : > { %v1997_v12 = vadd.f32 %v2182_v10, %v1990_v11 }
 0xa54   : > { %v1998_v13 = vadd.f32 %v1997_v12, %v2951_v8 }
 0xa56   : > { %1999 = vst.msk [vmem:[%s695_s23] sm:$0xf] %vm1757_vm13, %v1998_v13 }
 0xa57   : > { %2593 = shalt.err (!%p2590_p11)
}
 0xa58   : > { %s2594_s30 = scalar_lea.hbm %s3171_s26, 64  ;;  %s2598_s0 = scalar_lea.hbm %s3286_s21, 128 }
 0xa59   : > { %p2595_p13 = scmp.ne.s32.totalorder %s3171_s26, %s2594_s30  ;;  %p2599_p6 = scmp.lt.u32.totalorder %s3171_s26, %s3286_s21 }
 0xa5a   : > { %p2600_p5 = scmp.lt.u32.totalorder %s2598_s0, %s2594_s30  ;;  %p2602_p12 = scmp.lt.u32.totalorder %s2594_s30, %s3171_s26 }
 0xa5b   : > { %p2596_p0 = pnand %p2595_p13, %p3287_p10 }
 0xa5c   : > { %p2601_p9 = por %p2600_p5, %p2599_p6 }
 0xa5d   : > { %p2597_p1 = pneg %p2596_p0 }
 0xa5e   : > { %p2603_p2 = por %p2602_p12, %p2601_p9 }
 0xa60   : > { %p2604_p3 = pnand %p2603_p2, %p2597_p1 }
 0xa62   : > { %2607 = shalt.err (!%p2604_p3)
}
 0xa63   : > { %2405 = dma.vmem_to_hbm [thread:$0]  (%p3287_p10), %s3173_s17, 64, %s3171_s26, %s2001_s22  }
 0xa64 PF: > { %s3288_s1 = sld [smem:[#allocation15_spill]]  ;;  %s3289_s18 = sld [smem:[#allocation12_spill]] }
 0xa65   : > { %s3290_s4 = sld [smem:[#allocation19_spill]] }
 0xa6a   : > { %p2427_p4 = scmp.ge.s32.totalorder %s3288_s1, 2  ;;  %s2026_s2 = sand.u32 1, %s3289_s18  }
 0xa6b   : > { %p3291_p7 = scmp.ne.s32.totalorder %s3290_s4, 0  ;;  %s2027_s24 = scalar_lea.sflag [#allocation4], %s2026_s2 }
 0xa6d   : > { %p2418_p8 = pnand %p2427_p4, %p3291_p7 }
 0xa6f   : > { %2633 = dma.done.wait (!%p2418_p8), %s2027_s24, 64  }
 0xa70   : > { %2635 = vsyncadd (!%p2418_p8), %s2027_s24, 4294967232  ;;  %s3292_s24 = sld [smem:[#allocation16_spill]]  ;;  %s3293_s1 = sld [smem:[#allocation13_spill]] }
 0xa71   : > { %s3294_s22 = sld [smem:[#allocation14_spill]]  ;;  %s3295_s23 = sld [smem:[#allocation17_spill]] }
 0xa76   : > { %p32_p11 = scmp.ge.s32.totalorder %s3292_s24, 4  }
 0xa78   :  { %34 = sbr.rel (!%p32_p11) target bundleno = 14 (0xe), region = 157 }
 0xa7f   :  { %2032 = vsyncpa [#allocation3], 1 }
 0xa80   :  { %2034 = vsyncpa [#allocation3 + $0x1], 1 }
 0xa81   :  { %2035 = vsyncpa [#allocation6], 1 }
 0xa82   :  { %2036 = vsyncpa [#allocation4], 1 }
 0xa83   :  { %2038 = vsyncpa [#allocation4 + $0x1], 1 }

// kernel: ainteraction_forward.2
= control target key start
LH: loop header
LB: loop body
LE: loop exit
PB: predicated region body
PF: predicated region fallthrough
CT: control target
= control target key end

     0   :  { %s4465_s6 = smov 1   ;;  %s4466_s10 = smov 2   ;;  %s5065_s0 = inlined_call_operand.smem [shape: u32[34], index: -1, kind: input, shape index: {}] }
   0x1   :  { %s4516_s5 = sld [smem:[%s5065_s0]]   ;;  %s4467_s14 = smov 3  }
   0x2   :  { %s4521_s9 = sld [smem:[%s5065_s0 + %s4465_s6]]   ;;  %s4468_s18 = smov 4  }
   0x3   :  { %s4526_s13 = sld [smem:[%s5065_s0 + %s4466_s10]]   ;;  %s4469_s22 = smov 5  }
   0x4   :  { %s4531_s17 = sld [smem:[%s5065_s0 + %s4467_s14]]   ;;  %s4470_s26 = smov 6  }
   0x5   :  { %s4536_s21 = sld [smem:[%s5065_s0 + %s4468_s18]]   ;;  %s4471_s30 = smov 7  }
   0x6   :  { %s4541_s25 = sld [smem:[%s5065_s0 + %s4469_s22]]   ;;  %s4472_s4 = smov 8  }
   0x7   :  { %s4546_s29 = sld [smem:[%s5065_s0 + %s4470_s26]]   ;;  %s4473_s10 = smov 9  }
   0x8   :  { %5085 = sst [smem:[#allocation5_spill]] %s4521_s9  ;;  %s4474_s15 = smov 10  }
   0x9   :  { %5086 = sst [smem:[#allocation6_spill]] %s4526_s13  ;;  %s4475_s20 = smov 11  }
   0xa   :  { %s4551_s3 = sld [smem:[%s5065_s0 + %s4471_s30]]   ;;  %s4476_s26 = smov 12  }
   0xb   :  { %s4556_s8 = sld [smem:[%s5065_s0 + %s4472_s4]]   ;;  %s4477_s1 = smov 13  }
   0xc   :  { %s4561_s14 = sld [smem:[%s5065_s0 + %s4473_s10]]   ;;  %s4478_s7 = smov 14  }
   0xd   :  { %s4566_s19 = sld [smem:[%s5065_s0 + %s4474_s15]]   ;;  %s4479_s15 = smov 15  }
   0xe   :  { %s4571_s24 = sld [smem:[%s5065_s0 + %s4475_s20]]   ;;  %s4480_s22 = smov 16  }
   0xf   :  { %s4576_s30 = sld [smem:[%s5065_s0 + %s4476_s26]]   ;;  %s4481_s28 = smov 17  }
  0x10   :  { %5087 = sst [smem:[#allocation7_spill]] %s4551_s3 }
  0x11   :  { %5088 = sst [smem:[#allocation8_spill]] %s4556_s8 }
  0x12   :  { %s4581_s6 = sld [smem:[%s5065_s0 + %s4477_s1]]  }
  0x13   :  { %s4586_s12 = sld [smem:[%s5065_s0 + %s4478_s7]]   ;;  %s4482_s7 = smov 18  }
  0x14   :  { %s4591_s20 = sld [smem:[%s5065_s0 + %s4479_s15]]   ;;  %s4483_s15 = smov 19  }
  0x15   :  { %s4596_s27 = sld [smem:[%s5065_s0 + %s4480_s22]]   ;;  %s4484_s22 = smov 20  }
  0x16   :  { %s4601_s4 = sld [smem:[%s5065_s0 + %s4481_s28]]   ;;  %s4485_s28 = smov 21  }
  0x18   :  { %5089 = sst [smem:[#allocation9_spill]] %s4581_s6 }
  0x19   :  { %5090 = sst [smem:[#allocation10_spill]] %s4586_s12 }
  0x1a   :  { %5091 = sst [smem:[#allocation11_spill]] %s4591_s20 }
  0x1b   :  { %5092 = sst [smem:[#allocation12_spill]] %s4596_s27 }
  0x1c   :  { %5093 = sst [smem:[#allocation13_spill]] %s4601_s4 }
  0x1d   :  { %s4606_s12 = sld [smem:[%s5065_s0 + %s4482_s7]]   ;;  %s4486_s7 = smov 22  }
  0x1e   :  { %s4611_s20 = sld [smem:[%s5065_s0 + %s4483_s15]]   ;;  %s4487_s15 = smov 23  }
  0x1f   :  { %s4616_s27 = sld [smem:[%s5065_s0 + %s4484_s22]]   ;;  %s4488_s22 = smov 24  }
  0x20   :  { %s4621_s4 = sld [smem:[%s5065_s0 + %s4485_s28]]   ;;  %s4489_s28 = smov 25  }
  0x23   :  { %5094 = sst [smem:[#allocation14_spill]] %s4606_s12 }
  0x24   :  { %5095 = sst [smem:[#allocation15_spill]] %s4611_s20 }
  0x25   :  { %5096 = sst [smem:[#allocation16_spill]] %s4616_s27 }
  0x26   :  { %5097 = sst [smem:[#allocation17_spill]] %s4621_s4 }
  0x27   :  { %s4626_s12 = sld [smem:[%s5065_s0 + %s4486_s7]]   ;;  %s4490_s7 = smov 26  }
  0x28   :  { %s4631_s20 = sld [smem:[%s5065_s0 + %s4487_s15]]   ;;  %s4491_s15 = smov 27  }
  0x29   :  { %s4636_s27 = sld [smem:[%s5065_s0 + %s4488_s22]]   ;;  %s4492_s22 = smov 28  }
  0x2a   :  { %s4641_s4 = sld [smem:[%s5065_s0 + %s4489_s28]]   ;;  %s4493_s28 = smov 29  }
  0x2b   :  { %s4646_s16 = sld [smem:[%s5065_s0 + %s4490_s7]]   ;;  %s4494_s7 = smov 30  }
  0x2c   :  { %s4651_s23 = sld [smem:[%s5065_s0 + %s4491_s15]]  }
  0x2d   :  { %5098 = sst [smem:[#allocation18_spill]] %s4626_s12 }
  0x2e   :  { %5099 = sst [smem:[#allocation19_spill]] %s4631_s20  ;;  %s4495_s20 = smov 31  }
  0x2f   :  { %5100 = sst [smem:[#allocation20_spill]] %s4636_s27  ;;  %s4496_s27 = smov 32  }
  0x30   :  { %5101 = sst [smem:[#allocation21_spill]] %s4641_s4  ;;  %s4497_s4 = smov 33  }
  0x31   :  { %5102 = sst [smem:[#allocation22_spill]] %s4646_s16  ;;  %s72_s16 = sshll.u32 %s4516_s5, 4  ;;  %s73_s16 = int_to_ptr.vmem [resolvable:$true] %s72_s16 }
  0x32   :  { %5103 = sst [smem:[#allocation23_spill]] %s4651_s23  ;;  %p4416_p1 = scmp.lt.s32.totalorder %s73_s16, %s73_s16 }
  0x33   :  { %s4656_s1 = sld [smem:[%s5065_s0 + %s4492_s22]]  }
  0x34   :  { %s4661_s10 = sld [smem:[%s5065_s0 + %s4493_s28]]  }
  0x35   :  { %s4666_s12 = sld [smem:[%s5065_s0 + %s4494_s7]]   ;;  %s4411_s7 = scalar_lea.vmem %s73_s16, 32 }
  0x36   :  { %s4671_s23 = sld [smem:[%s5065_s0 + %s4495_s20]]   ;;  %p4412_p0 = scmp.ne.s32.totalorder %s73_s16, %s4411_s7 }
  0x37   :  { %p4417_p2 = scmp.lt.s32.totalorder %s4411_s7, %s4411_s7 }
  0x39   :  { %5104 = sst [smem:[#allocation24_spill]] %s4656_s1  ;;  %p4418_p3 = por %p4417_p2, %p4416_p1 }
  0x3a   :  { %5105 = sst [smem:[#allocation25_spill]] %s4661_s10 }
  0x3b   :  { %s4676_s1 = sld [smem:[%s5065_s0 + %s4496_s27]]   ;;  %p4419_p4 = pnand %p4418_p3, %p4412_p0 }
  0x3c   :  { %s4681_s10 = sld [smem:[%s5065_s0 + %s4497_s4]]  }
  0x3d   :  { %4422 = shalt.err (!%p4419_p4)  }
  0x3e   :  { %s4498_s11 = smov [#allocation3]  }
  0x3f   :  { %75 = dma.vmem_to_smem %s73_s16, 32, %s4498_s11, [#allocation2] }
  0x40   :  { %4443 = dma.done.wait [#allocation2], 32 }
  0x41   :  { %4444 = vsyncadd [#allocation2], 4294967264 }
  0x42   :  { %77 = sfence }
  0x43   :  { %s4684_s20 = smov 0   ;;  %s4686_s15 = smov 0  }
  0x44   :  { %s4688_s0 = smov 0   ;;  %s4690_s5 = smov 0  }
  0x45   :  { %s4692_s18 = smov 0  }
  0x46 LB: > { %s5106_s6 = sld [smem:[#allocation9_spill]]  ;;  %s5107_s3 = sld [smem:[#allocation7_spill]]  ;;  %s4451_s15 = sphi %s4686_s15, %s5139_s15   ;;  %s4447_s20 = sphi %s4684_s20, %s5138_s20   ;;  %s4463_s18 = sphi %s4692_s18, %s83_s18   ;;  %s4459_s5 = sphi %s4690_s5, %s5141_s5   ;;  %s4455_s0 = sphi %s4688_s0, %s5140_s0  }
  0x47   : > { %s92_s27 = sadd.s32 1, %s4455_s0  ;;  %s95_s22 = sadd.s32 1, %s4459_s5 }
  0x48   : > { %p93_p5 = scmp.ge.s32.totalorder %s92_s27, 4  ;;  %p3741_p6 = scmp.ge.s32.totalorder %s4463_s18, 1 }
  0x49   : > { %p957_p7 = scmp.lt.s32.totalorder %s4463_s18, 9 }
  0x4a   : > { %s5143_s27 = smov (%p93_p5, %s92_s27), 0  ;;  %s5145_s22 = smov (!%p93_p5, %s95_s22), %s4459_s5 }
  0x4b   : > { %p958_p8 = pnand %p3741_p6, %p957_p7  ;;  %p97_p9 = scmp.ge.s32.totalorder %s5145_s22, 2 }
  0x4c   : > { %v1112_v0 = vld [vmem:[%s4541_s25] sm:$0xff] (!%p958_p8)  ;;  %v1113_v1 = vld [vmem:[%s4541_s25 + $0x8] sm:$0xff] (!%p958_p8)  ;;  %v1114_v2 = vld [vmem:[%s4541_s25 + $0x10] sm:$0xff] (!%p958_p8)  ;;  %v4499_v3 = vmov (!%p958_p8), 0.0|0.0   ;;  %s5108_s9 = sld [smem:[#allocation5_spill]] (!%p958_p8)  ;;  %vm4500_vm0 = vmmov (!%p958_p8), 0   ;;  %v1192_v10 = vlaneseq (!%p958_p8) }
  0x4d   : > { %s5147_s22 = smov (%p97_p9, %s5145_s22), 0  ;;  %961 = sbr.rel (%p958_p8) target bundleno = 6255 (0x186f), region = 148 }
  0x4e   : > { %4146 = vmatprep.subr.bf16.mxu1 (!%p958_p8), %v4499_v3  ;;  %v4147_v4 = vpack.c.bf16 (!%p958_p8), %v1113_v1, %v1112_v0  ;;  %v1115_v5 = vld [vmem:[%s4541_s25 + $0x18] sm:$0xff] (!%p958_p8)  ;;  %v4501_v6 = vmov (!%p958_p8), 0.0   ;;  %p1063_p10 = scmp.lt.s32.totalorder (!%p958_p8), %s4451_s15, 1  ;;  %p1065_p11 = scmp.lt.s32.totalorder (!%p958_p8), %s4447_s20, 3  ;;  %vm1119_vm1 = vcmask (!%p958_p8), 261120   ;;  %v1193_v11 = vshrl.u32 (!%p958_p8), %v1192_v10, 7 }
  0x4f   : > { %3929 = vmatprep.mubr.msk.f32.mxu1 (!%p958_p8), %vm4500_vm0, %v4501_v6  ;;  %v4150_v7 = vpack.c.bf16 (!%p958_p8), %v1115_v5, %v1114_v2  ;;  %v1116_v12 = vld [vmem:[%s4546_s29] sm:$0x1] (!%p958_p8)  ;;  %s5109_s13 = sld [smem:[#allocation6_spill]] (!%p958_p8)  ;;  %v1222_v25 = vld [vmem:[%s5107_s3 + $0x8] sm:$0xff] (!%p958_p8)  ;;  %v1223_v27 = vld [vmem:[%s5107_s3 + $0x10] sm:$0xff] (!%p958_p8)  ;;  %s5110_s8 = sld [smem:[#allocation8_spill]] (!%p958_p8) }
  0x50   : > { %4148 = vmatpush3.bf16.msra.mxu1 (!%p958_p8), %v4147_v4  ;;  %v1194_v13 = vsub.s32 (!%p958_p8), 0, %v1193_v11  ;;  %v1221_v24 = vld [vmem:[%s5107_s3] sm:$0xff] (!%p958_p8)  ;;  %v1224_v28 = vld [vmem:[%s5107_s3 + $0x18] sm:$0xff] (!%p958_p8)  ;;  %v1232_v31 = vld [vmem:[%s4571_s24 + $0x8] sm:$0xff] (!%p958_p8)  ;;  %vm1494_vm2 = vcmask (!%p958_p8), 64512   ;;  %vm1575_vm4 = vcmask (!%p958_p8), 128000  }
  0x51   : > { %4149 = vmatprep.subr.bf16.mxu1 (!%p958_p8), %v4499_v3  ;;  %v4153_v26 = vpack.c.bf16 (!%p958_p8), %v1222_v25, %v1221_v24  ;;  %v4156_v29 = vpack.c.bf16 (!%p958_p8), %v1224_v28, %v1223_v27  ;;  %v1231_v30 = vld [vmem:[%s4571_s24] sm:$0xff] (!%p958_p8)  ;;  %v1227_v35 = vld [vmem:[%s4561_s14 + $0x8] sm:$0xff] (!%p958_p8)  ;;  %v1233_v36 = vld [vmem:[%s4571_s24 + $0x10] sm:$0xff] (!%p958_p8)  ;;  %vm1587_vm5 = vcmask (!%p958_p8), 130048   ;;  %vm2196_vm6 = vcmask (!%p958_p8), 195584   ;;  %s5120_s3 = sld [smem:[#allocation16_spill]] (!%p958_p8) }
  0x52   : > { %v1226_v32 = vld [vmem:[%s4561_s14] sm:$0xff] (!%p958_p8)  ;;  %v4166_v33 = vpack.c.bf16 (!%p958_p8), %v1232_v31, %v1231_v30  ;;  %v1234_v39 = vld [vmem:[%s4571_s24 + $0x18] sm:$0xff] (!%p958_p8)  ;;  %v1228_v41 = vld [vmem:[%s4561_s14 + $0x10] sm:$0xff] (!%p958_p8)  ;;  %vm2280_vm7 = vcmask (!%p958_p8), 259072   ;;  %vm2661_vm8 = vcmask (!%p958_p8), 1045504   ;;  %vm2645_vm10 = vcmask (!%p958_p8), 46080  }
  0x53   : > { %v4158_v38 = vpack.c.bf16 (!%p958_p8), %v1227_v35, %v1226_v32  ;;  %v4170_v40 = vpack.c.bf16 (!%p958_p8), %v1234_v39, %v1233_v36  ;;  %v1229_v42 = vld [vmem:[%s4561_s14 + $0x18] sm:$0xff] (!%p958_p8)  ;;  %v3761_v62 = vld [vmem:[%s4576_s30] ss:$0 sm:$0xff] (!%p958_p8)  ;;  %vm4790_vm3 = vmpackc.low (!%p958_p8), %vm1494_vm2, %vm1494_vm2  ;;  %vm2657_vm11 = vcmask (!%p958_p8), 48128   ;;  %vm3471_vm12 = vcmask (!%p958_p8), 523264  }
  0x54   : > { %s4728_s26 = scalar_select %p1063_p10, %s4451_s15, 1  ;;  %4151 = vmatpush3.bf16.msra.mxu1 %v4150_v7  ;;  %v4162_v43 = vpack.c.bf16 %v1229_v42, %v1228_v41  ;;  %v3758_v0 = vld [vmem:[%s4566_s19] ss:$0 sm:$0xff] }
  0x55   : > { %s1066_s4 = scalar_select %p1065_p11, %s4447_s20, 3  ;;  %4152 = vmatprep.subr.bf16.mxu1 %v4499_v3  ;;  %4159 = vmatprep.subr.bf16.mxu0 %v4158_v38 }
  0x56   : > { %s3742_s28 = sshll.u32 %s4728_s26, 2  ;;  %s3818_s11 = sshll.u32 %s4728_s26, 4  ;;  %4161 = vmatpush3.bf16.msra.mxu0 %v4158_v38 }
  0x57   : > { %s1068_s2 = sadd.s32 %s3742_s28, %s1066_s4  ;;  %s1083_s4 = scalar_lea.vmem %s4531_s17, %s3818_s11  ;;  %4163 = vmatprep.subr.bf16.mxu0 %v4162_v43 }
  0x58   : > { %s4733_s16 = sshll.u32 %s1068_s2, 3  ;;  %v1108_v17 = vld [vmem:[%s1083_s4] sm:$0xff]  ;;  %v1109_v19 = vld [vmem:[%s1083_s4 + $0x8] sm:$0xff]  ;;  %s1088_s2 = scalar_lea.vmem %s4536_s21, %s3818_s11 }
  0x59   : > { %s1070_s7 = scalar_lea.vmem %s5108_s9, %s4733_s16  ;;  %s1078_s28 = scalar_lea.vmem %s5109_s13, %s4733_s16  ;;  %v1110_v53 = vld [vmem:[%s1088_s2] sm:$0xff]  ;;  %v1111_v57 = vld [vmem:[%s1088_s2 + $0x8] sm:$0xff] }
  0x5a   : > { %v4738_v8 = vld [vmem:[%s1070_s7] sm:$0x3f]  ;;  %4165 = vmatpush3.bf16.msra.mxu0 %v4162_v43  ;;  %s5079_s26 = smov 120   ;;  %s5077_s7 = smov 112  }
  0x5b   : > { %v1118_v9 = vrot.slane %v4738_v8, 5  ;;  %v4761_v34 = vld [vmem:[%s1078_s28] sm:$0x3f]  ;;  %4174 = vmatprep.subr.bf16.mxu0 %v4499_v3  ;;  %s5075_s11 = smov 104   ;;  %s5072_s4 = smov 16  }
  0x5c   : > { %v1218_v37 = vadd.f32 %v4761_v34, %v4738_v8  ;;  %s5073_s28 = smov 8   ;;  %s5113_s2 = sld [smem:[#allocation10_spill]] }
  0x5d   : > { %3930 = vmatmul.mubr.msk.f32.vlgmr.msra.gmra.mrb[0].mxu1 %vm1119_vm1, %v1118_v9 }
  0x5e   : > { %3940 = vmatprep.mubr.msk.f32.mxu1 %vm4500_vm0, %v4501_v6  ;;  %4154 = vmatpush3.bf16.msra.mxu1 %v4153_v26 }
  0x5f   : > { %4155 = vmatprep.subr.bf16.mxu1 %v4499_v3 }
  0x62   : > { %4157 = vmatpush3.bf16.msra.mxu1 %v4156_v29 }
  0x63   : > { %4167 = vmatprep.subr.bf16.mxu1 %v4166_v33 }
  0x65   : > { %3941 = vmatmul.mubr.msk.f32.vlgmr.msra.gmra.mrb[2].mxu1 %vm1119_vm1, %v1218_v37 }
  0x66   : > { %4169 = vmatpush3.bf16.msra.mxu1 %v4166_v33 }
  0x67   : > { %4171 = vmatprep.subr.bf16.mxu1 %v4170_v40 }
  0x6a   : > { %4173 = vmatpush3.bf16.msra.mxu1 %v4170_v40 }
  0x6b   : > { %4178 = vmatprep.subr.bf16.mxu1 %v4499_v3 }
 0x130   : > { %v1188_v14 = vpop.f32.mrb[0].mxu1 }
 0x131   : > { %v1189_v15 = vadd.f32 %v1188_v14, %v1116_v12  ;;  %v3931_v16 = vpop.f32.mrb[1].mxu1 }
 0x132   : > { %v3756_v16 = vld [vmem:[%s5110_s8] ss:$0 sm:$0xff] }
 0x133   : > { %v1195_v18 = vrot.slane %v1189_v15, %v1194_v13 }
 0x135   : > { %v1196_v20 = vmul.f32 %v1195_v18, %v1108_v17  ;;  %v1197_v22 = vmul.f32 %v1195_v18, %v1109_v19 }
 0x137   : > { %v1198_v21 = vsel %vm1119_vm1, %v1196_v20, 0.0  ;;  %v1201_v23 = vsel %vm1119_vm1, %v1197_v22, 0.0 }
 0x138   : > { %1199 = vadd.xlane.f32.xlu0 %v1198_v21  ;;  %v1316_v60 = vpop.f32.mrb[2].mxu1 }
 0x139   : > { %v3942_v61 = vpop.f32.mrb[3].mxu1 }
 0x13c   : > { %1202 = vadd.xlane.f32.xlu0 %v1201_v23 }
 0x1c5   : > { %v1200_v44 = vpop.xlane.xlu0 %1199 }
 0x1c6   : > { %v3754_v45 = vmul.f32 -1.442695, %v1200_v44 }
 0x1c8   : > { %4363 = vpow2.f32 %v3754_v45 }
 0x1c9   : > { %v1203_v46 = vpop.xlane.xlu0 %1202 }
 0x1ca   : > { %v3755_v47 = vmul.f32 -1.442695, %v1203_v46 }
 0x1cc   : > { %4365 = vpow2.f32 %v3755_v47 }
 0x1d2   : > { %v4364_v48 = vpop.eup %4363 }
 0x1d3   : > { %v1210_v49 = vadd.f32 1.0, %v4364_v48 }
 0x1d5   : > { %4367 = vrcp.f32 %v1210_v49 }
 0x1d6   : > { %v4366_v50 = vpop.eup %4365 }
 0x1d7   : > { %v1211_v51 = vadd.f32 1.0, %v4366_v50 }
 0x1d9   : > { %4369 = vrcp.f32 %v1211_v51 }
 0x1df   : > { %v4368_v52 = vpop.eup %4367 }
 0x1e0   : > { %v1216_v54 = vmul.f32 %v4368_v52, %v1108_v17  ;;  %v4803_v17 = vadd.f32 %v3756_v16, %v1316_v60 }
 0x1e2   : > { %3962 = vmatprep.mubr.msk.f32.mxu1 %vm1119_vm1, %v1216_v54  ;;  %v1219_v55 = vadd.f32 %v1216_v54, %v1110_v53 }
 0x1e3   : > { %v4370_v56 = vpop.eup %4369 }
 0x1e4   : > { %v1217_v58 = vmul.f32 %v4370_v56, %v1109_v19  ;;  %3951 = vmatprep.mubr.msk.f32.mxu0 %vm1119_vm1, %v1219_v55 }
 0x1e6   : > { %v1220_v59 = vadd.f32 %v1217_v58, %v1111_v57  ;;  %3963 = vmatmul.mubr.msk.f32.vlgmr.msra.gmra.mrb[4].mxu1 %vm1119_vm1, %v1217_v58 }
 0x1e7   : > { %3976 = vmatprep.mubr.msk.f32.mxu1 %vm4500_vm0, %v4501_v6 }
 0x1e8   : > { %3952 = vmatmul.mubr.msk.f32.vlgmr.msra.gmra.mrb[0].mxu0 %vm1119_vm1, %v1220_v59 }
 0x1e9   : > { %3969 = vmatprep.mubr.msk.f32.mxu0 %vm4500_vm0, %v4501_v6 }
 0x2b9   : > { %v3964_v63 = vpop.f32.mrb[4].mxu1 }
 0x2ba   : > { %v1491_v1 = vadd.f32 %v3964_v63, %v3761_v62  ;;  %v1485_v2 = vpop.f32.mrb[5].mxu1 }
 0x2bb   : > { %v1486_v4 = vadd.f32 %v3761_v62, %v1485_v2  ;;  %v3953_v5 = vpop.f32.mrb[0].mxu0 }
 0x2bc   : > { %v1404_v7 = vadd.f32 %v3953_v5, %v3758_v0  ;;  %v1398_v9 = vpop.f32.mrb[1].mxu0 }
 0x2bd   : > { %v1399_v10 = vadd.f32 %v3758_v0, %v1398_v9  ;;  %v4179_v11 = vpack.c.bf16 %v1491_v1, %v1486_v4  ;;  %v4786_v12 = vpack.i.bf16 %v1491_v1, %v1486_v4 }
 0x2bf   : > { %v4175_v14 = vpack.c.bf16 %v1404_v7, %v1399_v10  ;;  %4180 = vmatpush3.bf16.msra.mxu1 %v4179_v11  ;;  %v4794_v15 = vpack.i.bf16 %v1404_v7, %v1399_v10 }
 0x2c0   : > { %4181 = vmatprep.subr.bf16.mxu1 %v4499_v3 }
 0x2c1   : > { %4334 = vrot.lane.b32.xlu0 %v4794_v15, %s5079_s26  ;;  %4177 = vmatpush3.bf16.xpose.msk.msra.mxu0 %vm4790_vm3, %v4175_v14 }
 0x2c2   : > { %4185 = vmatprep.subr.bf16.mxu0 %v4499_v3 }
 0x2c8   : > { %3970 = vmatmul.mubr.msk.f32.vlgmr.msra.gmra.mrb[2].mxu0 %vm1494_vm2, %v4803_v17 }
 0x2c9   : > { %3990 = vmatprep.mubr.msk.f32.mxu0 %vm4500_vm0, %v4501_v6 }
 0x333   : > { %v4335_v28 = vpop.permute.xlu0 %4334 }
 0x334   : > { %v4337_v29 = vunpack.i.h.bf16 %v4335_v28  ;;  %v4336_v30 = vunpack.i.l.bf16 %v4335_v28 }
 0x336   : > { %v4182_v33 = vpack.c.bf16 %v4337_v29, %v4336_v30 }
 0x39b   : > { %v1570_v18 = vpop.f32.mrb[2].mxu0 }
 0x39c   : > { %v1574_v19 = vmul.f32 0.35355338, %v1570_v18  ;;  %v3971_v20 = vpop.f32.mrb[3].mxu0 }
 0x39e   : > { %v1576_v21 = vsel %vm1575_vm4, %v1574_v19, -inf }
 0x39f   : > { %1577 = vmax.xlane.f32.xlu1 %v1576_v21 }
 0x42c   : > { %v1578_v22 = vpop.xlane.xlu1 %1577 }
 0x42d   : > { %v1579_v23 = vsub.f32 %v1574_v19, %v1578_v22 }
 0x42f   : > { %v1580_v24 = vmul.f32 1.442695, %v1579_v23 }
 0x431   : > { %4371 = vpow2.f32 %v1580_v24 }
 0x43b   : > { %v4372_v25 = vpop.eup %4371 }
 0x43c   : > { %v1582_v26 = vsel %vm1575_vm4, %v4372_v25, 0.0 }
 0x43d   : > { %1583 = vadd.xlane.f32.xlu1 %v1582_v26 }
 0x44e   : > { %1661 = vrot.lane.b32.xlu1 %v4803_v17, %s5079_s26 }
 0x4ca   : > { %v1584_v27 = vpop.xlane.xlu1 %1583 }
 0x4cb   : > { %4373 = vrcp.f32 %v1584_v27 }
 0x4ce   : > { %v1662_v35 = vpop.permute.xlu1 %1661 }
 0x4d5   : > { %v4374_v31 = vpop.eup %4373 }
 0x4d6   : > { %v1586_v32 = vmul.f32 %v4374_v31, %v4372_v25 }
 0x4d8   : > { %3977 = vmatmul.mubr.msk.f32.vlgmr.msra.gmra.mrb[6].mxu1 %vm1587_vm5, %v1586_v32 }
 0x4d9   : > { %4184 = vmatpush3.bf16.xpose.msk.msra.mxu1 %vm4790_vm3, %v4182_v33  ;;  %3983 = vmatprep.mubr.msk.f32.mxu1 %vm4500_vm0, %v4501_v6 }
 0x4da   : > { %4192 = vmatprep.subr.bf16.mxu1 %v4499_v3 }
 0x4e0   : > { %3984 = vmatmul.mubr.msk.f32.vlgmr.msra.gmra.mrb[8].mxu1 %vm1494_vm2, %v1662_v35 }
 0x4e1   : > { %4004 = vmatprep.mubr.msk.f32.mxu1 %vm4500_vm0, %v4501_v6 }
 0x5ab   : > { %v4822_v36 = vpop.f32.mrb[6].mxu1 }
 0x5ac   : > { %v3978_v37 = vpop.f32.mrb[7].mxu1 }
 0x5b3   : > { %v1739_v38 = vpop.f32.mrb[8].mxu1 }
 0x5b4   : > { %v1743_v39 = vmul.f32 0.35355338, %v1739_v38  ;;  %v3985_v40 = vpop.f32.mrb[9].mxu1 }
 0x5b6   : > { %v1744_v41 = vsel %vm1575_vm4, %v1743_v39, -inf }
 0x5b7   : > { %1745 = vmax.xlane.f32.xlu1 %v1744_v41  ;;  %v1236_v41 = vld [vmem:[%s5106_s6] sm:$0xff] }
 0x5c8   : > { %4344 = vrot.lane.b32.xlu1 %v4794_v15, %s5077_s7 }
 0x5cc   : > { %1836 = vrot.lane.b32.xlu1 %v4803_v17, %s5077_s7 }
 0x644   : > { %v1746_v42 = vpop.xlane.xlu1 %1745 }
 0x645   : > { %v1747_v43 = vsub.f32 %v1743_v39, %v1746_v42  ;;  %v1237_v42 = vld [vmem:[%s5106_s6 + $0x8] sm:$0xff] }
 0x647   : > { %v1748_v44 = vmul.f32 1.442695, %v1747_v43  ;;  %v1238_v43 = vld [vmem:[%s5106_s6 + $0x10] sm:$0xff] }
 0x648   : > { %v4345_v52 = vpop.permute.xlu1 %4344 }
 0x649   : > { %4375 = vpow2.f32 %v1748_v44  ;;  %v4347_v54 = vunpack.i.h.bf16 %v4345_v52  ;;  %v4346_v55 = vunpack.i.l.bf16 %v4345_v52  ;;  %v4203_v44 = vpack.c.bf16 %v1237_v42, %v1236_v41 }
 0x64b   : > { %v4189_v57 = vpack.c.bf16 %v4347_v54, %v4346_v55  ;;  %v3780_v55 = vld [vmem:[%s5113_s2] ss:$0 sm:$0xff]  ;;  %s5116_s2 = sld [smem:[#allocation11_spill]] }
 0x64c   : > { %v1837_v58 = vpop.permute.xlu1 %1836 }
 0x653   : > { %v4376_v45 = vpop.eup %4375 }
 0x654   : > { %v1750_v46 = vsel %vm1575_vm4, %v4376_v45, 0.0 }
 0x655   : > { %1751 = vadd.xlane.f32.xlu0 %v1750_v46 }
 0x66b   : > { %4339 = vrot.lane.b32.xlu0 %v4786_v12, %s5079_s26  ;;  %s5119_s26 = sld [smem:[#allocation14_spill]] }
 0x6e2   : > { %v1752_v47 = vpop.xlane.xlu0 %1751 }
 0x6e3   : > { %4377 = vrcp.f32 %v1752_v47 }
 0x6e6   : > { %v4340_v48 = vpop.permute.xlu0 %4339 }
 0x6e7   : > { %v4342_v49 = vunpack.i.h.bf16 %v4340_v48  ;;  %v4341_v50 = vunpack.i.l.bf16 %v4340_v48 }
 0x6e9   : > { %v4186_v51 = vpack.c.bf16 %v4342_v49, %v4341_v50 }
 0x6eb   : > { %4187 = vmatpush3.bf16.msra.mxu0 %v4186_v51 }
 0x6ec   : > { %4188 = vmatprep.subr.bf16.mxu0 %v4499_v3 }
 0x6ed   : > { %v4378_v53 = vpop.eup %4377 }
 0x6ee   : > { %v1754_v56 = vmul.f32 %v4378_v53, %v4376_v45  ;;  %v1239_v45 = vld [vmem:[%s5106_s6 + $0x18] sm:$0xff] }
 0x6ef   : > { %v4206_v46 = vpack.c.bf16 %v1239_v45, %v1238_v43 }
 0x6f0   : > { %3991 = vmatmul.mubr.msk.f32.vlgmr.msra.gmra.mrb[4].mxu0 %vm1587_vm5, %v1754_v56 }
 0x6f1   : > { %3997 = vmatprep.mubr.msk.f32.mxu0 %vm4500_vm0, %v4501_v6 }
 0x6f4   : > { %4191 = vmatpush3.bf16.xpose.msk.msra.mxu0 %vm4790_vm3, %v4189_v57 }
 0x6f5   : > { %4199 = vmatprep.subr.bf16.mxu0 %v4499_v3 }
 0x6fb   : > { %3998 = vmatmul.mubr.msk.f32.vlgmr.msra.gmra.mrb[6].mxu0 %vm1494_vm2, %v1837_v58 }
 0x6fc   : > { %4018 = vmatprep.mubr.msk.f32.mxu0 %vm4500_vm0, %v4501_v6 }
 0x7c3   : > { %v1832_v59 = vpop.f32.mrb[4].mxu0 }
 0x7c4   : > { %v3992_v60 = vpop.f32.mrb[5].mxu0 }
 0x7ce   : > { %v1914_v61 = vpop.f32.mrb[6].mxu0 }
 0x7cf   : > { %v1918_v62 = vmul.f32 0.35355338, %v1914_v61  ;;  %v3999_v63 = vpop.f32.mrb[7].mxu0 }
 0x7d1   : > { %v1919_v0 = vsel %vm1575_vm4, %v1918_v62, -inf }
 0x7d2   : > { %1920 = vmax.xlane.f32.xlu1 %v1919_v0 }
 0x7e3   : > { %4354 = vrot.lane.b32.xlu1 %v4794_v15, %s5075_s11 }
 0x7e7   : > { %2009 = vrot.lane.b32.xlu1 %v4803_v17, %s5075_s11 }
 0x85f   : > { %v1921_v1 = vpop.xlane.xlu1 %1920 }
 0x860   : > { %v1922_v2 = vsub.f32 %v1918_v62, %v1921_v1 }
 0x862   : > { %v1923_v4 = vmul.f32 1.442695, %v1922_v2 }
 0x863   : > { %v4355_v16 = vpop.permute.xlu1 %4354 }
 0x864   : > { %4379 = vpow2.f32 %v1923_v4  ;;  %v4357_v18 = vunpack.i.h.bf16 %v4355_v16  ;;  %v4356_v19 = vunpack.i.l.bf16 %v4355_v16 }
 0x866   : > { %v4196_v21 = vpack.c.bf16 %v4357_v18, %v4356_v19 }
 0x867   : > { %v2010_v22 = vpop.permute.xlu1 %2009 }
 0x86e   : > { %v4380_v5 = vpop.eup %4379 }
 0x86f   : > { %v1925_v7 = vsel %vm1575_vm4, %v4380_v5, 0.0 }
 0x870   : > { %1926 = vadd.xlane.f32.xlu0 %v1925_v7 }
 0x886   : > { %4349 = vrot.lane.b32.xlu0 %v4786_v12, %s5077_s7  ;;  %s5118_s7 = sld [smem:[#allocation17_spill]] }
 0x8fd   : > { %v1927_v9 = vpop.xlane.xlu0 %1926 }
 0x8fe   : > { %4381 = vrcp.f32 %v1927_v9 }
 0x901   : > { %v4350_v10 = vpop.permute.xlu0 %4349 }
 0x902   : > { %v4352_v11 = vunpack.i.h.bf16 %v4350_v10  ;;  %v4351_v14 = vunpack.i.l.bf16 %v4350_v10 }
 0x904   : > { %v4193_v15 = vpack.c.bf16 %v4352_v11, %v4351_v14 }
 0x906   : > { %4194 = vmatpush3.bf16.msra.mxu1 %v4193_v15 }
 0x907   : > { %4195 = vmatprep.subr.bf16.mxu1 %v4499_v3 }
 0x908   : > { %v4382_v17 = vpop.eup %4381 }
 0x909   : > { %v1929_v20 = vmul.f32 %v4382_v17, %v4380_v5 }
 0x90b   : > { %4005 = vmatmul.mubr.msk.f32.vlgmr.msra.gmra.mrb[10].mxu1 %vm1587_vm5, %v1929_v20 }
 0x90c   : > { %4011 = vmatprep.mubr.msk.f32.mxu1 %vm4500_vm0, %v4501_v6 }
 0x90f   : > { %4198 = vmatpush3.bf16.xpose.msk.msra.mxu1 %vm4790_vm3, %v4196_v21  ;;  %v3782_v21 = vld [vmem:[%s5116_s2] ss:$0 sm:$0xff]  ;;  %s5122_s2 = smov 120  }
 0x910   : > { %4208 = vmatprep.subr.bf16.mxu1 %v4499_v3 }
 0x916   : > { %4012 = vmatmul.mubr.msk.f32.vlgmr.msra.gmra.mrb[12].mxu1 %vm1494_vm2, %v2010_v22 }
 0x917   : > { %4040 = vmatprep.mubr.msk.f32.mxu1 %vm4500_vm0, %v4501_v6 }
 0x9de   : > { %v2005_v23 = vpop.f32.mrb[10].mxu1 }
 0x9df   : > { %v4006_v24 = vpop.f32.mrb[11].mxu1 }
 0x9e9   : > { %v2087_v25 = vpop.f32.mrb[12].mxu1 }
 0x9ea   : > { %v2091_v26 = vmul.f32 0.35355338, %v2087_v25  ;;  %v4013_v27 = vpop.f32.mrb[13].mxu1  ;;  %v2320_v25 = vld [vmem:[%s5118_s7] sm:$0xff] }
 0x9ec   : > { %v2092_v28 = vsel %vm1575_vm4, %v2091_v26, -inf }
 0x9ed   : > { %2093 = vmax.xlane.f32.xlu0 %v2092_v28 }
 0xa03   : > { %4359 = vrot.lane.b32.xlu0 %v4786_v12, %s5075_s11  ;;  %s5117_s11 = sld [smem:[#allocation12_spill]] }
 0xa07   : > { %2187 = vrot.lane.b32.xlu0 %v2005_v23, %s5072_s4  ;;  %s5074_s4 = smov 24  }
 0xa09   : > { %v3783_v23 = vld [vmem:[%s5117_s11] ss:$0 sm:$0xff]  ;;  %s5121_s11 = sld [smem:[#allocation18_spill]] }
 0xa7a   : > { %v2094_v13 = vpop.xlane.xlu0 %2093 }
 0xa7b   : > { %v2095_v29 = vsub.f32 %v2091_v26, %v2094_v13  ;;  %v2321_v26 = vld [vmem:[%s5118_s7 + $0x8] sm:$0xff] }
 0xa7c   : > { %v4221_v28 = vpack.c.bf16 %v2321_v26, %v2320_v25 }
 0xa7d   : > { %v2096_v30 = vmul.f32 1.442695, %v2095_v29  ;;  %v2322_v29 = vld [vmem:[%s5118_s7 + $0x10] sm:$0xff] }
 0xa7e   : > { %v4360_v31 = vpop.permute.xlu0 %4359 }
 0xa7f   : > { %4383 = vpow2.f32 %v2096_v30  ;;  %v4362_v32 = vunpack.i.h.bf16 %v4360_v31  ;;  %v4361_v33 = vunpack.i.l.bf16 %v4360_v31  ;;  %v2323_v30 = vld [vmem:[%s5118_s7 + $0x18] sm:$0xff]  ;;  %s1102_s7 = sand.u32 127, %s4447_s20 }
 0xa80   : > { %v4224_v31 = vpack.c.bf16 %v2323_v30, %v2322_v29 }
 0xa81   : > { %v4200_v35 = vpack.c.bf16 %v4362_v32, %v4361_v33  ;;  %v3786_v32 = vld [vmem:[%s5120_s3] ss:$0 sm:$0xff]  ;;  %s5124_s3 = smov 104  }
 0xa82   : > { %v2188_v51 = vpop.permute.xlu0 %2187 }
 0xa83   : > { %4201 = vmatpush3.bf16.msra.mxu0 %v4200_v35 }
 0xa84   : > { %4202 = vmatprep.subr.bf16.mxu0 %v4499_v3 }
 0xa89   : > { %v4384_v37 = vpop.eup %4383 }
 0xa8a   : > { %v2098_v12 = vsel %vm1575_vm4, %v4384_v37, 0.0 }
 0xa8b   : > { %2099 = vadd.xlane.f32.xlu1 %v2098_v12 }
 0xa9c   : > { %2183 = vrot.lane.b32.xlu1 %v1832_v59, %s5073_s28  ;;  %s5114_s28 = sld [smem:[#allocation13_spill]] }
 0xaa2   : > { %v2310_v1 = vld [vmem:[%s5114_s28] sm:$0xff]  ;;  %v2311_v2 = vld [vmem:[%s5114_s28 + $0x8] sm:$0xff]  ;;  %v2312_v9 = vld [vmem:[%s5114_s28 + $0x10] sm:$0xff] }
 0xaa3   : > { %v4209_v4 = vpack.c.bf16 %v2311_v2, %v2310_v1  ;;  %v2313_v10 = vld [vmem:[%s5114_s28 + $0x18] sm:$0xff] }
 0xaa4   : > { %v4212_v11 = vpack.c.bf16 %v2313_v10, %v2312_v9 }
 0xaa5   : > { %4210 = vmatpush3.bf16.msra.mxu1 %v4209_v4 }
 0xaa6   : > { %4211 = vmatprep.subr.bf16.mxu1 %v4499_v3 }
 0xaa9   : > { %4213 = vmatpush3.bf16.msra.mxu1 %v4212_v11 }
 0xaaa   : > { %4220 = vmatprep.subr.bf16.mxu1 %v4499_v3 }
 0xb18   : > { %v2100_v38 = vpop.xlane.xlu1 %2099 }
 0xb19   : > { %4385 = vrcp.f32 %v2100_v38 }
 0xb1c   : > { %v2184_v49 = vpop.permute.xlu1 %2183 }
 0xb1d   : > { %v2194_v50 = vsel %vm1494_vm2, %v4822_v36, %v2184_v49 }
 0xb1e   : > { %v2195_v52 = vsel %vm1587_vm5, %v2194_v50, %v2188_v51 }
 0xb23   : > { %v4386_v39 = vpop.eup %4385 }
 0xb24   : > { %v2102_v40 = vmul.f32 %v4386_v39, %v4384_v37 }
 0xb26   : > { %4019 = vmatmul.mubr.msk.f32.vlgmr.msra.gmra.mrb[8].mxu0 %vm1587_vm5, %v2102_v40  ;;  %v3788_v40 = vld [vmem:[%s5121_s11] ss:$0 sm:$0xff] }
 0xb27   : > { %4029 = vmatprep.mubr.msk.f32.mxu0 %vm4500_vm0, %v4501_v6  ;;  %4204 = vmatpush3.bf16.msra.mxu0 %v4203_v44 }
 0xb28   : > { %4205 = vmatprep.subr.bf16.mxu0 %v4499_v3 }
 0xb2b   : > { %4207 = vmatpush3.bf16.msra.mxu0 %v4206_v46 }
 0xb2c   : > { %4214 = vmatprep.subr.bf16.mxu0 %v4499_v3 }
 0xbf9   : > { %v2178_v47 = vpop.f32.mrb[8].mxu0 }
 0xbfa   : > { %2191 = vrot.lane.b32.xlu1 %v2178_v47, %s5074_s4  ;;  %v4020_v48 = vpop.f32.mrb[9].mxu0  ;;  %s5115_s4 = sld [smem:[#allocation15_spill]] }
 0xc00   : > { %v2315_v5 = vld [vmem:[%s5115_s4] sm:$0xff]  ;;  %v2316_v7 = vld [vmem:[%s5115_s4 + $0x8] sm:$0xff]  ;;  %v2317_v14 = vld [vmem:[%s5115_s4 + $0x10] sm:$0xff] }
 0xc01   : > { %v2318_v15 = vld [vmem:[%s5115_s4 + $0x18] sm:$0xff]  ;;  %s5123_s4 = smov 112  }
 0xc02   : > { %v4218_v16 = vpack.c.bf16 %v2318_v15, %v2317_v14 }
 0xc6c   : > { %v2192_v53 = vpop.permute.xlu1 %2191 }
 0xc6d   : > { %v2197_v54 = vsel %vm2196_vm6, %v2195_v52, %v2192_v53 }
 0xc6e   : > { %4030 = vmatmul.mubr.msk.f32.vlgmr.msra.gmra.mrb[10].mxu0 %vm1119_vm1, %v2197_v54 }
 0xc6f   : > { %4051 = vmatprep.mubr.msk.f32.mxu0 %vm4500_vm0, %v4501_v6 }
 0xd41   : > { %v2273_v56 = vpop.f32.mrb[10].mxu0 }
 0xd42   : > { %v2274_v57 = vadd.f32 %v3780_v55, %v2273_v56  ;;  %v4031_v36 = vpop.f32.mrb[11].mxu0 }
 0xd44   : > { %v2279_v58 = vadd.f32 %v2274_v57, %v4738_v8  ;;  %v4215_v8 = vpack.c.bf16 %v2316_v7, %v2315_v5 }
 0xd46   : > { %v2281_v59 = vsel %vm2280_vm7, %v2279_v58, 0.0  ;;  %4216 = vmatpush3.bf16.msra.mxu0 %v4215_v8 }
 0xd47   : > { %2282 = vadd.xlane.f32.xlu0 %v2281_v59  ;;  %4217 = vmatprep.subr.bf16.mxu0 %v4499_v3 }
 0xd4a   : > { %4219 = vmatpush3.bf16.msra.mxu0 %v4218_v16 }
 0xd4b   : > { %4065 = vmatprep.subr.mxu0 %v4501_v6 }
 0xdd4   : > { %v2283_v60 = vpop.xlane.xlu0 %2282 }
 0xdd5   : > { %v2285_v61 = vmul.f32 0.03125, %v2283_v60 }
 0xdd7   : > { %v2286_v62 = vsub.f32 %v2279_v58, %v2285_v61 }
 0xdd9   : > { %v2287_v63 = vmul.f32 %v2286_v62, %v2286_v62 }
 0xddb   : > { %v2288_v0 = vsel %vm2280_vm7, %v2287_v63, 0.0 }
 0xddc   : > { %2289 = vadd.xlane.f32.xlu1 %v2288_v0 }
 0xe69   : > { %v2290_v17 = vpop.xlane.xlu1 %2289 }
 0xe6a   : > { %v2291_v18 = vmul.f32 0.03125, %v2290_v17 }
 0xe6c   : > { %v2292_v19 = vadd.f32 1e-05, %v2291_v18 }
 0xe6e   : > { %4387 = vrsqrt.f32 %v2292_v19 }
 0xe78   : > { %v4388_v20 = vpop.eup %4387 }
 0xe79   : > { %v2294_v22 = vmul.f32 %v4388_v20, %v2286_v62 }
 0xe7b   : > { %v2301_v24 = vmul.f32 %v3782_v21, %v2294_v22 }
 0xe7d   : > { %v4904_v27 = vadd.f32 %v3783_v23, %v2301_v24 }
 0xe7f   : > { %v2309_v13 = vadd.f32 %v4904_v27, %v4761_v34  ;;  %v3784_v34 = vld [vmem:[%s5119_s26] ss:$0 sm:$0xff]  ;;  %s1097_s26 = sshra.s32 %s4447_s20, 7  ;;  %s5131_s20 = smov 24  }
 0xe80   : > { %s1099_s11 = sadd.s32 %s4451_s15, %s1097_s26  ;;  %s5132_s15 = sld [smem:[#allocation23_spill]] }
 0xe81   : > { %4041 = vmatmul.mubr.msk.f32.vlgmr.msra.gmra.mrb[14].mxu1 %vm1119_vm1, %v2309_v13  ;;  %4052 = vmatmul.mubr.msk.f32.vlgmr.msra.gmra.mrb[12].mxu0 %vm1119_vm1, %v2309_v13  ;;  %s3752_s6 = sshll.u32 %s1099_s11, 7  ;;  %s5137_s26 = sld [smem:[#allocation24_spill]] }
 0xe82   : > { %4222 = vmatpush3.bf16.msra.mxu1 %v4221_v28  ;;  %4062 = vmatprep.mubr.msk.f32.mxu1 %vm4500_vm0, %v4501_v6  ;;  %s1103_s8 = sadd.s32 %s3752_s6, %s1102_s7  ;;  %s5130_s6 = smov 16  }
 0xe83   : > { %4223 = vmatprep.subr.bf16.mxu1 %v4499_v3  ;;  %4067 = vmatprep.mubr.msk.f32.mxu0 %vm4500_vm0, %v4501_v6  ;;  %s1104_s9 = sld [smem:[#allocation3 + %s1103_s8]]  ;;  %s1096_s11 = scalar_lea.vmem %s4681_s10, %s4733_s16 }
 0xe84   : > { %s5129_s8 = sld [smem:[#allocation20_spill]] }
 0xe86   : > { %4225 = vmatpush3.bf16.msra.mxu1 %v4224_v31  ;;  %s5133_s7 = smov %s5132_s15 }
 0xe87   : > { %4070 = vmatprep.subr.mxu1 %v4501_v6 }
 0xe89   : > { %4063 = vmatmul.mubr.msk.f32.vlgmr.msra.gmra.mrb[16].mxu1 %vm1119_vm1, %v4904_v27  ;;  %p1105_p12 = scmp.gt.s32.totalorder %s1104_s9, 0  ;;  %s5127_s9 = sld [smem:[#allocation19_spill]] }
 0xe8a   : > { %4072 = vmatprep.mubr.msk.f32.mxu1 %vm4500_vm0, %v4501_v6 }
 0xe8b   : > { %s2641_s13 = scalar_select %p1105_p12, 1, 0 }
 0xe8d   : > { %v2642_v50 = vstv %s2641_s13  ;;  %s5128_s13 = smov 8  }
 0xe8e   : > { %vm4959_vm9 = vcmp.eq.s32.totalorder %v2642_v50, 1 }
 0xe8f   : > { %v2327_v50 = vld [vmem:[%s5127_s9 + $0x10] sm:$0xff]  ;;  %v2328_v52 = vld [vmem:[%s5127_s9 + $0x18] sm:$0xff] }
 0xf54   : > { %v2405_v33 = vpop.f32.mrb[14].mxu1  ;;  %v2481_v35 = vpop.f32.mrb[12].mxu0 }
 0xf55   : > { %v2406_v37 = vadd.f32 %v3784_v34, %v2405_v33  ;;  %v2482_v12 = vadd.f32 %v3786_v32, %v2481_v35  ;;  %v4042_v38 = vpop.f32.mrb[15].mxu1  ;;  %v4053_v39 = vpop.f32.mrb[13].mxu0 }
 0xf57   : > { %2737 = vrot.lane.b32.xlu0 %v2482_v12, %s5122_s2  ;;  %4066 = vmatpush3.xpose.msk.msra.mxu0 %vm1494_vm2, %v2482_v12 }
 0xf58   : > { %2735 = vrot.lane.b32.xlu1 %v2406_v37, %s5122_s2  ;;  %4075 = vmatprep.subr.mxu0 %v4501_v6 }
 0xf5a   : > { %4068 = vmatmul.mubr.msk.f32.vlgmr.msra.gmra.mrb[14].mxu0 %vm1494_vm2, %v2406_v37 }
 0xf5b   : > { %2905 = vrot.lane.b32.xlu0 %v2482_v12, %s5123_s4  ;;  %4077 = vmatprep.mubr.msk.f32.mxu0 %vm4500_vm0, %v4501_v6 }
 0xf5c   : > { %2903 = vrot.lane.b32.xlu1 %v2406_v37, %s5123_s4  ;;  %v2560_v41 = vpop.f32.mrb[16].mxu1 }
 0xf5d   : > { %v4934_v42 = vadd.f32 %v3788_v40, %v2560_v41  ;;  %v4064_v43 = vpop.f32.mrb[17].mxu1 }
 0xf5f   : > { %4071 = vmatpush3.msk.msra.mxu1 %vm2661_vm8, %v4934_v42  ;;  %3073 = vrot.lane.b32.xlu0 %v2482_v12, %s5124_s3 }
 0xf60   : > { %3071 = vrot.lane.b32.xlu1 %v2406_v37, %s5124_s3  ;;  %4080 = vmatprep.subr.mxu1 %v4501_v6 }
 0xfc9   : > { %v2738_v44 = vpop.permute.xlu0 %2737 }
 0xfca   : > { %v2736_v45 = vpop.permute.xlu1 %2735  ;;  %4076 = vmatpush3.xpose.msk.msra.mxu0 %vm1494_vm2, %v2738_v44 }
 0xfcb   : > { %4085 = vmatprep.subr.mxu0 %v4501_v6 }
 0xfcd   : > { %v2906_v46 = vpop.permute.xlu0 %2905  ;;  %4078 = vmatmul.mubr.msk.f32.vlgmr.msra.gmra.mrb[16].mxu0 %vm1494_vm2, %v2736_v45 }
 0xfce   : > { %v2904_v47 = vpop.permute.xlu1 %2903  ;;  %4086 = vmatpush3.xpose.msk.msra.mxu0 %vm1494_vm2, %v2906_v46  ;;  %4087 = vmatprep.mubr.msk.f32.mxu0 %vm4500_vm0, %v4501_v6 }
 0xfcf   : > { %4095 = vmatprep.subr.mxu0 %v4501_v6 }
 0xfd1   : > { %v3074_v48 = vpop.permute.xlu0 %3073  ;;  %4088 = vmatmul.mubr.msk.f32.vlgmr.msra.gmra.mrb[18].mxu0 %vm1494_vm2, %v2904_v47 }
 0xfd2   : > { %4096 = vmatpush3.xpose.msk.msra.mxu0 %vm1494_vm2, %v3074_v48  ;;  %4097 = vmatprep.mubr.msk.f32.mxu0 %vm4500_vm0, %v4501_v6  ;;  %v3072_v49 = vpop.permute.xlu1 %3071  ;;  %v2325_v48 = vld [vmem:[%s5127_s9] sm:$0xff] }
 0xfd3   : > { %4226 = vmatprep.subr.bf16.mxu0 %v4499_v3 }
 0xfd5   : > { %4098 = vmatmul.mubr.msk.f32.vlgmr.msra.gmra.mrb[20].mxu0 %vm1494_vm2, %v3072_v49  ;;  %v2326_v49 = vld [vmem:[%s5127_s9 + $0x8] sm:$0xff] }
 0xfd6   : > { %4113 = vmatprep.mubr.msk.f32.mxu0 %vm4500_vm0, %v4501_v6 }
0x102d   : > { %v2636_v51 = vpop.f32.mrb[14].mxu0 }
0x102e   : > { %v2640_v53 = vmul.f32 0.35355338, %v2636_v51  ;;  %v4069_v54 = vpop.f32.mrb[15].mxu0  ;;  %v4227_v51 = vpack.c.bf16 %v2326_v49, %v2325_v48 }
0x1030   : > { %v2644_v55 = vsel %vm4959_vm9, -1e+09, %v2640_v53  ;;  %4228 = vmatpush3.bf16.msra.mxu0 %v4227_v51  ;;  %v4230_v53 = vpack.c.bf16 %v2328_v52, %v2327_v50 }
0x1031   : > { %v2646_v56 = vsel %vm2645_vm10, %v2644_v55, -inf  ;;  %4229 = vmatprep.subr.bf16.mxu0 %v4499_v3 }
0x1032   : > { %2647 = vmax.xlane.f32.xlu0 %v2646_v56 }
0x1034   : > { %4231 = vmatpush3.bf16.msra.mxu0 %v4230_v53  ;;  %v3812_v53 = vld [vmem:[%s4666_s12] ss:$0 sm:$0xff] }
0x1035   : > { %4238 = vmatprep.subr.bf16.mxu0 %v4499_v3 }
0x10a0   : > { %v2809_v57 = vpop.f32.mrb[16].mxu0 }
0x10a1   : > { %v2813_v36 = vmul.f32 0.35355338, %v2809_v57  ;;  %v4079_v58 = vpop.f32.mrb[17].mxu0 }
0x10a3   : > { %v2814_v59 = vsel %vm4959_vm9, -1e+09, %v2813_v36 }
0x10a4   : > { %v2977_v60 = vpop.f32.mrb[18].mxu0  ;;  %v2815_v61 = vsel %vm2645_vm10, %v2814_v59, -inf }
0x10a5   : > { %v2981_v62 = vmul.f32 0.35355338, %v2977_v60  ;;  %2816 = vmax.xlane.f32.xlu1 %v2815_v61  ;;  %v4089_v63 = vpop.f32.mrb[19].mxu0 }
0x10a7   : > { %v2982_v0 = vsel %vm4959_vm9, -1e+09, %v2981_v62 }
0x10a8   : > { %v3145_v1 = vpop.f32.mrb[20].mxu0  ;;  %v2983_v2 = vsel %vm2645_vm10, %v2982_v0, -inf }
0x10a9   : > { %v3149_v4 = vmul.f32 0.35355338, %v3145_v1  ;;  %2984 = vmax.xlane.f32.xlu0 %v2983_v2  ;;  %v4099_v5 = vpop.f32.mrb[21].mxu0  ;;  %v3806_v1 = vld [vmem:[%s5129_s8] ss:$0 sm:$0xff] }
0x10ab   : > { %v3150_v7 = vsel %vm4959_vm9, -1e+09, %v3149_v4 }
0x10ac   : > { %v3151_v8 = vsel %vm2645_vm10, %v3150_v7, -inf }
0x10ad   : > { %3152 = vmax.xlane.f32.xlu0 %v3151_v8 }
0x10bf   : > { %v2648_v9 = vpop.xlane.xlu0 %2647 }
0x10c0   : > { %v2649_v10 = vsub.f32 %v2644_v55, %v2648_v9 }
0x10c2   : > { %v2650_v11 = vmul.f32 1.442695, %v2649_v10 }
0x10c4   : > { %4389 = vpow2.f32 %v2650_v11 }
0x10ce   : > { %v4390_v14 = vpop.eup %4389 }
0x10cf   : > { %v2652_v15 = vsel %vm2645_vm10, %v4390_v14, 0.0 }
0x10d0   : > { %2653 = vadd.xlane.f32.xlu0 %v2652_v15 }
0x1132   : > { %v2817_v16 = vpop.xlane.xlu1 %2816 }
0x1133   : > { %v2818_v17 = vsub.f32 %v2814_v59, %v2817_v16  ;;  %v3364_v16 = vld [vmem:[%s5133_s7 + $0x8] sm:$0xff] }
0x1135   : > { %v2819_v18 = vmul.f32 1.442695, %v2818_v17 }
0x1136   : > { %v2985_v19 = vpop.xlane.xlu0 %2984 }
0x1137   : > { %4391 = vpow2.f32 %v2819_v18  ;;  %v2986_v20 = vsub.f32 %v2982_v0, %v2985_v19  ;;  %v3366_v18 = vld [vmem:[%s5133_s7 + $0x18] sm:$0xff] }
0x1139   : > { %v2987_v21 = vmul.f32 1.442695, %v2986_v20 }
0x113a   : > { %v3153_v26 = vpop.xlane.xlu0 %3152 }
0x113b   : > { %4393 = vpow2.f32 %v2987_v21  ;;  %v3154_v13 = vsub.f32 %v3150_v7, %v3153_v26 }
0x113d   : > { %v3155_v29 = vmul.f32 1.442695, %v3154_v13 }
0x1141   : > { %v4392_v22 = vpop.eup %4391 }
0x1142   : > { %v2821_v23 = vsel %vm2645_vm10, %v4392_v22, 0.0 }
0x1143   : > { %2822 = vadd.xlane.f32.xlu1 %v2821_v23 }
0x1145   : > { %v4394_v24 = vpop.eup %4393 }
0x1146   : > { %v2989_v25 = vsel %vm2645_vm10, %v4394_v24, 0.0 }
0x1147   : > { %2990 = vadd.xlane.f32.xlu0 %v2989_v25 }
0x1154   : > { %2994 = vrot.lane.b32.xlu1 %v4934_v42, %s5123_s4  ;;  %s5134_s4 = sld [smem:[#allocation21_spill]] }
0x115d   : > { %v2654_v28 = vpop.xlane.xlu0 %2653  ;;  %2826 = vrot.lane.b32.xlu0 %v4934_v42, %s5122_s2  ;;  %s5135_s2 = sld [smem:[#allocation22_spill]] }
0x115e   : > { %4395 = vrcp.f32 %v2654_v28 }
0x115f   : > { %4397 = vpow2.f32 %v3155_v29 }
0x1163   : > { %v3809_v26 = vld [vmem:[%s5135_s2] ss:$0 sm:$0xff] }
0x1168   : > { %v4396_v30 = vpop.eup %4395 }
0x1169   : > { %v2656_v31 = vmul.f32 %v4396_v30, %v4390_v14  ;;  %v4398_v34 = vpop.eup %4397 }
0x116a   : > { %v3157_v32 = vsel %vm2645_vm10, %v4398_v34, 0.0 }
0x116b   : > { %4073 = vmatmul.mubr.msk.f32.vlgmr.msra.gmra.mrb[18].mxu1 %vm2657_vm11, %v2656_v31 }
0x116c   : > { %4082 = vmatprep.mubr.msk.f32.mxu1 %vm4500_vm0, %v4501_v6 }
0x1178   : > { %3158 = vadd.xlane.f32.xlu1 %v3157_v32 }
0x1189   : > { %3162 = vrot.lane.b32.xlu1 %v4934_v42, %s5124_s3  ;;  %s5136_s3 = sld [smem:[#allocation25_spill]] }
0x118f   : > { %v3368_v29 = vld [vmem:[%s5136_s3] sm:$0xff]  ;;  %v3369_v30 = vld [vmem:[%s5136_s3 + $0x8] sm:$0xff]  ;;  %v3371_v32 = vld [vmem:[%s5136_s3 + $0x18] sm:$0xff] }
0x1190   : > { %v4239_v31 = vpack.c.bf16 %v3369_v30, %v3368_v29 }
0x11d0   : > { %v2823_v33 = vpop.xlane.xlu1 %2822 }
0x11d1   : > { %4399 = vrcp.f32 %v2823_v33 }
0x11d4   : > { %v2991_v35 = vpop.xlane.xlu0 %2990  ;;  %v2995_v39 = vpop.permute.xlu1 %2994 }
0x11d5   : > { %4401 = vrcp.f32 %v2991_v35  ;;  %v3372_v35 = vld [vmem:[%s5136_s3 + $0x20] sm:$0xff] }
0x11d8   : > { %v2827_v37 = vpop.permute.xlu0 %2826 }
0x11d9   : > { %4081 = vmatpush3.msk.msra.mxu1 %vm2661_vm8, %v2827_v37  ;;  %v3373_v37 = vld [vmem:[%s5136_s3 + $0x28] sm:$0xff] }
0x11da   : > { %4090 = vmatprep.subr.mxu1 %v4501_v6 }
0x11db   : > { %v4400_v12 = vpop.eup %4399 }
0x11dc   : > { %v2825_v38 = vmul.f32 %v4400_v12, %v4392_v22  ;;  %v4245_v12 = vpack.c.bf16 %v3373_v37, %v3372_v35 }
0x11de   : > { %4083 = vmatmul.mubr.msk.f32.vlgmr.msra.gmra.mrb[20].mxu1 %vm2657_vm11, %v2825_v38  ;;  %v3374_v38 = vld [vmem:[%s5136_s3 + $0x30] sm:$0xff] }
0x11df   : > { %v4402_v40 = vpop.eup %4401  ;;  %4091 = vmatpush3.msk.msra.mxu1 %vm2661_vm8, %v2995_v39  ;;  %4092 = vmatprep.mubr.msk.f32.mxu1 %vm4500_vm0, %v4501_v6  ;;  %v3375_v39 = vld [vmem:[%s5136_s3 + $0x38] sm:$0xff] }
0x11e0   : > { %v2993_v41 = vmul.f32 %v4402_v40, %v4394_v24  ;;  %4100 = vmatprep.subr.mxu1 %v4501_v6  ;;  %v3808_v24 = vld [vmem:[%s5134_s4] ss:$0 sm:$0xff]  ;;  %v4248_v40 = vpack.c.bf16 %v3375_v39, %v3374_v38 }
0x11e2   : > { %4093 = vmatmul.mubr.msk.f32.vlgmr.msra.gmra.mrb[22].mxu1 %vm2657_vm11, %v2993_v41  ;;  %v3810_v41 = vld [vmem:[%s5137_s26] ss:$0 sm:$0xff] }
0x11e3   : > { %4102 = vmatprep.mubr.msk.f32.mxu1 %vm4500_vm0, %v4501_v6 }
0x1205   : > { %v3159_v42 = vpop.xlane.xlu1 %3158 }
0x1206   : > { %4403 = vrcp.f32 %v3159_v42 }
0x1209   : > { %v3163_v43 = vpop.permute.xlu1 %3162 }
0x120a   : > { %4101 = vmatpush3.msk.msra.mxu1 %vm2661_vm8, %v3163_v43 }
0x120b   : > { %4232 = vmatprep.subr.bf16.mxu1 %v4499_v3 }
0x1210   : > { %v4404_v44 = vpop.eup %4403 }
0x1211   : > { %v3161_v45 = vmul.f32 %v4404_v44, %v4398_v34  ;;  %v3370_v34 = vld [vmem:[%s5136_s3 + $0x10] sm:$0xff] }
0x1212   : > { %v4242_v33 = vpack.c.bf16 %v3371_v32, %v3370_v34 }
0x1213   : > { %4103 = vmatmul.mubr.msk.f32.vlgmr.msra.gmra.mrb[24].mxu1 %vm2657_vm11, %v3161_v45 }
0x1214   : > { %4124 = vmatprep.mubr.msk.f32.mxu1 %vm4500_vm0, %v4501_v6 }
0x123e   : > { %v2731_v46 = vpop.f32.mrb[18].mxu1 }
0x123f   : > { %v4074_v47 = vpop.f32.mrb[19].mxu1 }
0x12b1   : > { %v2899_v54 = vpop.f32.mrb[20].mxu1 }
0x12b2   : > { %3240 = vrot.lane.b32.xlu1 %v2899_v54, %s5128_s13  ;;  %v4084_v55 = vpop.f32.mrb[21].mxu1 }
0x12b5   : > { %v3067_v56 = vpop.f32.mrb[22].mxu1 }
0x12b6   : > { %3244 = vrot.lane.b32.xlu0 %v3067_v56, %s5130_s6  ;;  %v4094_v57 = vpop.f32.mrb[23].mxu1 }
0x12e6   : > { %v3235_v36 = vpop.f32.mrb[24].mxu1 }
0x12e7   : > { %3248 = vrot.lane.b32.xlu1 %v3235_v36, %s5131_s20  ;;  %v4104_v58 = vpop.f32.mrb[25].mxu1 }
0x1324   : > { %v3241_v59 = vpop.permute.xlu1 %3240 }
0x1325   : > { %v3251_v61 = vsel %vm1494_vm2, %v2731_v46, %v3241_v59 }
0x1328   : > { %v3245_v60 = vpop.permute.xlu0 %3244 }
0x1329   : > { %v3252_v62 = vsel %vm1587_vm5, %v3251_v61, %v3245_v60 }
0x1359   : > { %v3249_v63 = vpop.permute.xlu1 %3248 }
0x135a   : > { %v3253_v0 = vsel %vm2196_vm6, %v3252_v62, %v3249_v63 }
0x135b   : > { %4114 = vmatmul.mubr.msk.f32.vlgmr.msra.gmra.mrb[22].mxu0 %vm1119_vm1, %v3253_v0 }
0x135c   : > { %4143 = vmatprep.mubr.msk.f32.mxu0 %vm4500_vm0, %v4501_v6  ;;  %v3363_v6 = vld [vmem:[%s5132_s15] sm:$0xff]  ;;  %4240 = vmatpush3.bf16.msra.mxu0 %v4239_v31 }
0x135d   : > { %v4233_v17 = vpack.c.bf16 %v3364_v16, %v3363_v6  ;;  %4241 = vmatprep.subr.bf16.mxu0 %v4499_v3 }
0x135f   : > { %4234 = vmatpush3.bf16.msra.mxu1 %v4233_v17 }
0x1360   : > { %4235 = vmatprep.subr.bf16.mxu1 %v4499_v3  ;;  %4243 = vmatpush3.bf16.msra.mxu0 %v4242_v33 }
0x1361   : > { %4244 = vmatprep.subr.bf16.mxu0 %v4499_v3 }
0x1364   : > { %4246 = vmatpush3.bf16.msra.mxu0 %v4245_v12 }
0x1365   : > { %4247 = vmatprep.subr.bf16.mxu0 %v4499_v3 }
0x1368   : > { %4249 = vmatpush3.bf16.msra.mxu0 %v4248_v40 }
0x142e   : > { %v3329_v2 = vpop.f32.mrb[22].mxu0 }
0x142f   : > { %v3330_v4 = vadd.f32 %v3806_v1, %v3329_v2  ;;  %v4115_v5 = vpop.f32.mrb[23].mxu0 }
0x1431   : > { %v3335_v7 = vadd.f32 %v3330_v4, %v4904_v27  ;;  %v3365_v27 = vld [vmem:[%s5133_s7 + $0x10] sm:$0xff]  ;;  %v3814_v4 = vld [vmem:[%s4671_s23] ss:$0 sm:$0xff] }
0x1432   : > { %v4236_v19 = vpack.c.bf16 %v3366_v18, %v3365_v27 }
0x1433   : > { %v3336_v8 = vsel %vm2280_vm7, %v3335_v7, 0.0 }
0x1434   : > { %3337 = vadd.xlane.f32.xlu0 %v3336_v8  ;;  %4237 = vmatpush3.bf16.msra.mxu1 %v4236_v19 }
0x14c1   : > { %v3338_v9 = vpop.xlane.xlu0 %3337 }
0x14c2   : > { %v3339_v10 = vmul.f32 0.03125, %v3338_v9 }
0x14c4   : > { %v3340_v11 = vsub.f32 %v3335_v7, %v3339_v10  ;;  %v3815_v7 = vld [vmem:[%s4676_s1] ss:$0 sm:$0xff] }
0x14c6   : > { %v3341_v14 = vmul.f32 %v3340_v11, %v3340_v11 }
0x14c8   : > { %v3342_v15 = vsel %vm2280_vm7, %v3341_v14, 0.0 }
0x14c9   : > { %3343 = vadd.xlane.f32.xlu1 %v3342_v15 }
0x1556   : > { %v3344_v20 = vpop.xlane.xlu1 %3343 }
0x1557   : > { %v3345_v21 = vmul.f32 0.03125, %v3344_v20 }
0x1559   : > { %v3346_v22 = vadd.f32 1e-05, %v3345_v21 }
0x155b   : > { %4405 = vrsqrt.f32 %v3346_v22 }
0x1565   : > { %v4406_v23 = vpop.eup %4405 }
0x1566   : > { %v3348_v25 = vmul.f32 %v4406_v23, %v3340_v11 }
0x1568   : > { %v3355_v28 = vmul.f32 %v3808_v24, %v3348_v25 }
0x156a   : > { %v3362_v13 = vadd.f32 %v3809_v26, %v3355_v28 }
0x156c   : > { %4125 = vmatmul.mubr.msk.f32.vlgmr.msra.gmra.mrb[26].mxu1 %vm1119_vm1, %v3362_v13 }
0x163f   : > { %v3452_v42 = vpop.f32.mrb[26].mxu1 }
0x1640   : > { %v3453_v43 = vadd.f32 %v3810_v41, %v3452_v42  ;;  %v4126_v44 = vpop.f32.mrb[27].mxu1 }
0x1642   : > { %v3456_v45 = vmul.f32 %v3453_v43, %v3453_v43 }
0x1644   : > { %v3457_v46 = vmul.f32 %v3456_v45, %v3453_v43 }
0x1646   : > { %v3458_v47 = vmul.f32 0.044715, %v3457_v46 }
0x1648   : > { %v3459_v48 = vadd.f32 %v3458_v47, %v3453_v43 }
0x164a   : > { %v3460_v49 = vmul.f32 0.7978846, %v3459_v48 }
0x164c   : > { %4407 = vtanh.f32 %v3460_v49 }
0x1656   : > { %v4408_v50 = vpop.eup %4407 }
0x1657   : > { %v3462_v51 = vadd.f32 1.0, %v4408_v50 }
0x1659   : > { %v3463_v52 = vmul.f32 0.5, %v3462_v51 }
0x165b   : > { %v3464_v3 = vmul.f32 %v3463_v52, %v3453_v43 }
0x165d   : > { %4144 = vmatmul.mubr.msk.f32.vlgmr.msra.gmra.mrb[24].mxu0 %vm3471_vm12, %v3464_v3 }
0x1730   : > { %v3541_v54 = vpop.f32.mrb[24].mxu0 }
0x1731   : > { %v3542_v55 = vadd.f32 %v3812_v53, %v3541_v54  ;;  %v4145_v56 = vpop.f32.mrb[25].mxu0 }
0x1733   : > { %v3547_v57 = vadd.f32 %v3542_v55, %v3362_v13 }
0x1735   : > { %v3548_v36 = vsel %vm2280_vm7, %v3547_v57, 0.0 }
0x1736   : > { %3549 = vadd.xlane.f32.xlu0 %v3548_v36 }
0x17c3   : > { %v3550_v58 = vpop.xlane.xlu0 %3549 }
0x17c4   : > { %v3551_v59 = vmul.f32 0.03125, %v3550_v58 }
0x17c6   : > { %v3552_v60 = vsub.f32 %v3547_v57, %v3551_v59 }
0x17c8   : > { %v3553_v61 = vmul.f32 %v3552_v60, %v3552_v60 }
0x17ca   : > { %v3554_v62 = vsel %vm2280_vm7, %v3553_v61, 0.0 }
0x17cb   : > { %3555 = vadd.xlane.f32.xlu0 %v3554_v62 }
0x1858   : > { %v3556_v63 = vpop.xlane.xlu0 %3555 }
0x1859   : > { %v3557_v0 = vmul.f32 0.03125, %v3556_v63 }
0x185b   : > { %v3558_v1 = vadd.f32 1e-05, %v3557_v0 }
0x185d   : > { %4409 = vrsqrt.f32 %v3558_v1 }
0x1867   : > { %v4410_v2 = vpop.eup %4409 }
0x1868   : > { %v3560_v5 = vmul.f32 %v4410_v2, %v3552_v60 }
0x186a   : > { %v3567_v8 = vmul.f32 %v3814_v4, %v3560_v5 }
0x186c   : > { %v3574_v9 = vadd.f32 %v3815_v7, %v3567_v8 }
0x186e   : > { %3575 = vst.msk [vmem:[%s1096_s11] sm:$0x3f] %vm2280_vm7, %v3574_v9 }
0x186f PF: > { %s83_s18 = sadd.s32 1, %s4463_s18   ;;  %s5138_s20 = smov %s4455_s0 }
0x1870   : > { %p80_p13 = scmp.ge.s32.totalorder %s83_s18, 10   ;;  %s5139_s15 = smov %s4459_s5 }
0x1871   : > { %s5140_s0 = smov %s5143_s27  ;;  %s5141_s5 = smov %s5147_s22 }
0x1872   :  { %82 = sbr.rel (!%p80_p13) target bundleno = 70 (0x46), region = 220 }

</bundles_post_ra>
